<compile_context>
chip_gen: v7x
topology: tpu7x:2x2x1
jax: 0.10.0
libtpu: 0.0.40
codegen_flags: <defaults>
</compile_context>

<pallas_src>
import numpy as np
import jax
import jax.numpy as jnp
from jax.experimental import pallas as pl
from jax.experimental.pallas import tpu as pltpu


# ----------------------------------------------------------------------------
# DCT helper (numpy, init-time only)
# ----------------------------------------------------------------------------
def get_dct_matrix(N):
    dct_m = np.eye(N)
    for k in range(N):
        for i in range(N):
            w = np.sqrt(2.0 / N)
            if k == 0:
                w = np.sqrt(1.0 / N)
            dct_m[k, i] = w * np.cos(np.pi * (i + 0.5) * k / N)
    i_dct_m = np.linalg.inv(dct_m)
    return dct_m, i_dct_m


# ----------------------------------------------------------------------------
# Pallas kernels (all single grid step, full-array blocks, everything in VMEM)
# ----------------------------------------------------------------------------
def _spec(shape):
    nd = len(shape)
    return pl.BlockSpec(shape, lambda i: (0,) * nd)


_CPARAMS = pltpu.CompilerParams(dimension_semantics=("arbitrary",))


def _encoder_kernel(xe_ref, w0_ref, w_ref, att_ref, sc_ref, sh_ref, o_ref):
    """GCB0 + ResGCB + ResGCB on (B*N, F) activations (pad+DCT folded into w0)."""
    f32 = jnp.float32

    def layer(h, w, i):
        t = jnp.dot(h, w, preferred_element_type=f32)
        t = jnp.dot(att_ref[i], t, preferred_element_type=f32)   # kron(I_B, att) @ .
        return jnp.tanh(t * sc_ref[i] + sh_ref[i])               # folded BN (+bias)

    h0 = layer(xe_ref[...], w0_ref[...], 0)
    h1 = layer(h0, w_ref[0], 1)
    h2 = layer(h1, w_ref[1], 2) + h0          # ResGCB 1
    h3 = layer(h2, w_ref[2], 3)
    h4 = layer(h3, w_ref[3], 4) + h2          # ResGCB 2
    o_ref[...] = h4


def _make_heads_kernel(base_num, temperature):
    inv_m = 1.0 / float(base_num)   # logits = ones / base_num_p1

    def kernel(flat_ref, u_ref, eps_ref, rep_ref, wb_ref, scb_ref, shb_ref,
               exp_ref, w1_ref, s1_ref, h1_ref, w2_ref, b2_ref, o_ref):
        f32 = jnp.float32
        # bases_p1: Linear + folded BN + Tanh   -> (B, M*D)
        bases = jnp.tanh(jnp.dot(flat_ref[...], wb_ref[...],
                                 preferred_element_type=f32)
                         * scb_ref[...] + shb_ref[...])
        # repeat_interleave(bases, nk) expressed as a 0/1 selection matmul
        bases_rep = jnp.dot(rep_ref[...], bases, preferred_element_type=f32)  # (BK, M*D)
        # gumbel-softmax weights
        u = u_ref[...]
        g = -jnp.log(-jnp.log(u + 1e-20) + 1e-20)
        y = (inv_m + g) / temperature
        y = y - jnp.max(y, axis=-1, keepdims=True)
        e = jnp.exp(y)
        wgs = e / jnp.sum(e, axis=-1, keepdims=True)                          # (BK, M)
        # blend folded into the next linears: (wgs expanded per-base) * bases,
        # consumed by per-base-tiled head weights (no lane slicing needed).
        wx = jnp.dot(wgs, exp_ref[...], preferred_element_type=f32) * bases_rep

        def head(i):
            t = jnp.tanh(jnp.dot(wx, w1_ref[i], preferred_element_type=f32)
                         * s1_ref[i] + h1_ref[i])
            return jnp.dot(t, w2_ref[i], preferred_element_type=f32) + b2_ref[i]

        mean = head(0)
        logvar = head(1)
        o_ref[...] = jnp.exp(0.5 * logvar) * eps_ref[...] + mean
    return kernel


def _decoder_kernel(xe_ref, z_ref, wc_ref, wz_ref, esel_ref, tsel_ref,
                    w_ref, att_ref, sc_ref, sh_ref, atto_ref, wo_ref, bo_ref,
                    o_ref):
    """CVAE decoder: GCB0(cond||z) + 2 ResGCB + output GraphConv (iDCT folded)."""
    f32 = jnp.float32
    # first layer input = concat(cond_rep, z_tiled) @ W0, built without
    # materializing repeat/broadcast/concat:
    c = jnp.dot(xe_ref[...], wc_ref[...], preferred_element_type=f32)     # (B*N, H)
    cexp = jnp.dot(esel_ref[...], c, preferred_element_type=f32)          # (BK*N, H)
    zp = jnp.dot(z_ref[...], wz_ref[...], preferred_element_type=f32)     # (BK, H)
    zexp = jnp.dot(tsel_ref[...], zp, preferred_element_type=f32)         # (BK*N, H)
    pre = cexp + zexp

    def post(t, i):
        t = jnp.dot(att_ref[i], t, preferred_element_type=f32)
        return jnp.tanh(t * sc_ref[i] + sh_ref[i])

    def layer(h, wi, i):
        return post(jnp.dot(h, w_ref[wi], preferred_element_type=f32), i)

    h0 = post(pre, 0)
    h1 = layer(h0, 0, 1)
    h2 = layer(h1, 1, 2) + h0
    h3 = layer(h2, 2, 3)
    h4 = layer(h3, 3, 4) + h2
    # output GraphConv (no BN/act) with inverse-DCT (last pred frames) folded
    out = jnp.dot(h4, wo_ref[...], preferred_element_type=f32)            # (BK*N, 3*pred)
    out = jnp.dot(atto_ref[...], out, preferred_element_type=f32) + bo_ref[...]
    o_ref[...] = out


# ----------------------------------------------------------------------------
# pallas_call wrappers
# ----------------------------------------------------------------------------
def encoder_forward(xe, p):
    bn, h = xe.shape[0], p["w0"].shape[1]
    args = (xe, p["w0"], p["w"], p["att"], p["sc"], p["sh"])
    return pl.pallas_call(
        _encoder_kernel,
        out_shape=jax.ShapeDtypeStruct((bn, h), jnp.float32),
        grid=(1,),
        in_specs=[_spec(a.shape) for a in args],
        out_specs=_spec((bn, h)),
        compiler_params=_CPARAMS,
    )(*args)


def heads_forward(flat, u, eps_rep, p, *, base_num, temperature):
    bk, z = eps_rep.shape[0], p["w2"].shape[2]
    kernel = _make_heads_kernel(base_num, temperature)
    args = (flat, u, eps_rep, p["rep"], p["wb"], p["scb"], p["shb"],
            p["expmat"], p["w1"], p["s1"], p["h1"], p["w2"], p["b2"])
    return pl.pallas_call(
        kernel,
        out_shape=jax.ShapeDtypeStruct((bk, z), jnp.float32),
        grid=(1,),
        in_specs=[_spec(a.shape) for a in args],
        out_specs=_spec((bk, z)),
        compiler_params=_CPARAMS,
    )(*args)


def decoder_forward(xe, all_z, p):
    bkn, out_dim = p["esel"].shape[0], p["wo"].shape[1]
    args = (xe, all_z, p["wc"], p["wz"], p["esel"], p["tsel"],
            p["w"], p["att"], p["sc"], p["sh"], p["atto"], p["wo"], p["bo"])
    return pl.pallas_call(
        _decoder_kernel,
        out_shape=jax.ShapeDtypeStruct((bkn, out_dim), jnp.float32),
        grid=(1,),
        in_specs=[_spec(a.shape) for a in args],
        out_specs=_spec((bkn, out_dim)),
        compiler_params=_CPARAMS,
    )(*args)


# ----------------------------------------------------------------------------
# Synthetic parameter init (mirrors the PyTorch module parameters)
# ----------------------------------------------------------------------------
_BN_EPS = 1e-5


def init_gcb(key, fin, fout, n):
    k1, k2, k3, k4, k5 = jax.random.split(key, 5)
    w = jax.random.normal(k1, (fin, fout), jnp.float32) / np.sqrt(fin)
    att = jax.random.normal(k2, (n, n), jnp.float32) / np.sqrt(n)
    bias = 0.01 * jax.random.normal(k3, (1, fout), jnp.float32)
    gamma = 1.0 + 0.01 * jax.random.normal(k4, (n, fout), jnp.float32)
    beta = 0.01 * jax.random.normal(k5, (n, fout), jnp.float32)
    scale = gamma / np.sqrt(1.0 + _BN_EPS)      # running_mean=0, running_var=1
    return dict(w=w, att=att, bias=bias, scale=scale, shift=beta)


def init_linear(key, fin, fout, with_bn):
    k1, k2, k3, k4 = jax.random.split(key, 4)
    w = jax.random.normal(k1, (fin, fout), jnp.float32) / np.sqrt(fin)
    bias = 0.01 * jax.random.normal(k2, (1, fout), jnp.float32)
    if with_bn:
        gamma = 1.0 + 0.01 * jax.random.normal(k3, (1, fout), jnp.float32)
        beta = 0.01 * jax.random.normal(k4, (1, fout), jnp.float32)
        scale = gamma / np.sqrt(1.0 + _BN_EPS)
        shift = beta
    else:
        scale = jnp.ones((1, fout), jnp.float32)
        shift = jnp.zeros((1, fout), jnp.float32)
    return dict(w=w, bias=bias, scale=scale, shift=shift)


def init_params(key, cfg):
    node_n, hidden = cfg["node_n"], cfg["hidden_dim"]
    base_dim, z_dim = cfg["base_dim"], cfg["z_dim"]
    dct_n, base_num = cfg["dct_n"], cfg["base_num_p1"]
    keys = jax.random.split(key, 16)
    ds = {
        "gcb0": init_gcb(keys[0], 3 * dct_n, hidden, node_n),
        "r1a": init_gcb(keys[1], hidden, hidden, node_n),
        "r1b": init_gcb(keys[2], hidden, hidden, node_n),
        "r2a": init_gcb(keys[3], hidden, hidden, node_n),
        "r2b": init_gcb(keys[4], hidden, hidden, node_n),
        "bases": init_linear(keys[5], node_n * hidden, base_num * base_dim, True),
        "mean1": init_linear(keys[6], base_dim, 64, True),
        "mean2": init_linear(keys[7], 64, z_dim, False),
        "logvar1": init_linear(keys[8], base_dim, 64, True),
        "logvar2": init_linear(keys[9], 64, z_dim, False),
    }
    # TODO(synk): CVAE (model_t1) internals are not in the reference source;
    # this follows the canonical diverse_sampling CVAE decoder
    # (GCB -> ResGCB -> ResGCB -> GraphConv, no BN/act on the output layer).
    cvae = {
        "gcb0": init_gcb(keys[10], 3 * dct_n + z_dim, hidden, node_n),
        "r1a": init_gcb(keys[11], hidden, hidden, node_n),
        "r1b": init_gcb(keys[12], hidden, hidden, node_n),
        "r2a": init_gcb(keys[13], hidden, hidden, node_n),
        "r2b": init_gcb(keys[14], hidden, hidden, node_n),
        "out": init_gcb(keys[15], hidden, 3 * dct_n, node_n),
    }
    dct_m, i_dct_m = get_dct_matrix(cfg["t_length"])
    return {"ds": ds, "cvae": cvae, "dct_m": dct_m, "i_dct_m": i_dct_m}


# ----------------------------------------------------------------------------
# One-time parameter preparation: fold DCT/iDCT/bias/BN, build block-diagonal
# adjacencies and selection matrices for the given (batch, nk).
# ----------------------------------------------------------------------------
def prepare_params(raw, cfg, b, nk):
    obs, pred, T = cfg["obs_length"], cfg["pred_length"], cfg["t_length"]
    dct_n, N, H = cfg["dct_n"], cfg["node_n"], cfg["hidden_dim"]
    D, M = cfg["base_dim"], cfg["base_num_p1"]
    bk = b * nk

    dct_m, i_dct_m = np.asarray(raw["dct_m"]), np.asarray(raw["i_dct_m"])
    # fold "repeat last obs frame + DCT" into one (dct_n, obs) matrix
    dct_pad = dct_m[:dct_n, :obs].copy()
    dct_pad[:, obs - 1] += dct_m[:dct_n, obs:].sum(axis=1)
    idct_sub = i_dct_m[T - pred:, :dct_n]                    # last pred frames only

    def np_(a):
        return np.asarray(a, np.float32)

    def fold_dct_w(w):           # (3*dct_n, F) -> (obs*3, F), row index t*3+c
        w3 = np_(w).reshape(3, dct_n, -1)
        return np.einsum("ckh,kt->tch", w3, dct_pad).reshape(obs * 3, -1)

    def folded_shift(p):         # BN(x + bias) = scale*x + (scale*bias + shift)
        return np_(p["scale"]) * np_(p["bias"]) + np_(p["shift"])

    ds, cv = raw["ds"], raw["cvae"]
    j32 = lambda a: jnp.asarray(a, jnp.float32)

    # ---- encoder ----
    enc_layers = [ds["gcb0"], ds["r1a"], ds["r1b"], ds["r2a"], ds["r2b"]]
    enc = dict(
        w0=j32(fold_dct_w(ds["gcb0"]["w"])),
        w=j32(np.stack([np_(l["w"]) for l in enc_layers[1:]])),
        att=j32(np.stack([np.kron(np.eye(b, dtype=np.float32), np_(l["att"]))
                          for l in enc_layers])),
        sc=j32(np.stack([np.tile(np_(l["scale"]), (b, 1)) for l in enc_layers])),
        sh=j32(np.stack([np.tile(folded_shift(l), (b, 1)) for l in enc_layers])),
    )

    # ---- sampling heads ----
    rep = np.zeros((bk, b), np.float32)
    rep[np.arange(bk), np.arange(bk) // nk] = 1.0            # repeat_interleave
    expmat = np.kron(np.eye(M, dtype=np.float32), np.ones((1, D), np.float32))
    heads = dict(
        rep=j32(rep),
        expmat=j32(expmat),
        wb=j32(ds["bases"]["w"]),
        scb=j32(ds["bases"]["scale"]),
        shb=j32(folded_shift(ds["bases"])),
        w1=j32(np.stack([np.tile(np_(ds["mean1"]["w"]), (M, 1)),
                         np.tile(np_(ds["logvar1"]["w"]), (M, 1))])),
        s1=j32(np.stack([np_(ds["mean1"]["scale"]), np_(ds["logvar1"]["scale"])])),
        h1=j32(np.stack([folded_shift(ds["mean1"]), folded_shift(ds["logvar1"])])),
        w2=j32(np.stack([np_(ds["mean2"]["w"]), np_(ds["logvar2"]["w"])])),
        b2=j32(np.stack([np_(ds["mean2"]["bias"]), np_(ds["logvar2"]["bias"])])),
    )

    # ---- CVAE decoder ----
    dec_layers = [cv["gcb0"], cv["r1a"], cv["r1b"], cv["r2a"], cv["r2b"]]
    w0 = np_(cv["gcb0"]["w"])
    wc, wz = w0[:3 * dct_n], w0[3 * dct_n:]                  # split concat(cond, z)
    esel = np.kron(rep, np.eye(N, dtype=np.float32))         # (bk*N, b*N)
    tsel = np.kron(np.eye(bk, dtype=np.float32), np.ones((N, 1), np.float32))
    wo3 = np_(cv["out"]["w"]).reshape(H, 3, dct_n)
    wo_f = np.einsum("hcj,tj->hct", wo3, idct_sub).reshape(H, 3 * pred)
    bo3 = np_(cv["out"]["bias"]).reshape(3, dct_n)
    bo_f = np.einsum("cj,tj->ct", bo3, idct_sub).reshape(1, 3 * pred)
    dec = dict(
        wc=j32(fold_dct_w(wc)),
        wz=j32(wz),
        esel=j32(esel),
        tsel=j32(tsel),
        w=j32(np.stack([np_(l["w"]) for l in dec_layers[1:]])),
        att=j32(np.stack([np.kron(np.eye(bk, dtype=np.float32), np_(l["att"]))
                          for l in dec_layers])),
        sc=j32(np.stack([np.tile(np_(l["scale"]), (bk, 1)) for l in dec_layers])),
        sh=j32(np.stack([np.tile(folded_shift(l), (bk, 1)) for l in dec_layers])),
        atto=j32(np.kron(np.eye(bk, dtype=np.float32), np_(cv["out"]["att"]))),
        wo=j32(wo_f),
        bo=j32(bo_f),
    )
    return dict(enc=enc, heads=heads, dec=dec)


# ----------------------------------------------------------------------------
# Forward pass (mirrors DiverseSamplingWrapper.forward), fully jitted
# ----------------------------------------------------------------------------
def build_forward(cfg, nk):
    obs, pred = cfg["obs_length"], cfg["pred_length"]
    node_n, hidden = cfg["node_n"], cfg["hidden_dim"]
    z_dim, base_num = cfg["z_dim"], cfg["base_num_p1"]
    temperature = cfg["temperature_p1"]

    @jax.jit
    def forward(prep, x, y, key):
        del y  # unused in the reference forward as well
        b = x.shape[0]
        # TODO(synk): participants dim assumed 1 (node_n == n_landmarks).
        # layout (b*N, obs*3), row b*N+n, col t*3+c  (pad+DCT folded into weights)
        xe = x.reshape(b, obs, node_n, 3).transpose(0, 2, 1, 3)
        xe = xe.reshape(b * node_n, obs * 3)

        h4 = encoder_forward(xe, prep["enc"])                 # (b*N, H)
        flat = h4.reshape(b, node_n * hidden)

        ku, ke = jax.random.split(key)
        u = jax.random.uniform(ku, (b * nk, base_num), jnp.float32)
        eps = jax.random.normal(ke, (b, z_dim), jnp.float32)
        eps_rep = jnp.repeat(eps, nk, axis=0)                 # matches reference
        all_z = heads_forward(flat, u, eps_rep, prep["heads"],
                              base_num=base_num, temperature=temperature)

        o2 = decoder_forward(xe, all_z, prep["dec"])          # (b*nk*N, 3*pred)
        out = o2.reshape(b, nk, node_n, 3, pred).transpose(0, 1, 4, 2, 3)
        return out.reshape(b, nk, pred, 1, node_n, 3)

    return forward


# ----------------------------------------------------------------------------
# Demo
# ----------------------------------------------------------------------------
if __name__ == "__main__":
    cfg = dict(
        node_n=16, hidden_dim=64, base_dim=32, z_dim=32, dct_n=8,
        base_num_p1=8, temperature_p1=0.85,
        obs_length=8, pred_length=8,
        n_features=3, n_landmarks=16,
    )
    cfg["t_length"] = cfg["obs_length"] + cfg["pred_length"]

    key = jax.random.PRNGKey(0)
    k_param, k_x, k_y, k_noise = jax.random.split(key, 4)

    raw_params = init_params(k_param, cfg)

    batch, participants, nk = 2, 1, 4
    prep = prepare_params(raw_params, cfg, batch, nk)

    x = jax.random.normal(
        k_x, (batch, cfg["obs_length"], participants,
              cfg["n_landmarks"], cfg["n_features"]), jnp.float32)
    y = jax.random.normal(
        k_y, (batch, cfg["pred_length"], participants,
              cfg["n_landmarks"], cfg["n_features"]), jnp.float32)

    forward = build_forward(cfg, nk)
    out = forward(prep, x, y, k_noise)
    out = jax.block_until_ready(out)

    assert out.shape == (batch, nk, cfg["pred_length"], participants,
                         cfg["n_landmarks"], cfg["n_features"]), out.shape
    assert bool(jnp.all(jnp.isfinite(out)))
    print("KERNEL_OK")
</pallas_src>

<mosaic_0001>
module attributes {stable_mosaic.version = 11 : i64} {
  func.func @_encoder_kernel(%arg0: i32, %arg1: memref<32x24xf32, #tpu.memory_space<vmem>>, %arg2: memref<24x64xf32, #tpu.memory_space<vmem>>, %arg3: memref<4x64x64xf32, #tpu.memory_space<vmem>>, %arg4: memref<5x32x32xf32, #tpu.memory_space<vmem>>, %arg5: memref<5x32x64xf32, #tpu.memory_space<vmem>>, %arg6: memref<5x32x64xf32, #tpu.memory_space<vmem>>, %arg7: memref<32x64xf32, #tpu.memory_space<vmem>>) attributes {dimension_semantics = [#tpu.dimension_semantics<arbitrary>], iteration_bounds = array<i64: 1>, scalar_prefetch = 0 : i64, scratch_operands = 0 : i64, tpu.core_type = #tpu.core_type<tc>, window_params = [{pipeline_mode = #tpu.pipeline_mode<synchronous>, transform_indices = @transform_0, window_bounds = array<i64: 32, 24>}, {pipeline_mode = #tpu.pipeline_mode<synchronous>, transform_indices = @transform_1, window_bounds = array<i64: 24, 64>}, {pipeline_mode = #tpu.pipeline_mode<synchronous>, transform_indices = @transform_2, window_bounds = array<i64: 4, 64, 64>}, {pipeline_mode = #tpu.pipeline_mode<synchronous>, transform_indices = @transform_3, window_bounds = array<i64: 5, 32, 32>}, {pipeline_mode = #tpu.pipeline_mode<synchronous>, transform_indices = @transform_4, window_bounds = array<i64: 5, 32, 64>}, {pipeline_mode = #tpu.pipeline_mode<synchronous>, transform_indices = @transform_5, window_bounds = array<i64: 5, 32, 64>}, {pipeline_mode = #tpu.pipeline_mode<synchronous>, transform_indices = @transform_6, window_bounds = array<i64: 32, 64>}]} {
    %c0 = arith.constant 0 : index
    %c0_0 = arith.constant 0 : index
    %0 = vector.load %arg1[%c0, %c0_0] : memref<32x24xf32, #tpu.memory_space<vmem>>, vector<32x24xf32>
    %c0_1 = arith.constant 0 : index
    %c0_2 = arith.constant 0 : index
    %1 = vector.load %arg2[%c0_1, %c0_2] : memref<24x64xf32, #tpu.memory_space<vmem>>, vector<24x64xf32>
    %cst = arith.constant dense<0.000000e+00> : vector<32x64xf32>
    %2 = tpu.matmul %0, %1, %cst {dimension_numbers = #tpu.dot_dimension_numbers<[1], [0], [0], [1], [0, 0, 1, 1], [], []>} : vector<32x24xf32>, vector<24x64xf32>, vector<32x64xf32> -> vector<32x64xf32>
    %c0_3 = arith.constant 0 : index
    %c0_4 = arith.constant 0 : index
    %c0_5 = arith.constant 0 : index
    %3 = vector.load %arg4[%c0_3, %c0_4, %c0_5] : memref<5x32x32xf32, #tpu.memory_space<vmem>>, vector<1x32x32xf32>
    %4 = vector.shape_cast %3 : vector<1x32x32xf32> to vector<32x32xf32>
    %cst_6 = arith.constant dense<0.000000e+00> : vector<32x64xf32>
    %5 = tpu.matmul %4, %2, %cst_6 {dimension_numbers = #tpu.dot_dimension_numbers<[1], [0], [0], [1], [0, 0, 1, 1], [], []>} : vector<32x32xf32>, vector<32x64xf32>, vector<32x64xf32> -> vector<32x64xf32>
    %c0_7 = arith.constant 0 : index
    %c0_8 = arith.constant 0 : index
    %c0_9 = arith.constant 0 : index
    %6 = vector.load %arg5[%c0_7, %c0_8, %c0_9] : memref<5x32x64xf32, #tpu.memory_space<vmem>>, vector<1x32x64xf32>
    %7 = vector.shape_cast %6 : vector<1x32x64xf32> to vector<32x64xf32>
    %8 = arith.mulf %5, %7 : vector<32x64xf32>
    %c0_10 = arith.constant 0 : index
    %c0_11 = arith.constant 0 : index
    %c0_12 = arith.constant 0 : index
    %9 = vector.load %arg6[%c0_10, %c0_11, %c0_12] : memref<5x32x64xf32, #tpu.memory_space<vmem>>, vector<1x32x64xf32>
    %10 = vector.shape_cast %9 : vector<1x32x64xf32> to vector<32x64xf32>
    %11 = arith.addf %8, %10 : vector<32x64xf32>
    %12 = math.tanh %11 : vector<32x64xf32>
    %c0_13 = arith.constant 0 : index
    %c0_14 = arith.constant 0 : index
    %c0_15 = arith.constant 0 : index
    %13 = vector.load %arg3[%c0_13, %c0_14, %c0_15] : memref<4x64x64xf32, #tpu.memory_space<vmem>>, vector<1x64x64xf32>
    %14 = vector.shape_cast %13 : vector<1x64x64xf32> to vector<64x64xf32>
    %cst_16 = arith.constant dense<0.000000e+00> : vector<32x64xf32>
    %15 = tpu.matmul %12, %14, %cst_16 {dimension_numbers = #tpu.dot_dimension_numbers<[1], [0], [0], [1], [0, 0, 1, 1], [], []>} : vector<32x64xf32>, vector<64x64xf32>, vector<32x64xf32> -> vector<32x64xf32>
    %c1 = arith.constant 1 : index
    %c0_17 = arith.constant 0 : index
    %c0_18 = arith.constant 0 : index
    %16 = vector.load %arg4[%c1, %c0_17, %c0_18] : memref<5x32x32xf32, #tpu.memory_space<vmem>>, vector<1x32x32xf32>
    %17 = vector.shape_cast %16 : vector<1x32x32xf32> to vector<32x32xf32>
    %cst_19 = arith.constant dense<0.000000e+00> : vector<32x64xf32>
    %18 = tpu.matmul %17, %15, %cst_19 {dimension_numbers = #tpu.dot_dimension_numbers<[1], [0], [0], [1], [0, 0, 1, 1], [], []>} : vector<32x32xf32>, vector<32x64xf32>, vector<32x64xf32> -> vector<32x64xf32>
    %c1_20 = arith.constant 1 : index
    %c0_21 = arith.constant 0 : index
    %c0_22 = arith.constant 0 : index
    %19 = vector.load %arg5[%c1_20, %c0_21, %c0_22] : memref<5x32x64xf32, #tpu.memory_space<vmem>>, vector<1x32x64xf32>
    %20 = vector.shape_cast %19 : vector<1x32x64xf32> to vector<32x64xf32>
    %21 = arith.mulf %18, %20 : vector<32x64xf32>
    %c1_23 = arith.constant 1 : index
    %c0_24 = arith.constant 0 : index
    %c0_25 = arith.constant 0 : index
    %22 = vector.load %arg6[%c1_23, %c0_24, %c0_25] : memref<5x32x64xf32, #tpu.memory_space<vmem>>, vector<1x32x64xf32>
    %23 = vector.shape_cast %22 : vector<1x32x64xf32> to vector<32x64xf32>
    %24 = arith.addf %21, %23 : vector<32x64xf32>
    %25 = math.tanh %24 : vector<32x64xf32>
    %c1_26 = arith.constant 1 : index
    %c0_27 = arith.constant 0 : index
    %c0_28 = arith.constant 0 : index
    %26 = vector.load %arg3[%c1_26, %c0_27, %c0_28] : memref<4x64x64xf32, #tpu.memory_space<vmem>>, vector<1x64x64xf32>
    %27 = vector.shape_cast %26 : vector<1x64x64xf32> to vector<64x64xf32>
    %cst_29 = arith.constant dense<0.000000e+00> : vector<32x64xf32>
    %28 = tpu.matmul %25, %27, %cst_29 {dimension_numbers = #tpu.dot_dimension_numbers<[1], [0], [0], [1], [0, 0, 1, 1], [], []>} : vector<32x64xf32>, vector<64x64xf32>, vector<32x64xf32> -> vector<32x64xf32>
    %c2 = arith.constant 2 : index
    %c0_30 = arith.constant 0 : index
    %c0_31 = arith.constant 0 : index
    %29 = vector.load %arg4[%c2, %c0_30, %c0_31] : memref<5x32x32xf32, #tpu.memory_space<vmem>>, vector<1x32x32xf32>
    %30 = vector.shape_cast %29 : vector<1x32x32xf32> to vector<32x32xf32>
    %cst_32 = arith.constant dense<0.000000e+00> : vector<32x64xf32>
    %31 = tpu.matmul %30, %28, %cst_32 {dimension_numbers = #tpu.dot_dimension_numbers<[1], [0], [0], [1], [0, 0, 1, 1], [], []>} : vector<32x32xf32>, vector<32x64xf32>, vector<32x64xf32> -> vector<32x64xf32>
    %c2_33 = arith.constant 2 : index
    %c0_34 = arith.constant 0 : index
    %c0_35 = arith.constant 0 : index
    %32 = vector.load %arg5[%c2_33, %c0_34, %c0_35] : memref<5x32x64xf32, #tpu.memory_space<vmem>>, vector<1x32x64xf32>
    %33 = vector.shape_cast %32 : vector<1x32x64xf32> to vector<32x64xf32>
    %34 = arith.mulf %31, %33 : vector<32x64xf32>
    %c2_36 = arith.constant 2 : index
    %c0_37 = arith.constant 0 : index
    %c0_38 = arith.constant 0 : index
    %35 = vector.load %arg6[%c2_36, %c0_37, %c0_38] : memref<5x32x64xf32, #tpu.memory_space<vmem>>, vector<1x32x64xf32>
    %36 = vector.shape_cast %35 : vector<1x32x64xf32> to vector<32x64xf32>
    %37 = arith.addf %34, %36 : vector<32x64xf32>
    %38 = math.tanh %37 : vector<32x64xf32>
    %39 = arith.addf %38, %12 : vector<32x64xf32>
    %c2_39 = arith.constant 2 : index
    %c0_40 = arith.constant 0 : index
    %c0_41 = arith.constant 0 : index
    %40 = vector.load %arg3[%c2_39, %c0_40, %c0_41] : memref<4x64x64xf32, #tpu.memory_space<vmem>>, vector<1x64x64xf32>
    %41 = vector.shape_cast %40 : vector<1x64x64xf32> to vector<64x64xf32>
    %cst_42 = arith.constant dense<0.000000e+00> : vector<32x64xf32>
    %42 = tpu.matmul %39, %41, %cst_42 {dimension_numbers = #tpu.dot_dimension_numbers<[1], [0], [0], [1], [0, 0, 1, 1], [], []>} : vector<32x64xf32>, vector<64x64xf32>, vector<32x64xf32> -> vector<32x64xf32>
    %c3 = arith.constant 3 : index
    %c0_43 = arith.constant 0 : index
    %c0_44 = arith.constant 0 : index
    %43 = vector.load %arg4[%c3, %c0_43, %c0_44] : memref<5x32x32xf32, #tpu.memory_space<vmem>>, vector<1x32x32xf32>
    %44 = vector.shape_cast %43 : vector<1x32x32xf32> to vector<32x32xf32>
    %cst_45 = arith.constant dense<0.000000e+00> : vector<32x64xf32>
    %45 = tpu.matmul %44, %42, %cst_45 {dimension_numbers = #tpu.dot_dimension_numbers<[1], [0], [0], [1], [0, 0, 1, 1], [], []>} : vector<32x32xf32>, vector<32x64xf32>, vector<32x64xf32> -> vector<32x64xf32>
    %c3_46 = arith.constant 3 : index
    %c0_47 = arith.constant 0 : index
    %c0_48 = arith.constant 0 : index
    %46 = vector.load %arg5[%c3_46, %c0_47, %c0_48] : memref<5x32x64xf32, #tpu.memory_space<vmem>>, vector<1x32x64xf32>
    %47 = vector.shape_cast %46 : vector<1x32x64xf32> to vector<32x64xf32>
    %48 = arith.mulf %45, %47 : vector<32x64xf32>
    %c3_49 = arith.constant 3 : index
    %c0_50 = arith.constant 0 : index
    %c0_51 = arith.constant 0 : index
    %49 = vector.load %arg6[%c3_49, %c0_50, %c0_51] : memref<5x32x64xf32, #tpu.memory_space<vmem>>, vector<1x32x64xf32>
    %50 = vector.shape_cast %49 : vector<1x32x64xf32> to vector<32x64xf32>
    %51 = arith.addf %48, %50 : vector<32x64xf32>
    %52 = math.tanh %51 : vector<32x64xf32>
    %c3_52 = arith.constant 3 : index
    %c0_53 = arith.constant 0 : index
    %c0_54 = arith.constant 0 : index
    %53 = vector.load %arg3[%c3_52, %c0_53, %c0_54] : memref<4x64x64xf32, #tpu.memory_space<vmem>>, vector<1x64x64xf32>
    %54 = vector.shape_cast %53 : vector<1x64x64xf32> to vector<64x64xf32>
    %cst_55 = arith.constant dense<0.000000e+00> : vector<32x64xf32>
    %55 = tpu.matmul %52, %54, %cst_55 {dimension_numbers = #tpu.dot_dimension_numbers<[1], [0], [0], [1], [0, 0, 1, 1], [], []>} : vector<32x64xf32>, vector<64x64xf32>, vector<32x64xf32> -> vector<32x64xf32>
    %c4 = arith.constant 4 : index
    %c0_56 = arith.constant 0 : index
    %c0_57 = arith.constant 0 : index
    %56 = vector.load %arg4[%c4, %c0_56, %c0_57] : memref<5x32x32xf32, #tpu.memory_space<vmem>>, vector<1x32x32xf32>
    %57 = vector.shape_cast %56 : vector<1x32x32xf32> to vector<32x32xf32>
    %cst_58 = arith.constant dense<0.000000e+00> : vector<32x64xf32>
    %58 = tpu.matmul %57, %55, %cst_58 {dimension_numbers = #tpu.dot_dimension_numbers<[1], [0], [0], [1], [0, 0, 1, 1], [], []>} : vector<32x32xf32>, vector<32x64xf32>, vector<32x64xf32> -> vector<32x64xf32>
    %c4_59 = arith.constant 4 : index
    %c0_60 = arith.constant 0 : index
    %c0_61 = arith.constant 0 : index
    %59 = vector.load %arg5[%c4_59, %c0_60, %c0_61] : memref<5x32x64xf32, #tpu.memory_space<vmem>>, vector<1x32x64xf32>
    %60 = vector.shape_cast %59 : vector<1x32x64xf32> to vector<32x64xf32>
    %61 = arith.mulf %58, %60 : vector<32x64xf32>
    %c4_62 = arith.constant 4 : index
    %c0_63 = arith.constant 0 : index
    %c0_64 = arith.constant 0 : index
    %62 = vector.load %arg6[%c4_62, %c0_63, %c0_64] : memref<5x32x64xf32, #tpu.memory_space<vmem>>, vector<1x32x64xf32>
    %63 = vector.shape_cast %62 : vector<1x32x64xf32> to vector<32x64xf32>
    %64 = arith.addf %61, %63 : vector<32x64xf32>
    %65 = math.tanh %64 : vector<32x64xf32>
    %66 = arith.addf %65, %39 : vector<32x64xf32>
    %c0_65 = arith.constant 0 : index
    %c0_66 = arith.constant 0 : index
    %67 = vector.load %arg7[%c0_65, %c0_66] : memref<32x64xf32, #tpu.memory_space<vmem>>, vector<32x64xf32>
    tpu.vector_store %arg7[%c0_65, %c0_66], %66 {strides = array<i32>} : memref<32x64xf32, #tpu.memory_space<vmem>>, vector<32x64xf32>,
    return
  }
  func.func @transform_0(%arg0: i32) -> (i32, i32) {
    %c0_i32 = arith.constant 0 : i32
    %c0_i32_0 = arith.constant 0 : i32
    %c0_i32_1 = arith.constant 0 : i32
    return %c0_i32, %c0_i32_0 : i32, i32
  }
  func.func @transform_1(%arg0: i32) -> (i32, i32) {
    %c0_i32 = arith.constant 0 : i32
    %c0_i32_0 = arith.constant 0 : i32
    %c0_i32_1 = arith.constant 0 : i32
    return %c0_i32, %c0_i32_0 : i32, i32
  }
  func.func @transform_2(%arg0: i32) -> (i32, i32, i32) {
    %c0_i32 = arith.constant 0 : i32
    %c0_i32_0 = arith.constant 0 : i32
    %c0_i32_1 = arith.constant 0 : i32
    %c0_i32_2 = arith.constant 0 : i32
    return %c0_i32, %c0_i32_0, %c0_i32_1 : i32, i32, i32
  }
  func.func @transform_3(%arg0: i32) -> (i32, i32, i32) {
    %c0_i32 = arith.constant 0 : i32
    %c0_i32_0 = arith.constant 0 : i32
    %c0_i32_1 = arith.constant 0 : i32
    %c0_i32_2 = arith.constant 0 : i32
    return %c0_i32, %c0_i32_0, %c0_i32_1 : i32, i32, i32
  }
  func.func @transform_4(%arg0: i32) -> (i32, i32, i32) {
    %c0_i32 = arith.constant 0 : i32
    %c0_i32_0 = arith.constant 0 : i32
    %c0_i32_1 = arith.constant 0 : i32
    %c0_i32_2 = arith.constant 0 : i32
    return %c0_i32, %c0_i32_0, %c0_i32_1 : i32, i32, i32
  }
  func.func @transform_5(%arg0: i32) -> (i32, i32, i32) {
    %c0_i32 = arith.constant 0 : i32
    %c0_i32_0 = arith.constant 0 : i32
    %c0_i32_1 = arith.constant 0 : i32
    %c0_i32_2 = arith.constant 0 : i32
    return %c0_i32, %c0_i32_0, %c0_i32_1 : i32, i32, i32
  }
  func.func @transform_6(%arg0: i32) -> (i32, i32) {
    %c0_i32 = arith.constant 0 : i32
    %c0_i32_0 = arith.constant 0 : i32
    %c0_i32_1 = arith.constant 0 : i32
    return %c0_i32, %c0_i32_0 : i32, i32
  }
}

module attributes {stable_mosaic.version = 11 : i64} {
  func.func @kernel(%arg0: i32, %arg1: memref<2x1024xf32, #tpu.memory_space<vmem>>, %arg2: memref<8x8xf32, #tpu.memory_space<vmem>>, %arg3: memref<8x32xf32, #tpu.memory_space<vmem>>, %arg4: memref<8x2xf32, #tpu.memory_space<vmem>>, %arg5: memref<1024x256xf32, #tpu.memory_space<vmem>>, %arg6: memref<1x256xf32, #tpu.memory_space<vmem>>, %arg7: memref<1x256xf32, #tpu.memory_space<vmem>>, %arg8: memref<8x256xf32, #tpu.memory_space<vmem>>, %arg9: memref<2x256x64xf32, #tpu.memory_space<vmem>>, %arg10: memref<2x1x64xf32, #tpu.memory_space<vmem>>, %arg11: memref<2x1x64xf32, #tpu.memory_space<vmem>>, %arg12: memref<2x64x32xf32, #tpu.memory_space<vmem>>, %arg13: memref<2x1x32xf32, #tpu.memory_space<vmem>>, %arg14: memref<8x32xf32, #tpu.memory_space<vmem>>) attributes {dimension_semantics = [#tpu.dimension_semantics<arbitrary>], iteration_bounds = array<i64: 1>, scalar_prefetch = 0 : i64, scratch_operands = 0 : i64, tpu.core_type = #tpu.core_type<tc>, window_params = [{pipeline_mode = #tpu.pipeline_mode<synchronous>, transform_indices = @transform_0, window_bounds = array<i64: 2, 1024>}, {pipeline_mode = #tpu.pipeline_mode<synchronous>, transform_indices = @transform_1, window_bounds = array<i64: 8, 8>}, {pipeline_mode = #tpu.pipeline_mode<synchronous>, transform_indices = @transform_2, window_bounds = array<i64: 8, 32>}, {pipeline_mode = #tpu.pipeline_mode<synchronous>, transform_indices = @transform_3, window_bounds = array<i64: 8, 2>}, {pipeline_mode = #tpu.pipeline_mode<synchronous>, transform_indices = @transform_4, window_bounds = array<i64: 1024, 256>}, {pipeline_mode = #tpu.pipeline_mode<synchronous>, transform_indices = @transform_5, window_bounds = array<i64: 1, 256>}, {pipeline_mode = #tpu.pipeline_mode<synchronous>, transform_indices = @transform_6, window_bounds = array<i64: 1, 256>}, {pipeline_mode = #tpu.pipeline_mode<synchronous>, transform_indices = @transform_7, window_bounds = array<i64: 8, 256>}, {pipeline_mode = #tpu.pipeline_mode<synchronous>, transform_indices = @transform_8, window_bounds = array<i64: 2, 256, 64>}, {pipeline_mode = #tpu.pipeline_mode<synchronous>, transform_indices = @transform_9, window_bounds = array<i64: 2, 1, 64>}, {pipeline_mode = #tpu.pipeline_mode<synchronous>, transform_indices = @transform_10, window_bounds = array<i64: 2, 1, 64>}, {pipeline_mode = #tpu.pipeline_mode<synchronous>, transform_indices = @transform_11, window_bounds = array<i64: 2, 64, 32>}, {pipeline_mode = #tpu.pipeline_mode<synchronous>, transform_indices = @transform_12, window_bounds = array<i64: 2, 1, 32>}, {pipeline_mode = #tpu.pipeline_mode<synchronous>, transform_indices = @transform_13, window_bounds = array<i64: 8, 32>}]} {
    %c0 = arith.constant 0 : index
    %c0_0 = arith.constant 0 : index
    %0 = vector.load %arg1[%c0, %c0_0] : memref<2x1024xf32, #tpu.memory_space<vmem>>, vector<2x1024xf32>
    %c0_1 = arith.constant 0 : index
    %c0_2 = arith.constant 0 : index
    %1 = vector.load %arg5[%c0_1, %c0_2] : memref<1024x256xf32, #tpu.memory_space<vmem>>, vector<1024x256xf32>
    %cst = arith.constant dense<0.000000e+00> : vector<2x256xf32>
    %2 = tpu.matmul %0, %1, %cst {dimension_numbers = #tpu.dot_dimension_numbers<[1], [0], [0], [1], [0, 0, 1, 1], [], []>} : vector<2x1024xf32>, vector<1024x256xf32>, vector<2x256xf32> -> vector<2x256xf32>
    %c0_3 = arith.constant 0 : index
    %c0_4 = arith.constant 0 : index
    %3 = vector.load %arg6[%c0_3, %c0_4] : memref<1x256xf32, #tpu.memory_space<vmem>>, vector<1x256xf32>
    %4 = vector.broadcast %3 : vector<1x256xf32> to vector<2x256xf32>
    %5 = arith.mulf %2, %4 : vector<2x256xf32>
    %c0_5 = arith.constant 0 : index
    %c0_6 = arith.constant 0 : index
    %6 = vector.load %arg7[%c0_5, %c0_6] : memref<1x256xf32, #tpu.memory_space<vmem>>, vector<1x256xf32>
    %7 = vector.broadcast %6 : vector<1x256xf32> to vector<2x256xf32>
    %8 = arith.addf %5, %7 : vector<2x256xf32>
    %9 = math.tanh %8 : vector<2x256xf32>
    %c0_7 = arith.constant 0 : index
    %c0_8 = arith.constant 0 : index
    %10 = vector.load %arg4[%c0_7, %c0_8] : memref<8x2xf32, #tpu.memory_space<vmem>>, vector<8x2xf32>
    %cst_9 = arith.constant dense<0.000000e+00> : vector<8x256xf32>
    %11 = tpu.matmul %10, %9, %cst_9 {dimension_numbers = #tpu.dot_dimension_numbers<[1], [0], [0], [1], [0, 0, 1, 1], [], []>} : vector<8x2xf32>, vector<2x256xf32>, vector<8x256xf32> -> vector<8x256xf32>
    %c0_10 = arith.constant 0 : index
    %c0_11 = arith.constant 0 : index
    %12 = vector.load %arg2[%c0_10, %c0_11] : memref<8x8xf32, #tpu.memory_space<vmem>>, vector<8x8xf32>
    %cst_12 = arith.constant 9.99999968E-21 : f32
    %13 = vector.broadcast %cst_12 : f32 to vector<8x8xf32>
    %14 = arith.addf %12, %13 : vector<8x8xf32>
    %15 = math.log %14 : vector<8x8xf32>
    %cst_13 = arith.constant 0.000000e+00 : f32
    %16 = vector.broadcast %cst_13 : f32 to vector<8x8xf32>
    %17 = arith.subf %16, %15 : vector<8x8xf32>
    %cst_14 = arith.constant 9.99999968E-21 : f32
    %18 = vector.broadcast %cst_14 : f32 to vector<8x8xf32>
    %19 = arith.addf %17, %18 : vector<8x8xf32>
    %20 = math.log %19 : vector<8x8xf32>
    %cst_15 = arith.constant 0.000000e+00 : f32
    %21 = vector.broadcast %cst_15 : f32 to vector<8x8xf32>
    %22 = arith.subf %21, %20 : vector<8x8xf32>
    %cst_16 = arith.constant 1.250000e-01 : f32
    %23 = vector.broadcast %cst_16 : f32 to vector<8x8xf32>
    %24 = arith.addf %23, %22 : vector<8x8xf32>
    %cst_17 = arith.constant 8.500000e-01 : f32
    %25 = vector.broadcast %cst_17 : f32 to vector<8x8xf32>
    %26 = arith.divf %24, %25 : vector<8x8xf32>
    %cst_18 = arith.constant dense<0xFF800000> : vector<8xf32>
    %27 = vector.multi_reduction <maximumf>, %26, %cst_18 [1] : vector<8x8xf32> to vector<8xf32>
    %28 = vector.shape_cast %27 : vector<8xf32> to vector<8x1xf32>
    %29 = vector.broadcast %28 : vector<8x1xf32> to vector<8x8xf32>
    %30 = arith.subf %26, %29 : vector<8x8xf32>
    %31 = math.exp %30 : vector<8x8xf32>
    %cst_19 = arith.constant dense<0.000000e+00> : vector<8xf32>
    %32 = vector.multi_reduction <add>, %31, %cst_19 [1] : vector<8x8xf32> to vector<8xf32>
    %33 = vector.shape_cast %32 : vector<8xf32> to vector<8x1xf32>
    %34 = vector.broadcast %33 : vector<8x1xf32> to vector<8x8xf32>
    %35 = arith.divf %31, %34 : vector<8x8xf32>
    %c0_20 = arith.constant 0 : index
    %c0_21 = arith.constant 0 : index
    %36 = vector.load %arg8[%c0_20, %c0_21] : memref<8x256xf32, #tpu.memory_space<vmem>>, vector<8x256xf32>
    %cst_22 = arith.constant dense<0.000000e+00> : vector<8x256xf32>
    %37 = tpu.matmul %35, %36, %cst_22 {dimension_numbers = #tpu.dot_dimension_numbers<[1], [0], [0], [1], [0, 0, 1, 1], [], []>} : vector<8x8xf32>, vector<8x256xf32>, vector<8x256xf32> -> vector<8x256xf32>
    %38 = arith.mulf %37, %11 : vector<8x256xf32>
    %c0_23 = arith.constant 0 : index
    %c0_24 = arith.constant 0 : index
    %c0_25 = arith.constant 0 : index
    %39 = vector.load %arg9[%c0_23, %c0_24, %c0_25] : memref<2x256x64xf32, #tpu.memory_space<vmem>>, vector<1x256x64xf32>
    %40 = vector.shape_cast %39 : vector<1x256x64xf32> to vector<256x64xf32>
    %cst_26 = arith.constant dense<0.000000e+00> : vector<8x64xf32>
    %41 = tpu.matmul %38, %40, %cst_26 {dimension_numbers = #tpu.dot_dimension_numbers<[1], [0], [0], [1], [0, 0, 1, 1], [], []>} : vector<8x256xf32>, vector<256x64xf32>, vector<8x64xf32> -> vector<8x64xf32>
    %c0_27 = arith.constant 0 : index
    %c0_28 = arith.constant 0 : index
    %c0_29 = arith.constant 0 : index
    %42 = vector.load %arg10[%c0_27, %c0_28, %c0_29] : memref<2x1x64xf32, #tpu.memory_space<vmem>>, vector<1x1x64xf32>
    %43 = vector.shape_cast %42 : vector<1x1x64xf32> to vector<1x64xf32>
    %44 = vector.broadcast %43 : vector<1x64xf32> to vector<8x64xf32>
    %45 = arith.mulf %41, %44 : vector<8x64xf32>
    %c0_30 = arith.constant 0 : index
    %c0_31 = arith.constant 0 : index
    %c0_32 = arith.constant 0 : index
    %46 = vector.load %arg11[%c0_30, %c0_31, %c0_32] : memref<2x1x64xf32, #tpu.memory_space<vmem>>, vector<1x1x64xf32>
    %47 = vector.shape_cast %46 : vector<1x1x64xf32> to vector<1x64xf32>
    %48 = vector.broadcast %47 : vector<1x64xf32> to vector<8x64xf32>
    %49 = arith.addf %45, %48 : vector<8x64xf32>
    %50 = math.tanh %49 : vector<8x64xf32>
    %c0_33 = arith.constant 0 : index
    %c0_34 = arith.constant 0 : index
    %c0_35 = arith.constant 0 : index
    %51 = vector.load %arg12[%c0_33, %c0_34, %c0_35] : memref<2x64x32xf32, #tpu.memory_space<vmem>>, vector<1x64x32xf32>
    %52 = vector.shape_cast %51 : vector<1x64x32xf32> to vector<64x32xf32>
    %cst_36 = arith.constant dense<0.000000e+00> : vector<8x32xf32>
    %53 = tpu.matmul %50, %52, %cst_36 {dimension_numbers = #tpu.dot_dimension_numbers<[1], [0], [0], [1], [0, 0, 1, 1], [], []>} : vector<8x64xf32>, vector<64x32xf32>, vector<8x32xf32> -> vector<8x32xf32>
    %c0_37 = arith.constant 0 : index
    %c0_38 = arith.constant 0 : index
    %c0_39 = arith.constant 0 : index
    %54 = vector.load %arg13[%c0_37, %c0_38, %c0_39] : memref<2x1x32xf32, #tpu.memory_space<vmem>>, vector<1x1x32xf32>
    %55 = vector.shape_cast %54 : vector<1x1x32xf32> to vector<1x32xf32>
    %56 = vector.broadcast %55 : vector<1x32xf32> to vector<8x32xf32>
    %57 = arith.addf %53, %56 : vector<8x32xf32>
    %c1 = arith.constant 1 : index
    %c0_40 = arith.constant 0 : index
    %c0_41 = arith.constant 0 : index
    %58 = vector.load %arg9[%c1, %c0_40, %c0_41] : memref<2x256x64xf32, #tpu.memory_space<vmem>>, vector<1x256x64xf32>
    %59 = vector.shape_cast %58 : vector<1x256x64xf32> to vector<256x64xf32>
    %cst_42 = arith.constant dense<0.000000e+00> : vector<8x64xf32>
    %60 = tpu.matmul %38, %59, %cst_42 {dimension_numbers = #tpu.dot_dimension_numbers<[1], [0], [0], [1], [0, 0, 1, 1], [], []>} : vector<8x256xf32>, vector<256x64xf32>, vector<8x64xf32> -> vector<8x64xf32>
    %c1_43 = arith.constant 1 : index
    %c0_44 = arith.constant 0 : index
    %c0_45 = arith.constant 0 : index
    %61 = vector.load %arg10[%c1_43, %c0_44, %c0_45] : memref<2x1x64xf32, #tpu.memory_space<vmem>>, vector<1x1x64xf32>
    %62 = vector.shape_cast %61 : vector<1x1x64xf32> to vector<1x64xf32>
    %63 = vector.broadcast %62 : vector<1x64xf32> to vector<8x64xf32>
    %64 = arith.mulf %60, %63 : vector<8x64xf32>
    %c1_46 = arith.constant 1 : index
    %c0_47 = arith.constant 0 : index
    %c0_48 = arith.constant 0 : index
    %65 = vector.load %arg11[%c1_46, %c0_47, %c0_48] : memref<2x1x64xf32, #tpu.memory_space<vmem>>, vector<1x1x64xf32>
    %66 = vector.shape_cast %65 : vector<1x1x64xf32> to vector<1x64xf32>
    %67 = vector.broadcast %66 : vector<1x64xf32> to vector<8x64xf32>
    %68 = arith.addf %64, %67 : vector<8x64xf32>
    %69 = math.tanh %68 : vector<8x64xf32>
    %c1_49 = arith.constant 1 : index
    %c0_50 = arith.constant 0 : index
    %c0_51 = arith.constant 0 : index
    %70 = vector.load %arg12[%c1_49, %c0_50, %c0_51] : memref<2x64x32xf32, #tpu.memory_space<vmem>>, vector<1x64x32xf32>
    %71 = vector.shape_cast %70 : vector<1x64x32xf32> to vector<64x32xf32>
    %cst_52 = arith.constant dense<0.000000e+00> : vector<8x32xf32>
    %72 = tpu.matmul %69, %71, %cst_52 {dimension_numbers = #tpu.dot_dimension_numbers<[1], [0], [0], [1], [0, 0, 1, 1], [], []>} : vector<8x64xf32>, vector<64x32xf32>, vector<8x32xf32> -> vector<8x32xf32>
    %c1_53 = arith.constant 1 : index
    %c0_54 = arith.constant 0 : index
    %c0_55 = arith.constant 0 : index
    %73 = vector.load %arg13[%c1_53, %c0_54, %c0_55] : memref<2x1x32xf32, #tpu.memory_space<vmem>>, vector<1x1x32xf32>
    %74 = vector.shape_cast %73 : vector<1x1x32xf32> to vector<1x32xf32>
    %75 = vector.broadcast %74 : vector<1x32xf32> to vector<8x32xf32>
    %76 = arith.addf %72, %75 : vector<8x32xf32>
    %cst_56 = arith.constant 5.000000e-01 : f32
    %77 = vector.broadcast %cst_56 : f32 to vector<8x32xf32>
    %78 = arith.mulf %77, %76 : vector<8x32xf32>
    %79 = math.exp %78 : vector<8x32xf32>
    %c0_57 = arith.constant 0 : index
    %c0_58 = arith.constant 0 : index
    %80 = vector.load %arg3[%c0_57, %c0_58] : memref<8x32xf32, #tpu.memory_space<vmem>>, vector<8x32xf32>
    %81 = arith.mulf %79, %80 : vector<8x32xf32>
    %82 = arith.addf %81, %57 : vector<8x32xf32>
    %c0_59 = arith.constant 0 : index
    %c0_60 = arith.constant 0 : index
    %83 = vector.load %arg14[%c0_59, %c0_60] : memref<8x32xf32, #tpu.memory_space<vmem>>, vector<8x32xf32>
    tpu.vector_store %arg14[%c0_59, %c0_60], %82 {strides = array<i32>} : memref<8x32xf32, #tpu.memory_space<vmem>>, vector<8x32xf32>,
    return
  }
  func.func @transform_0(%arg0: i32) -> (i32, i32) {
    %c0_i32 = arith.constant 0 : i32
    %c0_i32_0 = arith.constant 0 : i32
    %c0_i32_1 = arith.constant 0 : i32
    return %c0_i32, %c0_i32_0 : i32, i32
  }
  func.func @transform_1(%arg0: i32) -> (i32, i32) {
    %c0_i32 = arith.constant 0 : i32
    %c0_i32_0 = arith.constant 0 : i32
    %c0_i32_1 = arith.constant 0 : i32
    return %c0_i32, %c0_i32_0 : i32, i32
  }
  func.func @transform_2(%arg0: i32) -> (i32, i32) {
    %c0_i32 = arith.constant 0 : i32
    %c0_i32_0 = arith.constant 0 : i32
    %c0_i32_1 = arith.constant 0 : i32
    return %c0_i32, %c0_i32_0 : i32, i32
  }
  func.func @transform_3(%arg0: i32) -> (i32, i32) {
    %c0_i32 = arith.constant 0 : i32
    %c0_i32_0 = arith.constant 0 : i32
    %c0_i32_1 = arith.constant 0 : i32
    return %c0_i32, %c0_i32_0 : i32, i32
  }
  func.func @transform_4(%arg0: i32) -> (i32, i32) {
    %c0_i32 = arith.constant 0 : i32
    %c0_i32_0 = arith.constant 0 : i32
    %c0_i32_1 = arith.constant 0 : i32
    return %c0_i32, %c0_i32_0 : i32, i32
  }
  func.func @transform_5(%arg0: i32) -> (i32, i32) {
    %c0_i32 = arith.constant 0 : i32
    %c0_i32_0 = arith.constant 0 : i32
    %c0_i32_1 = arith.constant 0 : i32
    return %c0_i32, %c0_i32_0 : i32, i32
  }
  func.func @transform_6(%arg0: i32) -> (i32, i32) {
    %c0_i32 = arith.constant 0 : i32
    %c0_i32_0 = arith.constant 0 : i32
    %c0_i32_1 = arith.constant 0 : i32
    return %c0_i32, %c0_i32_0 : i32, i32
  }
  func.func @transform_7(%arg0: i32) -> (i32, i32) {
    %c0_i32 = arith.constant 0 : i32
    %c0_i32_0 = arith.constant 0 : i32
    %c0_i32_1 = arith.constant 0 : i32
    return %c0_i32, %c0_i32_0 : i32, i32
  }
  func.func @transform_8(%arg0: i32) -> (i32, i32, i32) {
    %c0_i32 = arith.constant 0 : i32
    %c0_i32_0 = arith.constant 0 : i32
    %c0_i32_1 = arith.constant 0 : i32
    %c0_i32_2 = arith.constant 0 : i32
    return %c0_i32, %c0_i32_0, %c0_i32_1 : i32, i32, i32
  }
  func.func @transform_9(%arg0: i32) -> (i32, i32, i32) {
    %c0_i32 = arith.constant 0 : i32
    %c0_i32_0 = arith.constant 0 : i32
    %c0_i32_1 = arith.constant 0 : i32
    %c0_i32_2 = arith.constant 0 : i32
    return %c0_i32, %c0_i32_0, %c0_i32_1 : i32, i32, i32
  }
  func.func @transform_10(%arg0: i32) -> (i32, i32, i32) {
    %c0_i32 = arith.constant 0 : i32
    %c0_i32_0 = arith.constant 0 : i32
    %c0_i32_1 = arith.constant 0 : i32
    %c0_i32_2 = arith.constant 0 : i32
    return %c0_i32, %c0_i32_0, %c0_i32_1 : i32, i32, i32
  }
  func.func @transform_11(%arg0: i32) -> (i32, i32, i32) {
    %c0_i32 = arith.constant 0 : i32
    %c0_i32_0 = arith.constant 0 : i32
    %c0_i32_1 = arith.constant 0 : i32
    %c0_i32_2 = arith.constant 0 : i32
    return %c0_i32, %c0_i32_0, %c0_i32_1 : i32, i32, i32
  }
  func.func @transform_12(%arg0: i32) -> (i32, i32, i32) {
    %c0_i32 = arith.constant 0 : i32
    %c0_i32_0 = arith.constant 0 : i32
    %c0_i32_1 = arith.constant 0 : i32
    %c0_i32_2 = arith.constant 0 : i32
    return %c0_i32, %c0_i32_0, %c0_i32_1 : i32, i32, i32
  }
  func.func @transform_13(%arg0: i32) -> (i32, i32) {
    %c0_i32 = arith.constant 0 : i32
    %c0_i32_0 = arith.constant 0 : i32
    %c0_i32_1 = arith.constant 0 : i32
    return %c0_i32, %c0_i32_0 : i32, i32
  }
}

module attributes {stable_mosaic.version = 11 : i64} {
  func.func @_decoder_kernel(%arg0: i32, %arg1: memref<32x24xf32, #tpu.memory_space<vmem>>, %arg2: memref<8x32xf32, #tpu.memory_space<vmem>>, %arg3: memref<24x64xf32, #tpu.memory_space<vmem>>, %arg4: memref<32x64xf32, #tpu.memory_space<vmem>>, %arg5: memref<128x32xf32, #tpu.memory_space<vmem>>, %arg6: memref<128x8xf32, #tpu.memory_space<vmem>>, %arg7: memref<4x64x64xf32, #tpu.memory_space<vmem>>, %arg8: memref<5x128x128xf32, #tpu.memory_space<vmem>>, %arg9: memref<5x128x64xf32, #tpu.memory_space<vmem>>, %arg10: memref<5x128x64xf32, #tpu.memory_space<vmem>>, %arg11: memref<128x128xf32, #tpu.memory_space<vmem>>, %arg12: memref<64x24xf32, #tpu.memory_space<vmem>>, %arg13: memref<1x24xf32, #tpu.memory_space<vmem>>, %arg14: memref<128x24xf32, #tpu.memory_space<vmem>>) attributes {dimension_semantics = [#tpu.dimension_semantics<arbitrary>], iteration_bounds = array<i64: 1>, scalar_prefetch = 0 : i64, scratch_operands = 0 : i64, tpu.core_type = #tpu.core_type<tc>, window_params = [{pipeline_mode = #tpu.pipeline_mode<synchronous>, transform_indices = @transform_0, window_bounds = array<i64: 32, 24>}, {pipeline_mode = #tpu.pipeline_mode<synchronous>, transform_indices = @transform_1, window_bounds = array<i64: 8, 32>}, {pipeline_mode = #tpu.pipeline_mode<synchronous>, transform_indices = @transform_2, window_bounds = array<i64: 24, 64>}, {pipeline_mode = #tpu.pipeline_mode<synchronous>, transform_indices = @transform_3, window_bounds = array<i64: 32, 64>}, {pipeline_mode = #tpu.pipeline_mode<synchronous>, transform_indices = @transform_4, window_bounds = array<i64: 128, 32>}, {pipeline_mode = #tpu.pipeline_mode<synchronous>, transform_indices = @transform_5, window_bounds = array<i64: 128, 8>}, {pipeline_mode = #tpu.pipeline_mode<synchronous>, transform_indices = @transform_6, window_bounds = array<i64: 4, 64, 64>}, {pipeline_mode = #tpu.pipeline_mode<synchronous>, transform_indices = @transform_7, window_bounds = array<i64: 5, 128, 128>}, {pipeline_mode = #tpu.pipeline_mode<synchronous>, transform_indices = @transform_8, window_bounds = array<i64: 5, 128, 64>}, {pipeline_mode = #tpu.pipeline_mode<synchronous>, transform_indices = @transform_9, window_bounds = array<i64: 5, 128, 64>}, {pipeline_mode = #tpu.pipeline_mode<synchronous>, transform_indices = @transform_10, window_bounds = array<i64: 128, 128>}, {pipeline_mode = #tpu.pipeline_mode<synchronous>, transform_indices = @transform_11, window_bounds = array<i64: 64, 24>}, {pipeline_mode = #tpu.pipeline_mode<synchronous>, transform_indices = @transform_12, window_bounds = array<i64: 1, 24>}, {pipeline_mode = #tpu.pipeline_mode<synchronous>, transform_indices = @transform_13, window_bounds = array<i64: 128, 24>}]} {
    %c0 = arith.constant 0 : index
    %c0_0 = arith.constant 0 : index
    %0 = vector.load %arg1[%c0, %c0_0] : memref<32x24xf32, #tpu.memory_space<vmem>>, vector<32x24xf32>
    %c0_1 = arith.constant 0 : index
    %c0_2 = arith.constant 0 : index
    %1 = vector.load %arg3[%c0_1, %c0_2] : memref<24x64xf32, #tpu.memory_space<vmem>>, vector<24x64xf32>
    %cst = arith.constant dense<0.000000e+00> : vector<32x64xf32>
    %2 = tpu.matmul %0, %1, %cst {dimension_numbers = #tpu.dot_dimension_numbers<[1], [0], [0], [1], [0, 0, 1, 1], [], []>} : vector<32x24xf32>, vector<24x64xf32>, vector<32x64xf32> -> vector<32x64xf32>
    %c0_3 = arith.constant 0 : index
    %c0_4 = arith.constant 0 : index
    %3 = vector.load %arg5[%c0_3, %c0_4] : memref<128x32xf32, #tpu.memory_space<vmem>>, vector<128x32xf32>
    %cst_5 = arith.constant dense<0.000000e+00> : vector<128x64xf32>
    %4 = tpu.matmul %3, %2, %cst_5 {dimension_numbers = #tpu.dot_dimension_numbers<[1], [0], [0], [1], [0, 0, 1, 1], [], []>} : vector<128x32xf32>, vector<32x64xf32>, vector<128x64xf32> -> vector<128x64xf32>
    %c0_6 = arith.constant 0 : index
    %c0_7 = arith.constant 0 : index
    %5 = vector.load %arg2[%c0_6, %c0_7] : memref<8x32xf32, #tpu.memory_space<vmem>>, vector<8x32xf32>
    %c0_8 = arith.constant 0 : index
    %c0_9 = arith.constant 0 : index
    %6 = vector.load %arg4[%c0_8, %c0_9] : memref<32x64xf32, #tpu.memory_space<vmem>>, vector<32x64xf32>
    %cst_10 = arith.constant dense<0.000000e+00> : vector<8x64xf32>
    %7 = tpu.matmul %5, %6, %cst_10 {dimension_numbers = #tpu.dot_dimension_numbers<[1], [0], [0], [1], [0, 0, 1, 1], [], []>} : vector<8x32xf32>, vector<32x64xf32>, vector<8x64xf32> -> vector<8x64xf32>
    %c0_11 = arith.constant 0 : index
    %c0_12 = arith.constant 0 : index
    %8 = vector.load %arg6[%c0_11, %c0_12] : memref<128x8xf32, #tpu.memory_space<vmem>>, vector<128x8xf32>
    %cst_13 = arith.constant dense<0.000000e+00> : vector<128x64xf32>
    %9 = tpu.matmul %8, %7, %cst_13 {dimension_numbers = #tpu.dot_dimension_numbers<[1], [0], [0], [1], [0, 0, 1, 1], [], []>} : vector<128x8xf32>, vector<8x64xf32>, vector<128x64xf32> -> vector<128x64xf32>
    %10 = arith.addf %4, %9 : vector<128x64xf32>
    %c0_14 = arith.constant 0 : index
    %c0_15 = arith.constant 0 : index
    %c0_16 = arith.constant 0 : index
    %11 = vector.load %arg8[%c0_14, %c0_15, %c0_16] : memref<5x128x128xf32, #tpu.memory_space<vmem>>, vector<1x128x128xf32>
    %12 = vector.shape_cast %11 : vector<1x128x128xf32> to vector<128x128xf32>
    %cst_17 = arith.constant dense<0.000000e+00> : vector<128x64xf32>
    %13 = tpu.matmul %12, %10, %cst_17 {dimension_numbers = #tpu.dot_dimension_numbers<[1], [0], [0], [1], [0, 0, 1, 1], [], []>} : vector<128x128xf32>, vector<128x64xf32>, vector<128x64xf32> -> vector<128x64xf32>
    %c0_18 = arith.constant 0 : index
    %c0_19 = arith.constant 0 : index
    %c0_20 = arith.constant 0 : index
    %14 = vector.load %arg9[%c0_18, %c0_19, %c0_20] : memref<5x128x64xf32, #tpu.memory_space<vmem>>, vector<1x128x64xf32>
    %15 = vector.shape_cast %14 : vector<1x128x64xf32> to vector<128x64xf32>
    %16 = arith.mulf %13, %15 : vector<128x64xf32>
    %c0_21 = arith.constant 0 : index
    %c0_22 = arith.constant 0 : index
    %c0_23 = arith.constant 0 : index
    %17 = vector.load %arg10[%c0_21, %c0_22, %c0_23] : memref<5x128x64xf32, #tpu.memory_space<vmem>>, vector<1x128x64xf32>
    %18 = vector.shape_cast %17 : vector<1x128x64xf32> to vector<128x64xf32>
    %19 = arith.addf %16, %18 : vector<128x64xf32>
    %20 = math.tanh %19 : vector<128x64xf32>
    %c0_24 = arith.constant 0 : index
    %c0_25 = arith.constant 0 : index
    %c0_26 = arith.constant 0 : index
    %21 = vector.load %arg7[%c0_24, %c0_25, %c0_26] : memref<4x64x64xf32, #tpu.memory_space<vmem>>, vector<1x64x64xf32>
    %22 = vector.shape_cast %21 : vector<1x64x64xf32> to vector<64x64xf32>
    %cst_27 = arith.constant dense<0.000000e+00> : vector<128x64xf32>
    %23 = tpu.matmul %20, %22, %cst_27 {dimension_numbers = #tpu.dot_dimension_numbers<[1], [0], [0], [1], [0, 0, 1, 1], [], []>} : vector<128x64xf32>, vector<64x64xf32>, vector<128x64xf32> -> vector<128x64xf32>
    %c1 = arith.constant 1 : index
    %c0_28 = arith.constant 0 : index
    %c0_29 = arith.constant 0 : index
    %24 = vector.load %arg8[%c1, %c0_28, %c0_29] : memref<5x128x128xf32, #tpu.memory_space<vmem>>, vector<1x128x128xf32>
    %25 = vector.shape_cast %24 : vector<1x128x128xf32> to vector<128x128xf32>
    %cst_30 = arith.constant dense<0.000000e+00> : vector<128x64xf32>
    %26 = tpu.matmul %25, %23, %cst_30 {dimension_numbers = #tpu.dot_dimension_numbers<[1], [0], [0], [1], [0, 0, 1, 1], [], []>} : vector<128x128xf32>, vector<128x64xf32>, vector<128x64xf32> -> vector<128x64xf32>
    %c1_31 = arith.constant 1 : index
    %c0_32 = arith.constant 0 : index
    %c0_33 = arith.constant 0 : index
    %27 = vector.load %arg9[%c1_31, %c0_32, %c0_33] : memref<5x128x64xf32, #tpu.memory_space<vmem>>, vector<1x128x64xf32>
    %28 = vector.shape_cast %27 : vector<1x128x64xf32> to vector<128x64xf32>
    %29 = arith.mulf %26, %28 : vector<128x64xf32>
    %c1_34 = arith.constant 1 : index
    %c0_35 = arith.constant 0 : index
    %c0_36 = arith.constant 0 : index
    %30 = vector.load %arg10[%c1_34, %c0_35, %c0_36] : memref<5x128x64xf32, #tpu.memory_space<vmem>>, vector<1x128x64xf32>
    %31 = vector.shape_cast %30 : vector<1x128x64xf32> to vector<128x64xf32>
    %32 = arith.addf %29, %31 : vector<128x64xf32>
    %33 = math.tanh %32 : vector<128x64xf32>
    %c1_37 = arith.constant 1 : index
    %c0_38 = arith.constant 0 : index
    %c0_39 = arith.constant 0 : index
    %34 = vector.load %arg7[%c1_37, %c0_38, %c0_39] : memref<4x64x64xf32, #tpu.memory_space<vmem>>, vector<1x64x64xf32>
    %35 = vector.shape_cast %34 : vector<1x64x64xf32> to vector<64x64xf32>
    %cst_40 = arith.constant dense<0.000000e+00> : vector<128x64xf32>
    %36 = tpu.matmul %33, %35, %cst_40 {dimension_numbers = #tpu.dot_dimension_numbers<[1], [0], [0], [1], [0, 0, 1, 1], [], []>} : vector<128x64xf32>, vector<64x64xf32>, vector<128x64xf32> -> vector<128x64xf32>
    %c2 = arith.constant 2 : index
    %c0_41 = arith.constant 0 : index
    %c0_42 = arith.constant 0 : index
    %37 = vector.load %arg8[%c2, %c0_41, %c0_42] : memref<5x128x128xf32, #tpu.memory_space<vmem>>, vector<1x128x128xf32>
    %38 = vector.shape_cast %37 : vector<1x128x128xf32> to vector<128x128xf32>
    %cst_43 = arith.constant dense<0.000000e+00> : vector<128x64xf32>
    %39 = tpu.matmul %38, %36, %cst_43 {dimension_numbers = #tpu.dot_dimension_numbers<[1], [0], [0], [1], [0, 0, 1, 1], [], []>} : vector<128x128xf32>, vector<128x64xf32>, vector<128x64xf32> -> vector<128x64xf32>
    %c2_44 = arith.constant 2 : index
    %c0_45 = arith.constant 0 : index
    %c0_46 = arith.constant 0 : index
    %40 = vector.load %arg9[%c2_44, %c0_45, %c0_46] : memref<5x128x64xf32, #tpu.memory_space<vmem>>, vector<1x128x64xf32>
    %41 = vector.shape_cast %40 : vector<1x128x64xf32> to vector<128x64xf32>
    %42 = arith.mulf %39, %41 : vector<128x64xf32>
    %c2_47 = arith.constant 2 : index
    %c0_48 = arith.constant 0 : index
    %c0_49 = arith.constant 0 : index
    %43 = vector.load %arg10[%c2_47, %c0_48, %c0_49] : memref<5x128x64xf32, #tpu.memory_space<vmem>>, vector<1x128x64xf32>
    %44 = vector.shape_cast %43 : vector<1x128x64xf32> to vector<128x64xf32>
    %45 = arith.addf %42, %44 : vector<128x64xf32>
    %46 = math.tanh %45 : vector<128x64xf32>
    %47 = arith.addf %46, %20 : vector<128x64xf32>
    %c2_50 = arith.constant 2 : index
    %c0_51 = arith.constant 0 : index
    %c0_52 = arith.constant 0 : index
    %48 = vector.load %arg7[%c2_50, %c0_51, %c0_52] : memref<4x64x64xf32, #tpu.memory_space<vmem>>, vector<1x64x64xf32>
    %49 = vector.shape_cast %48 : vector<1x64x64xf32> to vector<64x64xf32>
    %cst_53 = arith.constant dense<0.000000e+00> : vector<128x64xf32>
    %50 = tpu.matmul %47, %49, %cst_53 {dimension_numbers = #tpu.dot_dimension_numbers<[1], [0], [0], [1], [0, 0, 1, 1], [], []>} : vector<128x64xf32>, vector<64x64xf32>, vector<128x64xf32> -> vector<128x64xf32>
    %c3 = arith.constant 3 : index
    %c0_54 = arith.constant 0 : index
    %c0_55 = arith.constant 0 : index
    %51 = vector.load %arg8[%c3, %c0_54, %c0_55] : memref<5x128x128xf32, #tpu.memory_space<vmem>>, vector<1x128x128xf32>
    %52 = vector.shape_cast %51 : vector<1x128x128xf32> to vector<128x128xf32>
    %cst_56 = arith.constant dense<0.000000e+00> : vector<128x64xf32>
    %53 = tpu.matmul %52, %50, %cst_56 {dimension_numbers = #tpu.dot_dimension_numbers<[1], [0], [0], [1], [0, 0, 1, 1], [], []>} : vector<128x128xf32>, vector<128x64xf32>, vector<128x64xf32> -> vector<128x64xf32>
    %c3_57 = arith.constant 3 : index
    %c0_58 = arith.constant 0 : index
    %c0_59 = arith.constant 0 : index
    %54 = vector.load %arg9[%c3_57, %c0_58, %c0_59] : memref<5x128x64xf32, #tpu.memory_space<vmem>>, vector<1x128x64xf32>
    %55 = vector.shape_cast %54 : vector<1x128x64xf32> to vector<128x64xf32>
    %56 = arith.mulf %53, %55 : vector<128x64xf32>
    %c3_60 = arith.constant 3 : index
    %c0_61 = arith.constant 0 : index
    %c0_62 = arith.constant 0 : index
    %57 = vector.load %arg10[%c3_60, %c0_61, %c0_62] : memref<5x128x64xf32, #tpu.memory_space<vmem>>, vector<1x128x64xf32>
    %58 = vector.shape_cast %57 : vector<1x128x64xf32> to vector<128x64xf32>
    %59 = arith.addf %56, %58 : vector<128x64xf32>
    %60 = math.tanh %59 : vector<128x64xf32>
    %c3_63 = arith.constant 3 : index
    %c0_64 = arith.constant 0 : index
    %c0_65 = arith.constant 0 : index
    %61 = vector.load %arg7[%c3_63, %c0_64, %c0_65] : memref<4x64x64xf32, #tpu.memory_space<vmem>>, vector<1x64x64xf32>
    %62 = vector.shape_cast %61 : vector<1x64x64xf32> to vector<64x64xf32>
    %cst_66 = arith.constant dense<0.000000e+00> : vector<128x64xf32>
    %63 = tpu.matmul %60, %62, %cst_66 {dimension_numbers = #tpu.dot_dimension_numbers<[1], [0], [0], [1], [0, 0, 1, 1], [], []>} : vector<128x64xf32>, vector<64x64xf32>, vector<128x64xf32> -> vector<128x64xf32>
    %c4 = arith.constant 4 : index
    %c0_67 = arith.constant 0 : index
    %c0_68 = arith.constant 0 : index
    %64 = vector.load %arg8[%c4, %c0_67, %c0_68] : memref<5x128x128xf32, #tpu.memory_space<vmem>>, vector<1x128x128xf32>
    %65 = vector.shape_cast %64 : vector<1x128x128xf32> to vector<128x128xf32>
    %cst_69 = arith.constant dense<0.000000e+00> : vector<128x64xf32>
    %66 = tpu.matmul %65, %63, %cst_69 {dimension_numbers = #tpu.dot_dimension_numbers<[1], [0], [0], [1], [0, 0, 1, 1], [], []>} : vector<128x128xf32>, vector<128x64xf32>, vector<128x64xf32> -> vector<128x64xf32>
    %c4_70 = arith.constant 4 : index
    %c0_71 = arith.constant 0 : index
    %c0_72 = arith.constant 0 : index
    %67 = vector.load %arg9[%c4_70, %c0_71, %c0_72] : memref<5x128x64xf32, #tpu.memory_space<vmem>>, vector<1x128x64xf32>
    %68 = vector.shape_cast %67 : vector<1x128x64xf32> to vector<128x64xf32>
    %69 = arith.mulf %66, %68 : vector<128x64xf32>
    %c4_73 = arith.constant 4 : index
    %c0_74 = arith.constant 0 : index
    %c0_75 = arith.constant 0 : index
    %70 = vector.load %arg10[%c4_73, %c0_74, %c0_75] : memref<5x128x64xf32, #tpu.memory_space<vmem>>, vector<1x128x64xf32>
    %71 = vector.shape_cast %70 : vector<1x128x64xf32> to vector<128x64xf32>
    %72 = arith.addf %69, %71 : vector<128x64xf32>
    %73 = math.tanh %72 : vector<128x64xf32>
    %74 = arith.addf %73, %47 : vector<128x64xf32>
    %c0_76 = arith.constant 0 : index
    %c0_77 = arith.constant 0 : index
    %75 = vector.load %arg12[%c0_76, %c0_77] : memref<64x24xf32, #tpu.memory_space<vmem>>, vector<64x24xf32>
    %cst_78 = arith.constant dense<0.000000e+00> : vector<128x24xf32>
    %76 = tpu.matmul %74, %75, %cst_78 {dimension_numbers = #tpu.dot_dimension_numbers<[1], [0], [0], [1], [0, 0, 1, 1], [], []>} : vector<128x64xf32>, vector<64x24xf32>, vector<128x24xf32> -> vector<128x24xf32>
    %c0_79 = arith.constant 0 : index
    %c0_80 = arith.constant 0 : index
    %77 = vector.load %arg11[%c0_79, %c0_80] : memref<128x128xf32, #tpu.memory_space<vmem>>, vector<128x128xf32>
    %cst_81 = arith.constant dense<0.000000e+00> : vector<128x24xf32>
    %78 = tpu.matmul %77, %76, %cst_81 {dimension_numbers = #tpu.dot_dimension_numbers<[1], [0], [0], [1], [0, 0, 1, 1], [], []>} : vector<128x128xf32>, vector<128x24xf32>, vector<128x24xf32> -> vector<128x24xf32>
    %c0_82 = arith.constant 0 : index
    %c0_83 = arith.constant 0 : index
    %79 = vector.load %arg13[%c0_82, %c0_83] : memref<1x24xf32, #tpu.memory_space<vmem>>, vector<1x24xf32>
    %80 = vector.broadcast %79 : vector<1x24xf32> to vector<128x24xf32>
    %81 = arith.addf %78, %80 : vector<128x24xf32>
    %c0_84 = arith.constant 0 : index
    %c0_85 = arith.constant 0 : index
    %82 = vector.load %arg14[%c0_84, %c0_85] : memref<128x24xf32, #tpu.memory_space<vmem>>, vector<128x24xf32>
    tpu.vector_store %arg14[%c0_84, %c0_85], %81 {strides = array<i32>} : memref<128x24xf32, #tpu.memory_space<vmem>>, vector<128x24xf32>,
    return
  }
  func.func @transform_0(%arg0: i32) -> (i32, i32) {
    %c0_i32 = arith.constant 0 : i32
    %c0_i32_0 = arith.constant 0 : i32
    %c0_i32_1 = arith.constant 0 : i32
    return %c0_i32, %c0_i32_0 : i32, i32
  }
  func.func @transform_1(%arg0: i32) -> (i32, i32) {
    %c0_i32 = arith.constant 0 : i32
    %c0_i32_0 = arith.constant 0 : i32
    %c0_i32_1 = arith.constant 0 : i32
    return %c0_i32, %c0_i32_0 : i32, i32
  }
  func.func @transform_2(%arg0: i32) -> (i32, i32) {
    %c0_i32 = arith.constant 0 : i32
    %c0_i32_0 = arith.constant 0 : i32
    %c0_i32_1 = arith.constant 0 : i32
    return %c0_i32, %c0_i32_0 : i32, i32
  }
  func.func @transform_3(%arg0: i32) -> (i32, i32) {
    %c0_i32 = arith.constant 0 : i32
    %c0_i32_0 = arith.constant 0 : i32
    %c0_i32_1 = arith.constant 0 : i32
    return %c0_i32, %c0_i32_0 : i32, i32
  }
  func.func @transform_4(%arg0: i32) -> (i32, i32) {
    %c0_i32 = arith.constant 0 : i32
    %c0_i32_0 = arith.constant 0 : i32
    %c0_i32_1 = arith.constant 0 : i32
    return %c0_i32, %c0_i32_0 : i32, i32
  }
  func.func @transform_5(%arg0: i32) -> (i32, i32) {
    %c0_i32 = arith.constant 0 : i32
    %c0_i32_0 = arith.constant 0 : i32
    %c0_i32_1 = arith.constant 0 : i32
    return %c0_i32, %c0_i32_0 : i32, i32
  }
  func.func @transform_6(%arg0: i32) -> (i32, i32, i32) {
    %c0_i32 = arith.constant 0 : i32
    %c0_i32_0 = arith.constant 0 : i32
    %c0_i32_1 = arith.constant 0 : i32
    %c0_i32_2 = arith.constant 0 : i32
    return %c0_i32, %c0_i32_0, %c0_i32_1 : i32, i32, i32
  }
  func.func @transform_7(%arg0: i32) -> (i32, i32, i32) {
    %c0_i32 = arith.constant 0 : i32
    %c0_i32_0 = arith.constant 0 : i32
    %c0_i32_1 = arith.constant 0 : i32
    %c0_i32_2 = arith.constant 0 : i32
    return %c0_i32, %c0_i32_0, %c0_i32_1 : i32, i32, i32
  }
  func.func @transform_8(%arg0: i32) -> (i32, i32, i32) {
    %c0_i32 = arith.constant 0 : i32
    %c0_i32_0 = arith.constant 0 : i32
    %c0_i32_1 = arith.constant 0 : i32
    %c0_i32_2 = arith.constant 0 : i32
    return %c0_i32, %c0_i32_0, %c0_i32_1 : i32, i32, i32
  }
  func.func @transform_9(%arg0: i32) -> (i32, i32, i32) {
    %c0_i32 = arith.constant 0 : i32
    %c0_i32_0 = arith.constant 0 : i32
    %c0_i32_1 = arith.constant 0 : i32
    %c0_i32_2 = arith.constant 0 : i32
    return %c0_i32, %c0_i32_0, %c0_i32_1 : i32, i32, i32
  }
  func.func @transform_10(%arg0: i32) -> (i32, i32) {
    %c0_i32 = arith.constant 0 : i32
    %c0_i32_0 = arith.constant 0 : i32
    %c0_i32_1 = arith.constant 0 : i32
    return %c0_i32, %c0_i32_0 : i32, i32
  }
  func.func @transform_11(%arg0: i32) -> (i32, i32) {
    %c0_i32 = arith.constant 0 : i32
    %c0_i32_0 = arith.constant 0 : i32
    %c0_i32_1 = arith.constant 0 : i32
    return %c0_i32, %c0_i32_0 : i32, i32
  }
  func.func @transform_12(%arg0: i32) -> (i32, i32) {
    %c0_i32 = arith.constant 0 : i32
    %c0_i32_0 = arith.constant 0 : i32
    %c0_i32_1 = arith.constant 0 : i32
    return %c0_i32, %c0_i32_0 : i32, i32
  }
  func.func @transform_13(%arg0: i32) -> (i32, i32) {
    %c0_i32 = arith.constant 0 : i32
    %c0_i32_0 = arith.constant 0 : i32
    %c0_i32_1 = arith.constant 0 : i32
    return %c0_i32, %c0_i32_0 : i32, i32
  }
}

</mosaic_0001>

<bundles_post_ra>
// kernel: forward.3
= control target key start
LH: loop header
LB: loop body
LE: loop exit
PB: predicated region body
PF: predicated region fallthrough
CT: control target
= control target key end

     0   :  { %11 = vsyncpa [#allocation3], 0  ;;  %s2064_s0 = inlined_call_operand.vmem [shape: f32[32,24], index: 0, kind: input, shape index: {}]   ;;  %s2065_s1 = inlined_call_operand.hbm [shape: f32[24,64], index: 1, kind: input, shape index: {}]   ;;  %s2066_s2 = inlined_call_operand.hbm [shape: f32[4,64,64], index: 2, kind: input, shape index: {}]   ;;  %s2067_s3 = inlined_call_operand.hbm [shape: f32[5,32,32], index: 3, kind: input, shape index: {}]   ;;  %s2068_s4 = inlined_call_operand.hbm [shape: f32[5,32,64], index: 4, kind: input, shape index: {}]   ;;  %s2069_s5 = inlined_call_operand.hbm [shape: f32[5,32,64], index: 5, kind: input, shape index: {}]   ;;  %s2070_s6 = inlined_call_operand.vmem [shape: f32[32,64], index: 6, kind: output, shape index: {}]  }
   0x1   :  { %12 = vsyncpa [#allocation5], 0 }
   0x2   :  { %13 = vsyncpa [#allocation8], 0  ;;  %s1833_s21 = smov [#allocation4]   ;;  %s1834_s23 = smov [#allocation7]  }
   0x3   :  { %s33_s22 = sshll.u32 %s1833_s21, 4  ;;  %s57_s24 = sshll.u32 %s1834_s23, 4  ;;  %s34_s22 = int_to_ptr.vmem [resolvable:$true] %s33_s22  ;;  %s1875_s24 = int_to_ptr.vmem [resolvable:$true] %s57_s24 }
   0x4   :  { %s1717_s27 = scalar_lea.hbm %s2066_s2, 4096 }
   0x5   :  { %p1718_p0 = scmp.ne.s32.totalorder %s2066_s2, %s1717_s27  ;;  %p1721_p1 = scmp.lt.u32.totalorder %s1717_s27, %s2066_s2 }
   0x7   :  { %p1723_p2 = pnand %p1721_p1, %p1718_p0 }
   0x9   :  { %1726 = shalt.err (!%p1723_p2)
}
   0xa   :  { %s1727_s8 = scalar_lea.vmem %s34_s22, 4096  ;;  %p1732_p4 = scmp.lt.s32.totalorder %s34_s22, %s34_s22 }
   0xb   :  { %p1728_p3 = scmp.ne.s32.totalorder %s34_s22, %s1727_s8  ;;  %p1733_p5 = scmp.lt.s32.totalorder %s1727_s8, %s1727_s8 }
   0xd   :  { %p1734_p6 = por %p1733_p5, %p1732_p4 }
   0xf   :  { %p1735_p7 = pnand %p1734_p6, %p1728_p3 }
  0x11   :  { %1738 = shalt.err (!%p1735_p7)
}
  0x12   :  { %s1835_s9 = smov 128   ;;  %s1836_s10 = smov 8  }
  0x13   :  { %39 = dma.hbm_to_vmem [thread:$0]  %s2066_s2, 4096, %s34_s22, [#allocation5], %s1835_s9, %s1835_s9, %s1836_s10  }
  0x14   :  { %s1739_s15 = scalar_lea.hbm %s2068_s4, 2560 }
  0x15   :  { %p1740_p8 = scmp.ne.s32.totalorder %s2068_s4, %s1739_s15  ;;  %p1743_p9 = scmp.lt.u32.totalorder %s1739_s15, %s2068_s4 }
  0x17   :  { %p1745_p10 = pnand %p1743_p9, %p1740_p8 }
  0x19   :  { %1748 = shalt.err (!%p1745_p10)
}
  0x1a   :  { %s1749_s20 = scalar_lea.vmem %s1875_s24, 2560  ;;  %p1754_p12 = scmp.lt.s32.totalorder %s1875_s24, %s1875_s24 }
  0x1b   :  { %p1750_p11 = scmp.ne.s32.totalorder %s1875_s24, %s1749_s20  ;;  %p1755_p13 = scmp.lt.s32.totalorder %s1749_s20, %s1749_s20 }
  0x1d   :  { %p1756_p0 = por %p1755_p13, %p1754_p12 }
  0x1f   :  { %p1757_p1 = pnand %p1756_p0, %p1750_p11 }
  0x21   :  { %1760 = shalt.err (!%p1757_p1)
}
  0x22   :  { %63 = dma.hbm_to_vmem [thread:$0]  %s2068_s4, 2560, %s1875_s24, [#allocation8], %s1835_s9, %s1835_s9, %s1836_s10  }
  0x23   :  { %s1837_s22 = smov [#allocation2]   ;;  %s1838_s25 = smov [#allocation6]  }
  0x24   :  { %s21_s23 = sshll.u32 %s1837_s22, 4  ;;  %s45_s26 = sshll.u32 %s1838_s25, 4  ;;  %s22_s23 = int_to_ptr.vmem [resolvable:$true] %s21_s23  ;;  %s1912_s26 = int_to_ptr.vmem [resolvable:$true] %s45_s26 }
  0x25   :  { %s1761_s29 = scalar_lea.hbm %s2065_s1, 384 }
  0x26   :  { %p1762_p2 = scmp.ne.s32.totalorder %s2065_s1, %s1761_s29  ;;  %p1765_p3 = scmp.lt.u32.totalorder %s1761_s29, %s2065_s1 }
  0x28   :  { %p1767_p4 = pnand %p1765_p3, %p1762_p2 }
  0x2a   :  { %1770 = shalt.err (!%p1767_p4)
}
  0x2b   :  { %s1771_s4 = scalar_lea.vmem %s22_s23, 384  ;;  %p1776_p6 = scmp.lt.s32.totalorder %s22_s23, %s22_s23 }
  0x2c   :  { %p1772_p5 = scmp.ne.s32.totalorder %s22_s23, %s1771_s4  ;;  %p1777_p7 = scmp.lt.s32.totalorder %s1771_s4, %s1771_s4 }
  0x2e   :  { %p1778_p8 = por %p1777_p7, %p1776_p6 }
  0x30   :  { %p1779_p9 = pnand %p1778_p8, %p1772_p5 }
  0x32   :  { %1782 = shalt.err (!%p1779_p9)
}
  0x33   :  { %27 = dma.hbm_to_vmem [thread:$0]  %s2065_s1, 384, %s22_s23, [#allocation3], %s1835_s9, %s1835_s9, %s1836_s10  }
  0x34   :  { %s1783_s15 = scalar_lea.hbm %s2067_s3, 2560 }
  0x35   :  { %p1784_p10 = scmp.ne.s32.totalorder %s2067_s3, %s1783_s15  ;;  %p1787_p11 = scmp.lt.u32.totalorder %s1783_s15, %s2067_s3 }
  0x37   :  { %p1789_p12 = pnand %p1787_p11, %p1784_p10 }
  0x39   :  { %1792 = shalt.err (!%p1789_p12)
}
  0x3a   :  { %s1793_s20 = scalar_lea.vmem %s1912_s26, 2560  ;;  %p1798_p0 = scmp.lt.s32.totalorder %s1912_s26, %s1912_s26 }
  0x3b   :  { %p1794_p13 = scmp.ne.s32.totalorder %s1912_s26, %s1793_s20  ;;  %p1799_p1 = scmp.lt.s32.totalorder %s1793_s20, %s1793_s20 }
  0x3d   :  { %p1800_p2 = por %p1799_p1, %p1798_p0 }
  0x3f   :  { %p1801_p3 = pnand %p1800_p2, %p1794_p13 }
  0x41   :  { %1804 = shalt.err (!%p1801_p3)
}
  0x42   :  { %51 = dma.hbm_to_vmem [thread:$0]  %s2067_s3, 2560, %s1912_s26, [#allocation5], %s1835_s9, %s1835_s9, %s1836_s10  }
  0x43   :  { %s1839_s21 = smov [#allocation9]   ;;  %s1805_s27 = scalar_lea.hbm %s2069_s5, 2560 }
  0x44   :  { %s69_s22 = sshll.u32 %s1839_s21, 4  ;;  %p1806_p4 = scmp.ne.s32.totalorder %s2069_s5, %s1805_s27  ;;  %s70_s22 = int_to_ptr.vmem [resolvable:$true] %s69_s22 }
  0x45   :  { %p1809_p5 = scmp.lt.u32.totalorder %s1805_s27, %s2069_s5 }
  0x47   :  { %p1811_p6 = pnand %p1809_p5, %p1806_p4 }
  0x49   :  { %1814 = shalt.err (!%p1811_p6)
}
  0x4a   :  { %s1815_s8 = scalar_lea.vmem %s70_s22, 2560  ;;  %p1820_p8 = scmp.lt.s32.totalorder %s70_s22, %s70_s22 }
  0x4b   :  { %p1816_p7 = scmp.ne.s32.totalorder %s70_s22, %s1815_s8  ;;  %p1821_p9 = scmp.lt.s32.totalorder %s1815_s8, %s1815_s8 }
  0x4d   :  { %p1822_p10 = por %p1821_p9, %p1820_p8 }
  0x4f   :  { %p1823_p11 = pnand %p1822_p10, %p1816_p7 }
  0x51   :  { %1826 = shalt.err (!%p1823_p11)
}
  0x52   :  { %75 = dma.hbm_to_vmem [thread:$0]  %s2069_s5, 2560, %s70_s22, [#allocation8], %s1835_s9, %s1835_s9, %s1836_s10  }
  0x53   :  { %1827 = dma.done.wait [#allocation3], 384  }
  0x54   :  { %1828 = vsyncadd [#allocation3], 4294966912 }
  0x55   :  { %1829 = dma.done.wait [#allocation5], 6656  }
  0x56   :  { %1830 = vsyncadd [#allocation5], 4294960640 }
  0x57   :  { %1831 = dma.done.wait [#allocation8], 5120  }
  0x58   :  { %1832 = vsyncadd [#allocation8], 4294962176  ;;  %vm98_vm0 = vcmask 195584   ;;  %v95_v0 = vld [vmem:[#allocation2] sm:$0xff]  ;;  %v96_v1 = vld [vmem:[#allocation2 + $0x8] sm:$0xff]  ;;  %vm200_vm1 = vcmask 261120  }
  0x59   :  { %v1562_v2 = vpack.c.bf16 %v96_v1, %v95_v0  ;;  %v91_v3 = vld [vmem:[%s2064_s0] sm:$0xff]  ;;  %v97_v4 = vld [vmem:[#allocation2 + $0x10] sm:$0xff]  ;;  %v92_v5 = vld [vmem:[%s2064_s0 + $0x8] sm:$0xff]  ;;  %vm326_vm2 = vcmask 523264  }
  0x5a   :  { %1398 = vmatprep.mubr.msk.f32.mxu0 %vm98_vm0, %v91_v3  ;;  %v93_v6 = vld [vmem:[%s2064_s0 + $0x10] sm:$0xff]  ;;  %v94_v7 = vld [vmem:[%s2064_s0 + $0x18] sm:$0xff]  ;;  %v197_v15 = vld [vmem:[#allocation6 + $0x8] sm:$0xff] }
  0x5b   :  { %1563 = vmatprep.subr.bf16.mxu0 %v1562_v2  ;;  %v196_v8 = vld [vmem:[#allocation6] sm:$0xff]  ;;  %v198_v16 = vld [vmem:[#allocation6 + $0x10] sm:$0xff]  ;;  %v199_v17 = vld [vmem:[#allocation6 + $0x18] sm:$0xff] }
  0x5c   :  { %1565 = vmatpush3.bf16.msra.mxu0 %v1562_v2  ;;  %1412 = vmatprep.mubr.msk.f32.mxu1 %vm200_vm1, %v196_v8  ;;  %v318_v18 = vld [vmem:[#allocation4] sm:$0xff]  ;;  %v319_v19 = vld [vmem:[#allocation4 + $0x8] sm:$0xff]  ;;  %v320_v21 = vld [vmem:[#allocation4 + $0x10] sm:$0xff] }
  0x5d   :  { %1396 = vmatprep.subr.mxu0 %v97_v4  ;;  %v1574_v20 = vpack.c.bf16 %v319_v19, %v318_v18  ;;  %v321_v22 = vld [vmem:[#allocation4 + $0x18] sm:$0xff]  ;;  %v322_v24 = vld [vmem:[#allocation4 + $0x20] sm:$0xff]  ;;  %v323_v25 = vld [vmem:[#allocation4 + $0x28] sm:$0xff] }
  0x5e   :  { %v1578_v23 = vpack.c.bf16 %v321_v22, %v320_v21  ;;  %v1582_v26 = vpack.c.bf16 %v323_v25, %v322_v24  ;;  %v324_v27 = vld [vmem:[#allocation4 + $0x30] sm:$0xff]  ;;  %v325_v28 = vld [vmem:[#allocation4 + $0x38] sm:$0xff]  ;;  %v299_v30 = vld [vmem:[#allocation7 + $0x8] sm:$0xff] }
  0x5f   :  { %v1586_v29 = vpack.c.bf16 %v325_v28, %v324_v27  ;;  %v298_v31 = vld [vmem:[#allocation7] sm:$0xff]  ;;  %v307_v33 = vld [vmem:[#allocation9 + $0x8] sm:$0xff]  ;;  %v301_v38 = vld [vmem:[#allocation7 + $0x18] sm:$0xff] }
  0x60   :  { %1397 = vmatpush3.msra.mxu0 %v97_v4  ;;  %v306_v36 = vld [vmem:[#allocation9] sm:$0xff]  ;;  %v300_v40 = vld [vmem:[#allocation7 + $0x10] sm:$0xff]  ;;  %v309_v43 = vld [vmem:[#allocation9 + $0x18] sm:$0xff] }
  0x61   :  { %1399 = vmatmul.mubr.msk.f32.vlgmr.msra.gmra.mrb[0].mxu0 %vm98_vm0, %v92_v5  ;;  %1575 = vmatprep.subr.bf16.mxu0 %v1574_v20  ;;  %v308_v46 = vld [vmem:[#allocation9 + $0x10] sm:$0xff]  ;;  %v425_v54 = vld [vmem:[#allocation6 + $0x20] sm:$0xff]  ;;  %v426_v61 = vld [vmem:[#allocation6 + $0x28] sm:$0xff] }
  0x62   :  { %1401 = vmatprep.mubr.msk.f32.mxu0 %vm98_vm0, %v93_v6  ;;  %1577 = vmatpush3.bf16.msra.mxu0 %v1574_v20  ;;  %v427_v62 = vld [vmem:[#allocation6 + $0x30] sm:$0xff]  ;;  %v428_v63 = vld [vmem:[#allocation6 + $0x38] sm:$0xff]  ;;  %v549_v0 = vld [vmem:[#allocation4 + $0x40] sm:$0xff] }
  0x63   :  { %1579 = vmatprep.subr.bf16.mxu0 %v1578_v23  ;;  %v550_v1 = vld [vmem:[#allocation4 + $0x48] sm:$0xff]  ;;  %v551_v3 = vld [vmem:[#allocation4 + $0x50] sm:$0xff]  ;;  %v552_v4 = vld [vmem:[#allocation4 + $0x58] sm:$0xff] }
  0x64   :  { %v1598_v2 = vpack.c.bf16 %v550_v1, %v549_v0  ;;  %v1602_v5 = vpack.c.bf16 %v552_v4, %v551_v3  ;;  %v553_v6 = vld [vmem:[#allocation4 + $0x60] sm:$0xff]  ;;  %v530_v20 = vld [vmem:[#allocation7 + $0x38] sm:$0xff]  ;;  %v529_v22 = vld [vmem:[#allocation7 + $0x30] sm:$0xff] }
  0x65   :  { %1402 = vmatmul.mubr.msk.f32.gmra.mrb[2].mxu0 %vm98_vm0, %v94_v7  ;;  %v554_v7 = vld [vmem:[#allocation4 + $0x68] sm:$0xff]  ;;  %v536_v18 = vld [vmem:[#allocation9 + $0x20] sm:$0xff]  ;;  %v539_v25 = vld [vmem:[#allocation9 + $0x38] sm:$0xff] }
  0x66   :  { %1581 = vmatpush3.bf16.msra.mxu0 %v1578_v23  ;;  %v1606_v8 = vpack.c.bf16 %v554_v7, %v553_v6  ;;  %v538_v28 = vld [vmem:[#allocation9 + $0x30] sm:$0xff]  ;;  %v767_v1 = vld [vmem:[#allocation9 + $0x48] sm:$0xff]  ;;  %v766_v4 = vld [vmem:[#allocation9 + $0x40] sm:$0xff] }
  0x67   :  { %1583 = vmatprep.subr.bf16.mxu0 %v1582_v26  ;;  %v760_v6 = vld [vmem:[#allocation7 + $0x58] sm:$0xff] }
  0x6a   :  { %1585 = vmatpush3.bf16.msra.mxu0 %v1582_v26 }
  0x6b   :  { %1587 = vmatprep.subr.bf16.mxu0 %v1586_v29 }
  0x6e   :  { %1589 = vmatpush3.bf16.msra.mxu0 %v1586_v29 }
 0x134   :  { %v1400_v9 = vpop.f32.mrb[0].mxu0 }
 0x135   :  { %v177_v10 = vpop.f32.mrb[1].mxu0 }
 0x136   :  { %v1566_v11 = vpack.c.bf16 %v1400_v9, %v177_v10  ;;  %v555_v9 = vld [vmem:[#allocation4 + $0x70] sm:$0xff]  ;;  %v556_v10 = vld [vmem:[#allocation4 + $0x78] sm:$0xff] }
 0x138   :  { %v1403_v12 = vpop.f32.mrb[2].mxu0  ;;  %1567 = vmatprep.subr.bf16.mxu1 %v1566_v11 }
 0x139   :  { %v187_v13 = vpop.f32.mrb[3].mxu0  ;;  %1569 = vmatpush3.bf16.msra.mxu1 %v1566_v11  ;;  %v1610_v11 = vpack.c.bf16 %v556_v10, %v555_v9 }
 0x13a   :  { %v1570_v14 = vpack.c.bf16 %v1403_v12, %v187_v13  ;;  %v528_v12 = vld [vmem:[#allocation7 + $0x28] sm:$0xff]  ;;  %v527_v13 = vld [vmem:[#allocation7 + $0x20] sm:$0xff] }
 0x13c   :  { %1571 = vmatprep.subr.bf16.mxu1 %v1570_v14 }
 0x13d   :  { %1573 = vmatpush3.bf16.msra.mxu1 %v1570_v14 }
 0x140   :  { %1413 = vmatmul.mubr.msk.f32.vlgmr.msra.gmra.mrb[0].mxu1 %vm200_vm1, %v197_v15  ;;  %v537_v15 = vld [vmem:[#allocation9 + $0x28] sm:$0xff] }
 0x141   :  { %1415 = vmatprep.mubr.msk.f32.mxu1 %vm200_vm1, %v198_v16 }
 0x144   :  { %1416 = vmatmul.mubr.msk.f32.gmra.mrb[2].mxu1 %vm200_vm1, %v199_v17 }
 0x145   :  { %1448 = vmatprep.mubr.msk.f32.mxu1 %vm200_vm1, %v425_v54  ;;  %v786_v54 = vld [vmem:[#allocation4 + $0x98] sm:$0xff] }
 0x213   :  { %v1414_v32 = vpop.f32.mrb[0].mxu1 }
 0x214   :  { %v303_v34 = vmul.f32 %v1414_v32, %v299_v30  ;;  %v279_v35 = vpop.f32.mrb[1].mxu1 }
 0x215   :  { %v302_v37 = vmul.f32 %v298_v31, %v279_v35 }
 0x216   :  { %v311_v39 = vadd.f32 %v307_v33, %v303_v34 }
 0x217   :  { %v310_v41 = vadd.f32 %v306_v36, %v302_v37  ;;  %v1417_v42 = vpop.f32.mrb[2].mxu1  ;;  %v655_v36 = vld [vmem:[#allocation6 + $0x40] sm:$0xff] }
 0x218   :  { %v305_v44 = vmul.f32 %v1417_v42, %v301_v38  ;;  %v289_v45 = vpop.f32.mrb[3].mxu1 }
 0x219   :  { %1677 = vtanh.f32 %v310_v41  ;;  %v304_v47 = vmul.f32 %v300_v40, %v289_v45  ;;  %v658_v45 = vld [vmem:[#allocation6 + $0x58] sm:$0xff] }
 0x21a   :  { %1679 = vtanh.f32 %v311_v39  ;;  %v313_v48 = vadd.f32 %v309_v43, %v305_v44  ;;  %v656_v43 = vld [vmem:[#allocation6 + $0x48] sm:$0xff]  ;;  %v657_v44 = vld [vmem:[#allocation6 + $0x50] sm:$0xff] }
 0x21b   :  { %v312_v49 = vadd.f32 %v308_v46, %v304_v47  ;;  %v783_v46 = vld [vmem:[#allocation4 + $0x80] sm:$0xff]  ;;  %v784_v47 = vld [vmem:[#allocation4 + $0x88] sm:$0xff] }
 0x21d   :  { %1681 = vtanh.f32 %v312_v49  ;;  %v785_v49 = vld [vmem:[#allocation4 + $0x90] sm:$0xff] }
 0x21e   :  { %1683 = vtanh.f32 %v313_v48  ;;  %v1622_v48 = vpack.c.bf16 %v784_v47, %v783_v46  ;;  %v1001_v47 = vld [vmem:[#allocation9 + $0x68] sm:$0xff] }
 0x223   :  { %v1984_v50 = vpop.eup %1677 }
 0x224   :  { %v1986_v51 = vpop.eup %1679  ;;  %1434 = vmatprep.mubr.msk.f32.mxu0 %vm326_vm2, %v1984_v50 }
 0x225   :  { %1435 = vmatmul.mubr.msk.f32.vlgmr.msra.gmra.mrb[4].mxu0 %vm326_vm2, %v1986_v51 }
 0x227   :  { %v1992_v52 = vpop.eup %1681 }
 0x228   :  { %v1994_v53 = vpop.eup %1683  ;;  %1437 = vmatprep.mubr.msk.f32.mxu0 %vm326_vm2, %v1992_v52 }
 0x229   :  { %1438 = vmatmul.mubr.msk.f32.gmra.mrb[6].mxu0 %vm326_vm2, %v1994_v53 }
 0x22a   :  { %1484 = vmatprep.mubr.msk.f32.mxu0 %vm200_vm1, %v655_v36  ;;  %v1016_v36 = vld [vmem:[#allocation4 + $0xd8] sm:$0xff] }
 0x2f8   :  { %v1436_v55 = vpop.f32.mrb[4].mxu0 }
 0x2f9   :  { %v405_v56 = vpop.f32.mrb[5].mxu0 }
 0x2fa   :  { %v1590_v57 = vpack.c.bf16 %v1436_v55, %v405_v56  ;;  %v1626_v55 = vpack.c.bf16 %v786_v54, %v785_v49  ;;  %v787_v56 = vld [vmem:[#allocation4 + $0xa0] sm:$0xff] }
 0x2fb   :  { %v1000_v54 = vld [vmem:[#allocation9 + $0x60] sm:$0xff] }
 0x2fc   :  { %v1439_v58 = vpop.f32.mrb[6].mxu0  ;;  %1591 = vmatprep.subr.bf16.mxu1 %v1590_v57 }
 0x2fd   :  { %v415_v59 = vpop.f32.mrb[7].mxu0  ;;  %1593 = vmatpush3.bf16.msra.mxu1 %v1590_v57  ;;  %v788_v57 = vld [vmem:[#allocation4 + $0xa8] sm:$0xff] }
 0x2fe   :  { %v1594_v60 = vpack.c.bf16 %v1439_v58, %v415_v59  ;;  %v1630_v58 = vpack.c.bf16 %v788_v57, %v787_v56  ;;  %v789_v59 = vld [vmem:[#allocation4 + $0xb0] sm:$0xff]  ;;  %v994_v56 = vld [vmem:[#allocation7 + $0x78] sm:$0xff] }
 0x300   :  { %1595 = vmatprep.subr.bf16.mxu1 %v1594_v60 }
 0x301   :  { %1597 = vmatpush3.bf16.msra.mxu1 %v1594_v60  ;;  %v790_v60 = vld [vmem:[#allocation4 + $0xb8] sm:$0xff] }
 0x302   :  { %1599 = vmatprep.subr.bf16.mxu1 %v1598_v2 }
 0x304   :  { %1449 = vmatmul.mubr.msk.f32.vlgmr.msra.gmra.mrb[4].mxu1 %vm200_vm1, %v426_v61  ;;  %v1634_v61 = vpack.c.bf16 %v790_v60, %v789_v59 }
 0x305   :  { %1451 = vmatprep.mubr.msk.f32.mxu1 %vm200_vm1, %v427_v62  ;;  %1601 = vmatpush3.bf16.msra.mxu1 %v1598_v2  ;;  %v758_v62 = vld [vmem:[#allocation7 + $0x48] sm:$0xff] }
 0x306   :  { %1603 = vmatprep.subr.bf16.mxu1 %v1602_v5 }
 0x308   :  { %1452 = vmatmul.mubr.msk.f32.gmra.mrb[6].mxu1 %vm200_vm1, %v428_v63  ;;  %v757_v63 = vld [vmem:[#allocation7 + $0x40] sm:$0xff] }
 0x309   :  { %1605 = vmatpush3.bf16.msra.mxu1 %v1602_v5 }
 0x30a   :  { %1607 = vmatprep.subr.bf16.mxu1 %v1606_v8 }
 0x30d   :  { %1609 = vmatpush3.bf16.msra.mxu1 %v1606_v8  ;;  %v759_v8 = vld [vmem:[#allocation7 + $0x50] sm:$0xff] }
 0x30e   :  { %1611 = vmatprep.subr.bf16.mxu1 %v1610_v11 }
 0x311   :  { %1613 = vmatpush3.bf16.msra.mxu1 %v1610_v11  ;;  %v769_v11 = vld [vmem:[#allocation9 + $0x58] sm:$0xff] }
 0x3d7   :  { %v1450_v14 = vpop.f32.mrb[4].mxu1 }
 0x3d8   :  { %v532_v16 = vmul.f32 %v1450_v14, %v528_v12  ;;  %v507_v17 = vpop.f32.mrb[5].mxu1  ;;  %v768_v14 = vld [vmem:[#allocation9 + $0x50] sm:$0xff] }
 0x3d9   :  { %v531_v19 = vmul.f32 %v527_v13, %v507_v17 }
 0x3da   :  { %v541_v21 = vadd.f32 %v537_v15, %v532_v16 }
 0x3db   :  { %v540_v23 = vadd.f32 %v536_v18, %v531_v19  ;;  %v1453_v24 = vpop.f32.mrb[6].mxu1 }
 0x3dc   :  { %v534_v26 = vmul.f32 %v1453_v24, %v530_v20  ;;  %v517_v27 = vpop.f32.mrb[7].mxu1 }
 0x3dd   :  { %1685 = vtanh.f32 %v540_v23  ;;  %v533_v29 = vmul.f32 %v529_v22, %v517_v27 }
 0x3de   :  { %1687 = vtanh.f32 %v541_v21  ;;  %v543_v30 = vadd.f32 %v539_v25, %v534_v26 }
 0x3df   :  { %v542_v31 = vadd.f32 %v538_v28, %v533_v29 }
 0x3e1   :  { %1689 = vtanh.f32 %v542_v31  ;;  %v892_v31 = vld [vmem:[#allocation6 + $0x78] sm:$0xff] }
 0x3e2   :  { %1691 = vtanh.f32 %v543_v30  ;;  %v891_v30 = vld [vmem:[#allocation6 + $0x70] sm:$0xff] }
 0x3e7   :  { %v1686_v32 = vpop.eup %1685 }
 0x3e8   :  { %v1688_v33 = vpop.eup %1687  ;;  %1470 = vmatprep.mubr.msk.f32.mxu1 %vm326_vm2, %v1686_v32  ;;  %v1013_v32 = vld [vmem:[#allocation4 + $0xc0] sm:$0xff] }
 0x3e9   :  { %1471 = vmatmul.mubr.msk.f32.vlgmr.msra.gmra.mrb[8].mxu1 %vm326_vm2, %v1688_v33  ;;  %v1014_v33 = vld [vmem:[#allocation4 + $0xc8] sm:$0xff] }
 0x3eb   :  { %v1690_v34 = vpop.eup %1689 }
 0x3ec   :  { %v1692_v35 = vpop.eup %1691  ;;  %1473 = vmatprep.mubr.msk.f32.mxu1 %vm326_vm2, %v1690_v34  ;;  %v1646_v34 = vpack.c.bf16 %v1014_v33, %v1013_v32 }
 0x3ed   :  { %1474 = vmatmul.mubr.msk.f32.gmra.mrb[10].mxu1 %vm326_vm2, %v1692_v35  ;;  %v1015_v35 = vld [vmem:[#allocation4 + $0xd0] sm:$0xff] }
 0x4bc   :  { %v1472_v37 = vpop.f32.mrb[8].mxu1 }
 0x4bd   :  { %v635_v38 = vpop.f32.mrb[9].mxu1 }
 0x4be   :  { %v1614_v39 = vpack.c.bf16 %v1472_v37, %v635_v38  ;;  %v1650_v37 = vpack.c.bf16 %v1016_v36, %v1015_v35  ;;  %v1017_v38 = vld [vmem:[#allocation4 + $0xe0] sm:$0xff] }
 0x4c0   :  { %v1475_v40 = vpop.f32.mrb[10].mxu1  ;;  %1615 = vmatprep.subr.bf16.mxu0 %v1614_v39 }
 0x4c1   :  { %v645_v41 = vpop.f32.mrb[11].mxu1  ;;  %1617 = vmatpush3.bf16.msra.mxu0 %v1614_v39  ;;  %v1018_v39 = vld [vmem:[#allocation4 + $0xe8] sm:$0xff] }
 0x4c2   :  { %v1618_v42 = vpack.c.bf16 %v1475_v40, %v645_v41  ;;  %v1654_v40 = vpack.c.bf16 %v1018_v39, %v1017_v38  ;;  %v1019_v41 = vld [vmem:[#allocation4 + $0xf0] sm:$0xff] }
 0x4c4   :  { %1619 = vmatprep.subr.bf16.mxu0 %v1618_v42 }
 0x4c5   :  { %1621 = vmatpush3.bf16.msra.mxu0 %v1618_v42  ;;  %v1020_v42 = vld [vmem:[#allocation4 + $0xf8] sm:$0xff] }
 0x4c6   :  { %1623 = vmatprep.subr.bf16.mxu0 %v1622_v48 }
 0x4c8   :  { %1485 = vmatmul.mubr.msk.f32.vlgmr.msra.gmra.mrb[8].mxu0 %vm200_vm1, %v656_v43  ;;  %v1658_v43 = vpack.c.bf16 %v1020_v42, %v1019_v41 }
 0x4c9   :  { %1487 = vmatprep.mubr.msk.f32.mxu0 %vm200_vm1, %v657_v44  ;;  %1625 = vmatpush3.bf16.msra.mxu0 %v1622_v48  ;;  %v992_v44 = vld [vmem:[#allocation7 + $0x68] sm:$0xff] }
 0x4ca   :  { %1627 = vmatprep.subr.bf16.mxu0 %v1626_v55 }
 0x4cc   :  { %1488 = vmatmul.mubr.msk.f32.gmra.mrb[10].mxu0 %vm200_vm1, %v658_v45  ;;  %v991_v45 = vld [vmem:[#allocation7 + $0x60] sm:$0xff] }
 0x4cd   :  { %1629 = vmatpush3.bf16.msra.mxu0 %v1626_v55 }
 0x4ce   :  { %1631 = vmatprep.subr.bf16.mxu0 %v1630_v58 }
 0x4d1   :  { %1633 = vmatpush3.bf16.msra.mxu0 %v1630_v58  ;;  %v993_v58 = vld [vmem:[#allocation7 + $0x70] sm:$0xff] }
 0x4d2   :  { %1635 = vmatprep.subr.bf16.mxu0 %v1634_v61 }
 0x4d5   :  { %1637 = vmatpush3.bf16.msra.mxu0 %v1634_v61  ;;  %v1003_v61 = vld [vmem:[#allocation9 + $0x78] sm:$0xff] }
 0x59b   :  { %v1486_v0 = vpop.f32.mrb[8].mxu0 }
 0x59c   :  { %v762_v2 = vmul.f32 %v1486_v0, %v758_v62  ;;  %v737_v3 = vpop.f32.mrb[9].mxu0  ;;  %v1002_v0 = vld [vmem:[#allocation9 + $0x70] sm:$0xff] }
 0x59d   :  { %v761_v5 = vmul.f32 %v757_v63, %v737_v3 }
 0x59e   :  { %v771_v7 = vadd.f32 %v767_v1, %v762_v2 }
 0x59f   :  { %v770_v9 = vadd.f32 %v766_v4, %v761_v5  ;;  %v1489_v10 = vpop.f32.mrb[10].mxu0 }
 0x5a0   :  { %1693 = vtanh.f32 %v771_v7  ;;  %v764_v12 = vmul.f32 %v1489_v10, %v760_v6  ;;  %v747_v13 = vpop.f32.mrb[11].mxu0 }
 0x5a1   :  { %1695 = vtanh.f32 %v770_v9  ;;  %v763_v15 = vmul.f32 %v759_v8, %v747_v13  ;;  %v1119_v8 = vld [vmem:[#allocation6 + $0x80] sm:$0xff] }
 0x5a2   :  { %v773_v16 = vadd.f32 %v769_v11, %v764_v12 }
 0x5a3   :  { %v772_v17 = vadd.f32 %v768_v14, %v763_v15  ;;  %v1120_v15 = vld [vmem:[#allocation6 + $0x88] sm:$0xff] }
 0x5a4   :  { %1697 = vtanh.f32 %v773_v16  ;;  %v1121_v16 = vld [vmem:[#allocation6 + $0x90] sm:$0xff] }
 0x5a5   :  { %1699 = vtanh.f32 %v772_v17  ;;  %v1122_v17 = vld [vmem:[#allocation6 + $0x98] sm:$0xff] }
 0x5aa   :  { %v1694_v18 = vpop.eup %1693 }
 0x5ab   :  { %v1696_v19 = vpop.eup %1695  ;;  %v2016_v21 = vadd.f32 %v1694_v18, %v1986_v51  ;;  %v1222_v18 = vld [vmem:[#allocation7 + $0x88] sm:$0xff] }
 0x5ac   :  { %v2013_v20 = vadd.f32 %v1696_v19, %v1984_v50  ;;  %v889_v50 = vld [vmem:[#allocation6 + $0x60] sm:$0xff] }
 0x5ad   :  { %1520 = vmatprep.mubr.msk.f32.mxu1 %vm200_vm1, %v889_v50  ;;  %v1221_v19 = vld [vmem:[#allocation7 + $0x80] sm:$0xff] }
 0x5ae   :  { %v1698_v22 = vpop.eup %1697  ;;  %1506 = vmatprep.mubr.msk.f32.mxu0 %vm326_vm2, %v2013_v20 }
 0x5af   :  { %v1700_v23 = vpop.eup %1699  ;;  %1507 = vmatmul.mubr.msk.f32.vlgmr.msra.gmra.mrb[12].mxu0 %vm326_vm2, %v2016_v21  ;;  %v2026_v25 = vadd.f32 %v1698_v22, %v1994_v53  ;;  %v890_v53 = vld [vmem:[#allocation6 + $0x68] sm:$0xff] }
 0x5b0   :  { %v2023_v24 = vadd.f32 %v1700_v23, %v1992_v52  ;;  %v1231_v23 = vld [vmem:[#allocation9 + $0x88] sm:$0xff] }
 0x5b2   :  { %1509 = vmatprep.mubr.msk.f32.mxu0 %vm326_vm2, %v2023_v24 }
 0x5b3   :  { %1510 = vmatmul.mubr.msk.f32.gmra.mrb[14].mxu0 %vm326_vm2, %v2026_v25 }
 0x5b4   :  { %1556 = vmatprep.mubr.msk.f32.mxu0 %vm200_vm1, %v1119_v8 }
 0x682   :  { %v1508_v51 = vpop.f32.mrb[12].mxu0 }
 0x683   :  { %v869_v26 = vpop.f32.mrb[13].mxu0 }
 0x684   :  { %v1638_v27 = vpack.c.bf16 %v1508_v51, %v869_v26  ;;  %v1230_v26 = vld [vmem:[#allocation9 + $0x80] sm:$0xff] }
 0x686   :  { %v1511_v28 = vpop.f32.mrb[14].mxu0  ;;  %1639 = vmatprep.subr.bf16.mxu1 %v1638_v27 }
 0x687   :  { %v879_v29 = vpop.f32.mrb[15].mxu0  ;;  %1641 = vmatpush3.bf16.msra.mxu1 %v1638_v27 }
 0x688   :  { %v1642_v52 = vpack.c.bf16 %v1511_v28, %v879_v29  ;;  %v1224_v28 = vld [vmem:[#allocation7 + $0x98] sm:$0xff] }
 0x68a   :  { %1643 = vmatprep.subr.bf16.mxu1 %v1642_v52 }
 0x68b   :  { %1645 = vmatpush3.bf16.msra.mxu1 %v1642_v52  ;;  %v1223_v52 = vld [vmem:[#allocation7 + $0x90] sm:$0xff] }
 0x68c   :  { %1647 = vmatprep.subr.bf16.mxu1 %v1646_v34 }
 0x68e   :  { %1521 = vmatmul.mubr.msk.f32.vlgmr.msra.gmra.mrb[12].mxu1 %vm200_vm1, %v890_v53 }
 0x68f   :  { %1523 = vmatprep.mubr.msk.f32.mxu1 %vm200_vm1, %v891_v30  ;;  %1649 = vmatpush3.bf16.msra.mxu1 %v1646_v34  ;;  %v1232_v34 = vld [vmem:[#allocation9 + $0x90] sm:$0xff] }
 0x690   :  { %1651 = vmatprep.subr.bf16.mxu1 %v1650_v37 }
 0x692   :  { %1524 = vmatmul.mubr.msk.f32.gmra.mrb[14].mxu1 %vm200_vm1, %v892_v31  ;;  %v1233_v31 = vld [vmem:[#allocation9 + $0x98] sm:$0xff] }
 0x693   :  { %1653 = vmatpush3.bf16.msra.mxu1 %v1650_v37 }
 0x694   :  { %1655 = vmatprep.subr.bf16.mxu1 %v1654_v40 }
 0x697   :  { %1657 = vmatpush3.bf16.msra.mxu1 %v1654_v40 }
 0x698   :  { %1659 = vmatprep.subr.bf16.mxu1 %v1658_v43 }
 0x69b   :  { %1661 = vmatpush3.bf16.msra.mxu1 %v1658_v43 }
 0x761   :  { %v1522_v46 = vpop.f32.mrb[12].mxu1 }
 0x762   :  { %v996_v48 = vmul.f32 %v1522_v46, %v992_v44  ;;  %v971_v49 = vpop.f32.mrb[13].mxu1 }
 0x763   :  { %v995_v55 = vmul.f32 %v991_v45, %v971_v49 }
 0x764   :  { %v1005_v57 = vadd.f32 %v1001_v47, %v996_v48 }
 0x765   :  { %v1004_v59 = vadd.f32 %v1000_v54, %v995_v55  ;;  %v1525_v60 = vpop.f32.mrb[14].mxu1 }
 0x766   :  { %v998_v62 = vmul.f32 %v1525_v60, %v994_v56  ;;  %v981_v63 = vpop.f32.mrb[15].mxu1 }
 0x767   :  { %1701 = vtanh.f32 %v1004_v59  ;;  %v997_v1 = vmul.f32 %v993_v58, %v981_v63 }
 0x768   :  { %1703 = vtanh.f32 %v1005_v57  ;;  %v1007_v2 = vadd.f32 %v1003_v61, %v998_v62 }
 0x769   :  { %v1006_v3 = vadd.f32 %v1002_v0, %v997_v1 }
 0x76b   :  { %1705 = vtanh.f32 %v1006_v3 }
 0x76c   :  { %1707 = vtanh.f32 %v1007_v2 }
 0x771   :  { %v1702_v4 = vpop.eup %1701 }
 0x772   :  { %v1704_v5 = vpop.eup %1703  ;;  %1542 = vmatprep.mubr.msk.f32.mxu1 %vm326_vm2, %v1702_v4 }
 0x773   :  { %1543 = vmatmul.mubr.msk.f32.vlgmr.msra.gmra.mrb[16].mxu1 %vm326_vm2, %v1704_v5 }
 0x775   :  { %v1706_v6 = vpop.eup %1705 }
 0x776   :  { %v1708_v7 = vpop.eup %1707  ;;  %1545 = vmatprep.mubr.msk.f32.mxu1 %vm326_vm2, %v1706_v6 }
 0x777   :  { %1546 = vmatmul.mubr.msk.f32.gmra.mrb[18].mxu1 %vm326_vm2, %v1708_v7 }
 0x846   :  { %v1544_v9 = vpop.f32.mrb[16].mxu1 }
 0x847   :  { %v1099_v10 = vpop.f32.mrb[17].mxu1 }
 0x848   :  { %v1662_v11 = vpack.c.bf16 %v1544_v9, %v1099_v10 }
 0x84a   :  { %v1547_v12 = vpop.f32.mrb[18].mxu1  ;;  %1663 = vmatprep.subr.bf16.mxu0 %v1662_v11 }
 0x84b   :  { %v1109_v13 = vpop.f32.mrb[19].mxu1  ;;  %1665 = vmatpush3.bf16.msra.mxu0 %v1662_v11 }
 0x84c   :  { %v1666_v14 = vpack.c.bf16 %v1547_v12, %v1109_v13 }
 0x84e   :  { %1667 = vmatprep.subr.bf16.mxu0 %v1666_v14 }
 0x84f   :  { %1669 = vmatpush3.bf16.msra.mxu0 %v1666_v14 }
 0x852   :  { %1557 = vmatmul.mubr.msk.f32.vlgmr.msra.gmra.mrb[16].mxu0 %vm200_vm1, %v1120_v15 }
 0x853   :  { %1559 = vmatprep.mubr.msk.f32.mxu0 %vm200_vm1, %v1121_v16 }
 0x856   :  { %1560 = vmatmul.mubr.msk.f32.gmra.mrb[18].mxu0 %vm200_vm1, %v1122_v17 }
 0x925   :  { %v1558_v22 = vpop.f32.mrb[16].mxu0 }
 0x926   :  { %v1226_v50 = vmul.f32 %v1558_v22, %v1222_v18  ;;  %v1201_v51 = vpop.f32.mrb[17].mxu0 }
 0x927   :  { %v1225_v27 = vmul.f32 %v1221_v19, %v1201_v51 }
 0x928   :  { %v1235_v29 = vadd.f32 %v1231_v23, %v1226_v50 }
 0x929   :  { %v1234_v53 = vadd.f32 %v1230_v26, %v1225_v27  ;;  %v1561_v30 = vpop.f32.mrb[18].mxu0 }
 0x92a   :  { %1709 = vtanh.f32 %v1235_v29  ;;  %v1228_v32 = vmul.f32 %v1561_v30, %v1224_v28  ;;  %v1211_v33 = vpop.f32.mrb[19].mxu0 }
 0x92b   :  { %1711 = vtanh.f32 %v1234_v53  ;;  %v1227_v35 = vmul.f32 %v1223_v52, %v1211_v33 }
 0x92c   :  { %v1237_v36 = vadd.f32 %v1233_v31, %v1228_v32 }
 0x92d   :  { %v1236_v37 = vadd.f32 %v1232_v34, %v1227_v35 }
 0x92e   :  { %1713 = vtanh.f32 %v1237_v36 }
 0x92f   :  { %1715 = vtanh.f32 %v1236_v37 }
 0x934   :  { %v1710_v38 = vpop.eup %1709 }
 0x935   :  { %v1712_v39 = vpop.eup %1711  ;;  %v1243_v40 = vadd.f32 %v1710_v38, %v2016_v21 }
 0x936   :  { %v1242_v41 = vadd.f32 %v1712_v39, %v2013_v20 }
 0x937   :  { %1247 = vst.msk [vmem:[%s2070_s6 + $0x8] sm:$0xff] %vm326_vm2, %v1243_v40 }
 0x938   :  { %v1714_v42 = vpop.eup %1713  ;;  %1246 = vst.msk [vmem:[%s2070_s6] sm:$0xff] %vm326_vm2, %v1242_v41 }
 0x939   :  { %v1716_v43 = vpop.eup %1715  ;;  %v1245_v44 = vadd.f32 %v1714_v42, %v2026_v25 }
 0x93a   :  { %v1244_v45 = vadd.f32 %v1716_v43, %v2023_v24 }
 0x93b   :  { %1249 = vst.msk [vmem:[%s2070_s6 + $0x18] sm:$0xff] %vm326_vm2, %v1245_v44 }
 0x93c   :  { %1248 = vst.msk [vmem:[%s2070_s6 + $0x10] sm:$0xff] %vm326_vm2, %v1244_v45 }
 0x93d   :  { %1254 = vsyncpa [#allocation3], 1 }
 0x93e   :  { %1255 = vsyncpa [#allocation5], 1 }
 0x93f   :  { %1256 = vsyncpa [#allocation8], 1 }

// kernel: forward.4
= control target key start
LH: loop header
LB: loop body
LE: loop exit
PB: predicated region body
PF: predicated region fallthrough
CT: control target
= control target key end

     0   :  { %v1832_v26 = vmov 1983009808   ;;  %v308_v28 = vlaneseq  ;;  %vm755_vm0 = vcmask 64512   ;;  %vm665_vm1 = vcmask 1041408   ;;  %s3030_s4 = inlined_call_operand.vmem [shape: f32[1024,256], index: 4, kind: input, shape index: {}]   ;;  %s3031_s1 = inlined_call_operand.vmem [shape: f32[8,8], index: 1, kind: input, shape index: {}]   ;;  %s3032_s0 = inlined_call_operand.vmem [shape: f32[2,1024], index: 0, kind: input, shape index: {}]   ;;  %s3033_s5 = inlined_call_operand.vmem [shape: f32[1,256], index: 5, kind: input, shape index: {}]   ;;  %s3034_s6 = inlined_call_operand.vmem [shape: f32[1,256], index: 6, kind: input, shape index: {}]   ;;  %s3035_s8 = inlined_call_operand.vmem [shape: f32[2,256,64], index: 8, kind: input, shape index: {}]   ;;  %s3036_s3 = inlined_call_operand.vmem [shape: f32[8,2], index: 3, kind: input, shape index: {}]   ;;  %s3037_s7 = inlined_call_operand.vmem [shape: f32[8,256], index: 7, kind: input, shape index: {}]   ;;  %s3038_s11 = inlined_call_operand.vmem [shape: f32[2,64,32], index: 11, kind: input, shape index: {}]   ;;  %s3039_s9 = inlined_call_operand.vmem [shape: f32[2,1,64], index: 9, kind: input, shape index: {}]   ;;  %s3040_s10 = inlined_call_operand.vmem [shape: f32[2,1,64], index: 10, kind: input, shape index: {}]   ;;  %s3041_s12 = inlined_call_operand.vmem [shape: f32[2,1,32], index: 12, kind: input, shape index: {}]   ;;  %s3042_s2 = inlined_call_operand.vmem [shape: f32[8,32], index: 2, kind: input, shape index: {}]   ;;  %s3043_s13 = inlined_call_operand.vmem [shape: f32[8,32], index: 13, kind: output, shape index: {}]  }
   0x1   :  { %v111_v0 = vld [vmem:[%s3030_s4 + $0x208] sm:$0xff]  ;;  %v113_v1 = vld [vmem:[%s3030_s4 + $0x218] sm:$0xff]  ;;  %v110_v2 = vld [vmem:[%s3030_s4 + $0x200] sm:$0xff]  ;;  %v306_v27 = vunpack.c.l.s4 %v1832_v26  ;;  %vm661_vm2 = vcmask 15360   ;;  %vm1835_vm3 = vmmov 0   ;;  %vm979_vm4 = vcmask 523264  }
   0x2   :  { %v1522_v3 = vpack.c.bf16 %v113_v1, %v111_v0  ;;  %v112_v4 = vld [vmem:[%s3030_s4 + $0x210] sm:$0xff]  ;;  %v115_v5 = vld [vmem:[%s3030_s4 + $0x228] sm:$0xff]  ;;  %v117_v6 = vld [vmem:[%s3030_s4 + $0x238] sm:$0xff]  ;;  %v1975_v38 = vshrl.u32 %v308_v28, 7  ;;  %vm1271_vm5 = vcmask 261120  }
   0x3   :  { %v1524_v7 = vpack.c.bf16 %v112_v4, %v110_v2  ;;  %v1526_v8 = vpack.c.bf16 %v117_v6, %v115_v5  ;;  %v114_v9 = vld [vmem:[%s3030_s4 + $0x220] sm:$0xff]  ;;  %v116_v10 = vld [vmem:[%s3030_s4 + $0x230] sm:$0xff]  ;;  %v119_v11 = vld [vmem:[%s3030_s4 + $0x248] sm:$0xff]  ;;  %v307_v37 = vunpack.c.0.s8 %v306_v27 }
   0x4   :  { %1523 = vmatprep.subr.bf16.mxu0 %v1522_v3  ;;  %v121_v12 = vld [vmem:[%s3030_s4 + $0x258] sm:$0xff]  ;;  %v1528_v13 = vpack.c.bf16 %v116_v10, %v114_v9  ;;  %v118_v15 = vld [vmem:[%s3030_s4 + $0x240] sm:$0xff]  ;;  %v120_v16 = vld [vmem:[%s3030_s4 + $0x250] sm:$0xff] }
   0x5   :  { %1525 = vmatpush1.bf16.msra.mxu0 %v1524_v7  ;;  %v1530_v14 = vpack.c.bf16 %v121_v12, %v119_v11  ;;  %v123_v17 = vld [vmem:[%s3030_s4 + $0x268] sm:$0xff]  ;;  %v125_v18 = vld [vmem:[%s3030_s4 + $0x278] sm:$0xff]  ;;  %v1532_v19 = vpack.c.bf16 %v120_v16, %v118_v15  ;;  %v122_v21 = vld [vmem:[%s3030_s4 + $0x260] sm:$0xff]  ;;  %v1990_v45 = vsub.s32 %v307_v37, %v1975_v38 }
   0x6   :  { %1527 = vmatprep.subr.bf16.mxu0 %v1526_v8  ;;  %v1534_v20 = vpack.c.bf16 %v125_v18, %v123_v17  ;;  %v124_v22 = vld [vmem:[%s3030_s4 + $0x270] sm:$0xff]  ;;  %v127_v23 = vld [vmem:[%s3030_s4 + $0x288] sm:$0xff]  ;;  %v129_v24 = vld [vmem:[%s3030_s4 + $0x298] sm:$0xff] }
   0x7   :  { %v1536_v25 = vpack.c.bf16 %v124_v22, %v122_v21  ;;  %v1538_v29 = vpack.c.bf16 %v129_v24, %v127_v23  ;;  %v126_v30 = vld [vmem:[%s3030_s4 + $0x280] sm:$0xff]  ;;  %v128_v31 = vld [vmem:[%s3030_s4 + $0x290] sm:$0xff]  ;;  %v131_v33 = vld [vmem:[%s3030_s4 + $0x2a8] sm:$0xff] }
   0x8   :  { %v743_v32 = vld [vmem:[%s3031_s1] sm:$0xff]  ;;  %v133_v34 = vld [vmem:[%s3030_s4 + $0x2b8] sm:$0xff]  ;;  %v1540_v36 = vpack.c.bf16 %v128_v31, %v126_v30  ;;  %v132_v41 = vld [vmem:[%s3030_s4 + $0x2b0] sm:$0xff] }
   0x9   :  { %1529 = vmatpush1.bf16.msra.mxu0 %v1528_v13  ;;  %v744_v35 = vadd.f32 1e-20, %v743_v32  ;;  %v1542_v39 = vpack.c.bf16 %v133_v34, %v131_v33  ;;  %v130_v40 = vld [vmem:[%s3030_s4 + $0x2a0] sm:$0xff]  ;;  %v135_v42 = vld [vmem:[%s3030_s4 + $0x2c8] sm:$0xff]  ;;  %v137_v43 = vld [vmem:[%s3030_s4 + $0x2d8] sm:$0xff] }
   0xa   :  { %1531 = vmatprep.subr.bf16.mxu0 %v1530_v14  ;;  %v1544_v44 = vpack.c.bf16 %v132_v41, %v130_v40  ;;  %v1546_v46 = vpack.c.bf16 %v137_v43, %v135_v42  ;;  %v134_v47 = vld [vmem:[%s3030_s4 + $0x2c0] sm:$0xff]  ;;  %v136_v48 = vld [vmem:[%s3030_s4 + $0x2d0] sm:$0xff]  ;;  %v139_v50 = vld [vmem:[%s3030_s4 + $0x2e8] sm:$0xff] }
   0xb   :  { %1814 = vlog2.f32 %v744_v35  ;;  %v2001_v49 = vld [vmem:[%s3032_s0] sm:$0xff]  ;;  %v141_v51 = vld [vmem:[%s3030_s4 + $0x2f8] sm:$0xff]  ;;  %v1548_v53 = vpack.c.bf16 %v136_v48, %v134_v47  ;;  %v140_v57 = vld [vmem:[%s3030_s4 + $0x2f0] sm:$0xff] }
   0xc   :  { %v304_v52 = vcombine.high %v2001_v49, %v2001_v49  ;;  %v1550_v55 = vpack.c.bf16 %v141_v51, %v139_v50  ;;  %v138_v56 = vld [vmem:[%s3030_s4 + $0x2e0] sm:$0xff]  ;;  %v143_v59 = vld [vmem:[%s3030_s4 + $0x308] sm:$0xff]  ;;  %v145_v60 = vld [vmem:[%s3030_s4 + $0x318] sm:$0xff] }
   0xd   :  { %1533 = vmatpush1.bf16.msra.mxu0 %v1532_v19  ;;  %v1552_v63 = vpack.c.bf16 %v140_v57, %v138_v56  ;;  %v1554_v0 = vpack.c.bf16 %v145_v60, %v143_v59  ;;  %v142_v1 = vld [vmem:[%s3030_s4 + $0x300] sm:$0xff]  ;;  %v144_v2 = vld [vmem:[%s3030_s4 + $0x310] sm:$0xff]  ;;  %v147_v4 = vld [vmem:[%s3030_s4 + $0x328] sm:$0xff] }
   0xe   :  { %1535 = vmatprep.subr.bf16.mxu0 %v1534_v20  ;;  %v2012_v54 = vrot.slane %v304_v52, %v1990_v45  ;;  %v149_v5 = vld [vmem:[%s3030_s4 + $0x338] sm:$0xff]  ;;  %v1556_v7 = vpack.c.bf16 %v144_v2, %v142_v1  ;;  %v146_v9 = vld [vmem:[%s3030_s4 + $0x320] sm:$0xff]  ;;  %v148_v10 = vld [vmem:[%s3030_s4 + $0x330] sm:$0xff] }
   0xf   :  { %v1558_v8 = vpack.c.bf16 %v149_v5, %v147_v4  ;;  %v151_v11 = vld [vmem:[%s3030_s4 + $0x348] sm:$0xff]  ;;  %v153_v12 = vld [vmem:[%s3030_s4 + $0x358] sm:$0xff]  ;;  %v1560_v13 = vpack.c.bf16 %v148_v10, %v146_v9  ;;  %v150_v15 = vld [vmem:[%s3030_s4 + $0x340] sm:$0xff] }
  0x10   :  { %v320_v61 = vcombine.high %v2012_v54, %v2012_v54  ;;  %v1562_v14 = vpack.c.bf16 %v153_v12, %v151_v11  ;;  %v152_v16 = vld [vmem:[%s3030_s4 + $0x350] sm:$0xff]  ;;  %v155_v17 = vld [vmem:[%s3030_s4 + $0x368] sm:$0xff]  ;;  %v157_v18 = vld [vmem:[%s3030_s4 + $0x378] sm:$0xff] }
  0x11   :  { %1537 = vmatpush1.bf16.msra.mxu0 %v1536_v25  ;;  %v1564_v19 = vpack.c.bf16 %v152_v16, %v150_v15  ;;  %v1566_v20 = vpack.c.bf16 %v157_v18, %v155_v17  ;;  %v154_v21 = vld [vmem:[%s3030_s4 + $0x360] sm:$0xff]  ;;  %v156_v22 = vld [vmem:[%s3030_s4 + $0x370] sm:$0xff]  ;;  %v159_v23 = vld [vmem:[%s3030_s4 + $0x388] sm:$0xff] }
  0x12   :  { %1539 = vmatprep.subr.bf16.mxu0 %v1538_v29  ;;  %481 = vmatprep.mubr.f32.mxu0 %v320_v61  ;;  %v161_v24 = vld [vmem:[%s3030_s4 + $0x398] sm:$0xff]  ;;  %v47_v26 = vld [vmem:[%s3030_s4 + $0x8] sm:$0xff]  ;;  %v1568_v29 = vpack.c.bf16 %v156_v22, %v154_v21  ;;  %v46_v31 = vld [vmem:[%s3030_s4] sm:$0xff] }
  0x13   :  { %v49_v27 = vld [vmem:[%s3030_s4 + $0x18] sm:$0xff]  ;;  %v48_v32 = vld [vmem:[%s3030_s4 + $0x10] sm:$0xff]  ;;  %v1570_v33 = vpack.c.bf16 %v161_v24, %v159_v23  ;;  %v158_v34 = vld [vmem:[%s3030_s4 + $0x380] sm:$0xff] }
  0x14   :  { %v1458_v30 = vpack.c.bf16 %v49_v27, %v47_v26  ;;  %v160_v35 = vld [vmem:[%s3030_s4 + $0x390] sm:$0xff]  ;;  %v1460_v37 = vpack.c.bf16 %v48_v32, %v46_v31  ;;  %v165_v40 = vld [vmem:[%s3030_s4 + $0x3b8] sm:$0xff]  ;;  %v51_v41 = vld [vmem:[%s3030_s4 + $0x28] sm:$0xff] }
  0x15   :  { %1541 = vmatpush1.bf16.msra.mxu0 %v1540_v36  ;;  %v1815_v58 = vpop.eup %1814  ;;  %v163_v36 = vld [vmem:[%s3030_s4 + $0x3a8] sm:$0xff]  ;;  %v53_v42 = vld [vmem:[%s3030_s4 + $0x38] sm:$0xff]  ;;  %v1572_v48 = vpack.c.bf16 %v160_v35, %v158_v34  ;;  %v162_v50 = vld [vmem:[%s3030_s4 + $0x3a0] sm:$0xff] }
  0x16   :  { %1543 = vmatprep.subr.bf16.mxu0 %v1542_v39  ;;  %v746_v62 = vmul.f32 0.6931472, %v1815_v58  ;;  %1459 = vmatprep.subr.bf16.mxu1 %v1458_v30  ;;  %v1462_v43 = vpack.c.bf16 %v53_v42, %v51_v41  ;;  %v164_v51 = vld [vmem:[%s3030_s4 + $0x3b0] sm:$0xff]  ;;  %v57_v56 = vld [vmem:[%s3030_s4 + $0x58] sm:$0xff]  ;;  %v54_v57 = vld [vmem:[%s3030_s4 + $0x40] sm:$0xff] }
  0x17   :  { %1461 = vmatpush1.bf16.msra.mxu1 %v1460_v37  ;;  %v167_v59 = vld [vmem:[%s3030_s4 + $0x3c8] sm:$0xff]  ;;  %v169_v60 = vld [vmem:[%s3030_s4 + $0x3d8] sm:$0xff]  ;;  %v1576_v2 = vpack.c.bf16 %v164_v51, %v162_v50  ;;  %v58_v4 = vld [vmem:[%s3030_s4 + $0x60] sm:$0xff] }
  0x18   :  { %v747_v3 = vsub.f32 0.0, %v746_v62  ;;  %1463 = vmatprep.subr.bf16.mxu1 %v1462_v43  ;;  %v56_v62 = vld [vmem:[%s3030_s4 + $0x50] sm:$0xff]  ;;  %v171_v9 = vld [vmem:[%s3030_s4 + $0x3e8] sm:$0xff]  ;;  %v173_v11 = vld [vmem:[%s3030_s4 + $0x3f8] sm:$0xff] }
  0x19   :  { %1545 = vmatpush1.bf16.msra.mxu0 %v1544_v44  ;;  %v50_v44 = vld [vmem:[%s3030_s4 + $0x20] sm:$0xff]  ;;  %v60_v5 = vld [vmem:[%s3030_s4 + $0x70] sm:$0xff]  ;;  %v63_v12 = vld [vmem:[%s3030_s4 + $0x88] sm:$0xff]  ;;  %v1582_v21 = vpack.c.bf16 %v173_v11, %v171_v9 }
  0x1a   :  { %1547 = vmatprep.subr.bf16.mxu0 %v1546_v46  ;;  %v748_v6 = vadd.f32 1e-20, %v747_v3  ;;  %v52_v46 = vld [vmem:[%s3030_s4 + $0x30] sm:$0xff]  ;;  %v61_v3 = vld [vmem:[%s3030_s4 + $0x78] sm:$0xff]  ;;  %v1472_v15 = vpack.c.bf16 %v60_v5, %v58_v4  ;;  %v2185_v22 = vld [vmem:[%s3032_s0 + $0x8] sm:$0xff] }
  0x1b   :  { %v1464_v52 = vpack.c.bf16 %v52_v46, %v50_v44  ;;  %v172_v17 = vld [vmem:[%s3030_s4 + $0x3f0] sm:$0xff]  ;;  %v67_v23 = vld [vmem:[%s3030_s4 + $0xa8] sm:$0xff]  ;;  %v69_v24 = vld [vmem:[%s3030_s4 + $0xb8] sm:$0xff] }
  0x1c   :  { %1816 = vlog2.f32 %v748_v6  ;;  %v1578_v6 = vpack.c.bf16 %v169_v60, %v167_v59  ;;  %v177_v26 = vld [vmem:[%s3030_s4 + $0x418] sm:$0xff]  ;;  %v1478_v30 = vpack.c.bf16 %v69_v24, %v67_v23  ;;  %v66_v31 = vld [vmem:[%s3030_s4 + $0xa0] sm:$0xff]  ;;  %v68_v32 = vld [vmem:[%s3030_s4 + $0xb0] sm:$0xff] }
  0x1d   :  { %1549 = vmatpush1.bf16.msra.mxu0 %v1548_v53  ;;  %v1574_v53 = vpack.c.bf16 %v165_v40, %v163_v36  ;;  %1465 = vmatpush1.bf16.msra.mxu1 %v1464_v52  ;;  %v174_v34 = vld [vmem:[%s3030_s4 + $0x400] sm:$0xff]  ;;  %v176_v35 = vld [vmem:[%s3030_s4 + $0x410] sm:$0xff]  ;;  %v179_v36 = vld [vmem:[%s3030_s4 + $0x428] sm:$0xff]  ;;  %v1480_v41 = vpack.c.bf16 %v68_v32, %v66_v31 }
  0x1e   :  { %1551 = vmatprep.subr.bf16.mxu0 %v1550_v55  ;;  %v55_v55 = vld [vmem:[%s3030_s4 + $0x48] sm:$0xff]  ;;  %v181_v37 = vld [vmem:[%s3030_s4 + $0x438] sm:$0xff]  ;;  %v1588_v42 = vpack.c.bf16 %v176_v35, %v174_v34  ;;  %v178_v43 = vld [vmem:[%s3030_s4 + $0x420] sm:$0xff] }
  0x1f   :  { %v1466_v61 = vpack.c.bf16 %v57_v56, %v55_v55  ;;  %v73_v40 = vld [vmem:[%s3030_s4 + $0xd8] sm:$0xff]  ;;  %v70_v46 = vld [vmem:[%s3030_s4 + $0xc0] sm:$0xff]  ;;  %v180_v50 = vld [vmem:[%s3030_s4 + $0x430] sm:$0xff] }
  0x20   :  { %v75_v52 = vld [vmem:[%s3030_s4 + $0xe8] sm:$0xff]  ;;  %v185_v56 = vld [vmem:[%s3030_s4 + $0x458] sm:$0xff]  ;;  %v1592_v59 = vpack.c.bf16 %v180_v50, %v178_v43  ;;  %v182_v60 = vld [vmem:[%s3030_s4 + $0x440] sm:$0xff] }
  0x21   :  { %1553 = vmatpush1.bf16.msra.mxu0 %v1552_v63  ;;  %v1468_v63 = vpack.c.bf16 %v56_v62, %v54_v57  ;;  %1467 = vmatprep.subr.bf16.mxu1 %v1466_v61  ;;  %v183_v55 = vld [vmem:[%s3030_s4 + $0x448] sm:$0xff]  ;;  %v74_v62 = vld [vmem:[%s3030_s4 + $0xe0] sm:$0xff]  ;;  %v189_v4 = vld [vmem:[%s3030_s4 + $0x478] sm:$0xff] }
  0x22   :  { %1555 = vmatprep.subr.bf16.mxu0 %v1554_v0  ;;  %v59_v0 = vld [vmem:[%s3030_s4 + $0x68] sm:$0xff]  ;;  %v80_v11 = vld [vmem:[%s3030_s4 + $0x110] sm:$0xff]  ;;  %v82_v23 = vld [vmem:[%s3030_s4 + $0x120] sm:$0xff] }
  0x23   :  { %v1470_v10 = vpack.c.bf16 %v61_v3, %v59_v0  ;;  %1469 = vmatpush1.bf16.msra.mxu1 %v1468_v63  ;;  %v76_v63 = vld [vmem:[%s3030_s4 + $0xf0] sm:$0xff]  ;;  %v187_v3 = vld [vmem:[%s3030_s4 + $0x468] sm:$0xff]  ;;  %v197_v31 = vld [vmem:[%s3030_s4 + $0x4b8] sm:$0xff] }
  0x24   :  { %v184_v0 = vld [vmem:[%s3030_s4 + $0x450] sm:$0xff]  ;;  %v1488_v5 = vpack.c.bf16 %v76_v63, %v74_v62  ;;  %v194_v34 = vld [vmem:[%s3030_s4 + $0x4a0] sm:$0xff]  ;;  %v199_v43 = vld [vmem:[%s3030_s4 + $0x4c8] sm:$0xff] }
  0x25   :  { %1557 = vmatpush1.bf16.msra.mxu0 %v1556_v7  ;;  %v166_v7 = vld [vmem:[%s3030_s4 + $0x3c0] sm:$0xff]  ;;  %1471 = vmatprep.subr.bf16.mxu1 %v1470_v10  ;;  %v84_v24 = vld [vmem:[%s3030_s4 + $0x130] sm:$0xff] }
  0x26   :  { %1559 = vmatprep.subr.bf16.mxu0 %v1558_v8  ;;  %v1817_v25 = vpop.eup %1816  ;;  %v168_v8 = vld [vmem:[%s3030_s4 + $0x3d0] sm:$0xff]  ;;  %v78_v10 = vld [vmem:[%s3030_s4 + $0x100] sm:$0xff]  ;;  %v1496_v32 = vpack.c.bf16 %v84_v24, %v82_v23 }
  0x27   :  { %v750_v28 = vmul.f32 0.6931472, %v1817_v25  ;;  %v1580_v16 = vpack.c.bf16 %v168_v8, %v166_v7  ;;  %v175_v25 = vld [vmem:[%s3030_s4 + $0x408] sm:$0xff]  ;;  %1473 = vmatpush1.bf16.msra.mxu1 %v1472_v15  ;;  %v1596_v7 = vpack.c.bf16 %v184_v0, %v182_v60  ;;  %v186_v8 = vld [vmem:[%s3030_s4 + $0x460] sm:$0xff]  ;;  %v205_v60 = vld [vmem:[%s3030_s4 + $0x4f8] sm:$0xff] }
  0x28   :  { %v202_v63 = vld [vmem:[%s3030_s4 + $0x4e0] sm:$0xff] }
  0x29   :  { %1561 = vmatpush1.bf16.msra.mxu0 %v1560_v13  ;;  %v751_v39 = vsub.f32 0.0, %v750_v28  ;;  %v65_v13 = vld [vmem:[%s3030_s4 + $0x98] sm:$0xff]  ;;  %v94_v0 = vld [vmem:[%s3030_s4 + $0x180] sm:$0xff] }
  0x2a   :  { %1563 = vmatprep.subr.bf16.mxu0 %v1562_v14  ;;  %v170_v14 = vld [vmem:[%s3030_s4 + $0x3e0] sm:$0xff]  ;;  %v1474_v18 = vpack.c.bf16 %v65_v13, %v63_v12  ;;  %v1598_v12 = vpack.c.bf16 %v189_v4, %v187_v3  ;;  %v83_v13 = vld [vmem:[%s3030_s4 + $0x128] sm:$0xff]  ;;  %v204_v3 = vld [vmem:[%s3030_s4 + $0x4f0] sm:$0xff] }
  0x2b   :  { %v752_v47 = vadd.f32 0.125, %v751_v39  ;;  %v1584_v28 = vpack.c.bf16 %v172_v17, %v170_v14  ;;  %v71_v39 = vld [vmem:[%s3030_s4 + $0xc8] sm:$0xff]  ;;  %v85_v14 = vld [vmem:[%s3030_s4 + $0x138] sm:$0xff]  ;;  %v210_v23 = vld [vmem:[%s3030_s4 + $0x520] sm:$0xff] }
  0x2c   :  { %1475 = vmatprep.subr.bf16.mxu1 %v1474_v18  ;;  %v1482_v51 = vpack.c.bf16 %v73_v40, %v71_v39  ;;  %v193_v17 = vld [vmem:[%s3030_s4 + $0x498] sm:$0xff]  ;;  %v1492_v18 = vpack.c.bf16 %v80_v11, %v78_v10  ;;  %v196_v40 = vld [vmem:[%s3030_s4 + $0x4b0] sm:$0xff]  ;;  %v99_v4 = vld [vmem:[%s3030_s4 + $0x1a8] sm:$0xff]  ;;  %v1616_v10 = vpack.c.bf16 %v204_v3, %v202_v63 }
  0x2d   :  { %1565 = vmatpush1.bf16.msra.mxu0 %v1564_v19  ;;  %v2127_v58 = vmul.f32 1.1764705, %v752_v47  ;;  %v62_v19 = vld [vmem:[%s3030_s4 + $0x80] sm:$0xff]  ;;  %v72_v47 = vld [vmem:[%s3030_s4 + $0xd0] sm:$0xff] }
  0x2e   :  { %1567 = vmatprep.subr.bf16.mxu0 %v1566_v20  ;;  %v64_v20 = vld [vmem:[%s3030_s4 + $0x90] sm:$0xff]  ;;  %v1484_v57 = vpack.c.bf16 %v72_v47, %v70_v46  ;;  %v1608_v47 = vpack.c.bf16 %v196_v40, %v194_v34  ;;  %v206_v11 = vld [vmem:[%s3030_s4 + $0x500] sm:$0xff] }
  0x2f   :  { %v756_v1 = vsel %vm755_vm0, %v2127_v58, -inf  ;;  %v1476_v27 = vpack.c.bf16 %v64_v20, %v62_v19  ;;  %v190_v20 = vld [vmem:[%s3030_s4 + $0x480] sm:$0xff] }
  0x30   :  { %757 = vmax.xlane.f32.xlu0 %v756_v1  ;;  %v79_v1 = vld [vmem:[%s3030_s4 + $0x108] sm:$0xff] }
  0x31   :  { %1569 = vmatpush1.bf16.msra.mxu0 %v1568_v29  ;;  %v2201_v29 = vrot.slane %v2185_v22, %v1990_v45  ;;  %1477 = vmatpush1.bf16.msra.mxu1 %v1476_v27  ;;  %v87_v27 = vld [vmem:[%s3030_s4 + $0x148] sm:$0xff] }
  0x32   :  { %1571 = vmatprep.subr.bf16.mxu0 %v1570_v33  ;;  %v1586_v33 = vpack.c.bf16 %v177_v26, %v175_v25  ;;  %1479 = vmatprep.subr.bf16.mxu1 %v1478_v30  ;;  %v192_v26 = vld [vmem:[%s3030_s4 + $0x490] sm:$0xff]  ;;  %v195_v30 = vld [vmem:[%s3030_s4 + $0x4a8] sm:$0xff] }
  0x33   :  { %v336_v44 = vcombine.high %v2201_v29, %v2201_v29  ;;  %v1606_v39 = vpack.c.bf16 %v197_v31, %v195_v30  ;;  %v107_v30 = vld [vmem:[%s3030_s4 + $0x1e8] sm:$0xff]  ;;  %v109_v31 = vld [vmem:[%s3030_s4 + $0x1f8] sm:$0xff] }
  0x35   :  { %1573 = vmatpush1.bf16.msra.mxu0 %v1572_v48  ;;  %v1590_v48 = vpack.c.bf16 %v181_v37, %v179_v36  ;;  %1481 = vmatpush1.bf16.msra.mxu1 %v1480_v41  ;;  %v86_v36 = vld [vmem:[%s3030_s4 + $0x140] sm:$0xff]  ;;  %v88_v37 = vld [vmem:[%s3030_s4 + $0x150] sm:$0xff]  ;;  %v91_v41 = vld [vmem:[%s3030_s4 + $0x168] sm:$0xff] }
  0x36   :  { %1575 = vmatprep.subr.bf16.mxu0 %v1574_v53  ;;  %v77_v53 = vld [vmem:[%s3030_s4 + $0xf8] sm:$0xff]  ;;  %1483 = vmatprep.subr.bf16.mxu1 %v1482_v51  ;;  %v1500_v46 = vpack.c.bf16 %v88_v37, %v86_v36  ;;  %v90_v51 = vld [vmem:[%s3030_s4 + $0x160] sm:$0xff]  ;;  %v1518_v36 = vpack.c.bf16 %v109_v31, %v107_v30 }
  0x37   :  { %v1486_v61 = vpack.c.bf16 %v77_v53, %v75_v52  ;;  %v92_v52 = vld [vmem:[%s3030_s4 + $0x170] sm:$0xff]  ;;  %v106_v37 = vld [vmem:[%s3030_s4 + $0x1e0] sm:$0xff] }
  0x38   :  { %v246_v31 = vld [vmem:[%s3030_s4 + $0x640] sm:$0xff] }
  0x39   :  { %1577 = vmatpush1.bf16.msra.mxu0 %v1576_v2  ;;  %v81_v2 = vld [vmem:[%s3030_s4 + $0x118] sm:$0xff]  ;;  %1485 = vmatpush1.bf16.msra.mxu1 %v1484_v57 }
  0x3a   :  { %1579 = vmatprep.subr.bf16.mxu0 %v1578_v6  ;;  %v2280_v6 = vrot.slane %v2001_v49, %v1990_v45  ;;  %1487 = vmatprep.subr.bf16.mxu1 %v1486_v61  ;;  %v1490_v9 = vpack.c.bf16 %v81_v2, %v79_v1  ;;  %v188_v49 = vld [vmem:[%s3030_s4 + $0x470] sm:$0xff]  ;;  %v97_v57 = vld [vmem:[%s3030_s4 + $0x198] sm:$0xff]  ;;  %v1504_v61 = vpack.c.bf16 %v92_v52, %v90_v51  ;;  %v223_v52 = vld [vmem:[%s3030_s4 + $0x588] sm:$0xff] }
  0x3b   :  { %v1600_v19 = vpack.c.bf16 %v188_v49, %v186_v8  ;;  %v96_v1 = vld [vmem:[%s3030_s4 + $0x190] sm:$0xff]  ;;  %v209_v8 = vld [vmem:[%s3030_s4 + $0x518] sm:$0xff]  ;;  %v98_v49 = vld [vmem:[%s3030_s4 + $0x1a0] sm:$0xff] }
  0x3c   :  { %v319_v15 = vcombine.high %v2280_v6, %v2280_v6  ;;  %v220_v51 = vld [vmem:[%s3030_s4 + $0x570] sm:$0xff] }
  0x3d   :  { %1581 = vmatpush1.bf16.msra.mxu0 %v1580_v16  ;;  %v191_v16 = vld [vmem:[%s3030_s4 + $0x488] sm:$0xff]  ;;  %1489 = vmatpush1.bf16.msra.mxu1 %v1488_v5  ;;  %v101_v5 = vld [vmem:[%s3030_s4 + $0x1b8] sm:$0xff] }
  0x3e   :  { %1583 = vmatprep.subr.bf16.mxu0 %v1582_v21  ;;  %410 = vmatprep.mubr.f32.mxu1 %v319_v15  ;;  %v1494_v21 = vpack.c.bf16 %v85_v14, %v83_v13  ;;  %v1602_v25 = vpack.c.bf16 %v193_v17, %v191_v16  ;;  %v100_v13 = vld [vmem:[%s3030_s4 + $0x1b0] sm:$0xff]  ;;  %v103_v16 = vld [vmem:[%s3030_s4 + $0x1c8] sm:$0xff]  ;;  %v105_v17 = vld [vmem:[%s3030_s4 + $0x1d8] sm:$0xff] }
  0x3f   :  { %1491 = vmatprep.subr.bf16.mxu1 %v1490_v9  ;;  %v1508_v9 = vpack.c.bf16 %v96_v1, %v94_v0  ;;  %v208_v15 = vld [vmem:[%s3030_s4 + $0x510] sm:$0xff]  ;;  %v1514_v24 = vpack.c.bf16 %v105_v17, %v103_v16  ;;  %v231_v1 = vld [vmem:[%s3030_s4 + $0x5c8] sm:$0xff]  ;;  %v238_v17 = vld [vmem:[%s3030_s4 + $0x600] sm:$0xff] }
  0x40   :  { %v228_v0 = vld [vmem:[%s3030_s4 + $0x5b0] sm:$0xff] }
  0x41   :  { %1585 = vmatpush1.bf16.msra.mxu0 %v1584_v28  ;;  %v89_v28 = vld [vmem:[%s3030_s4 + $0x158] sm:$0xff]  ;;  %1493 = vmatpush1.bf16.msra.mxu1 %v1492_v18  ;;  %v211_v18 = vld [vmem:[%s3030_s4 + $0x528] sm:$0xff] }
  0x42   :  { %1587 = vmatprep.subr.bf16.mxu0 %v1586_v33  ;;  %v1604_v33 = vpack.c.bf16 %v192_v26, %v190_v20  ;;  %1495 = vmatprep.subr.bf16.mxu1 %v1494_v21  ;;  %v1498_v35 = vpack.c.bf16 %v89_v28, %v87_v27  ;;  %v1512_v20 = vpack.c.bf16 %v100_v13, %v98_v49  ;;  %v104_v26 = vld [vmem:[%s3030_s4 + $0x1d0] sm:$0xff]  ;;  %v239_v13 = vld [vmem:[%s3030_s4 + $0x608] sm:$0xff] }
  0x43   :  { %v1620_v21 = vpack.c.bf16 %v208_v15, %v206_v11  ;;  %v212_v28 = vld [vmem:[%s3030_s4 + $0x530] sm:$0xff] }
  0x44   :  { %482 = vmatmul.mubr.f32.vlgmr.msra.gmra.mrb[0].mxu0 %v2012_v54  ;;  %v1594_v54 = vpack.c.bf16 %v185_v56, %v183_v55  ;;  %v200_v55 = vld [vmem:[%s3030_s4 + $0x4d0] sm:$0xff]  ;;  %v95_v56 = vld [vmem:[%s3030_s4 + $0x188] sm:$0xff] }
  0x45   :  { %1589 = vmatpush1.bf16.msra.mxu0 %v1588_v42  ;;  %552 = vmatprep.mubr.f32.mxu0 %v336_v44  ;;  %v93_v42 = vld [vmem:[%s3030_s4 + $0x178] sm:$0xff]  ;;  %v236_v49 = vld [vmem:[%s3030_s4 + $0x5f0] sm:$0xff] }
  0x46   :  { %1591 = vmatprep.subr.bf16.mxu0 %v1590_v48  ;;  %v201_v44 = vld [vmem:[%s3030_s4 + $0x4d8] sm:$0xff]  ;;  %1497 = vmatpush1.bf16.msra.mxu1 %v1496_v32  ;;  %v198_v48 = vld [vmem:[%s3030_s4 + $0x4c0] sm:$0xff]  ;;  %v1502_v50 = vpack.c.bf16 %v93_v42, %v91_v41  ;;  %v215_v32 = vld [vmem:[%s3030_s4 + $0x548] sm:$0xff] }
  0x47   :  { %1499 = vmatprep.subr.bf16.mxu1 %v1498_v35  ;;  %v1610_v53 = vpack.c.bf16 %v201_v44, %v199_v43  ;;  %v1612_v62 = vpack.c.bf16 %v200_v55, %v198_v48  ;;  %v1624_v35 = vpack.c.bf16 %v212_v28, %v210_v23  ;;  %v214_v41 = vld [vmem:[%s3030_s4 + $0x540] sm:$0xff]  ;;  %v216_v42 = vld [vmem:[%s3030_s4 + $0x550] sm:$0xff]  ;;  %v219_v43 = vld [vmem:[%s3030_s4 + $0x568] sm:$0xff] }
  0x48   :  { %v221_v44 = vld [vmem:[%s3030_s4 + $0x578] sm:$0xff] }
  0x49   :  { %1593 = vmatpush1.bf16.msra.mxu0 %v1592_v59  ;;  %v203_v59 = vld [vmem:[%s3030_s4 + $0x4e8] sm:$0xff]  ;;  %v1630_v48 = vpack.c.bf16 %v221_v44, %v219_v43  ;;  %v254_v43 = vld [vmem:[%s3030_s4 + $0x680] sm:$0xff]  ;;  %v256_v44 = vld [vmem:[%s3030_s4 + $0x690] sm:$0xff] }
  0x4a   :  { %1595 = vmatprep.subr.bf16.mxu0 %v1594_v54  ;;  %1501 = vmatpush1.bf16.msra.mxu1 %v1500_v46  ;;  %v1506_v54 = vpack.c.bf16 %v97_v57, %v95_v56  ;;  %v1614_v2 = vpack.c.bf16 %v205_v60, %v203_v59  ;;  %v222_v57 = vld [vmem:[%s3030_s4 + $0x580] sm:$0xff]  ;;  %v224_v59 = vld [vmem:[%s3030_s4 + $0x590] sm:$0xff]  ;;  %v227_v60 = vld [vmem:[%s3030_s4 + $0x5a8] sm:$0xff] }
  0x4b   :  { %1503 = vmatprep.subr.bf16.mxu1 %v1502_v50  ;;  %v218_v50 = vld [vmem:[%s3030_s4 + $0x560] sm:$0xff] }
  0x4c   :  { %v1632_v55 = vpack.c.bf16 %v220_v51, %v218_v50  ;;  %v258_v51 = vld [vmem:[%s3030_s4 + $0x6a0] sm:$0xff] }
  0x4d   :  { %1597 = vmatpush1.bf16.msra.mxu0 %v1596_v7  ;;  %v207_v7 = vld [vmem:[%s3030_s4 + $0x508] sm:$0xff] }
  0x4e   :  { %1599 = vmatprep.subr.bf16.mxu0 %v1598_v12  ;;  %1505 = vmatpush1.bf16.msra.mxu1 %v1504_v61  ;;  %v1510_v12 = vpack.c.bf16 %v101_v5, %v99_v4  ;;  %v1618_v14 = vpack.c.bf16 %v209_v8, %v207_v7  ;;  %v229_v61 = vld [vmem:[%s3030_s4 + $0x5b8] sm:$0xff]  ;;  %v230_v4 = vld [vmem:[%s3030_s4 + $0x5c0] sm:$0xff]  ;;  %v232_v5 = vld [vmem:[%s3030_s4 + $0x5d0] sm:$0xff] }
  0x4f   :  { %1507 = vmatprep.subr.bf16.mxu1 %v1506_v54  ;;  %v1638_v63 = vpack.c.bf16 %v229_v61, %v227_v60  ;;  %v226_v54 = vld [vmem:[%s3030_s4 + $0x5a0] sm:$0xff]  ;;  %v235_v7 = vld [vmem:[%s3030_s4 + $0x5e8] sm:$0xff]  ;;  %v237_v8 = vld [vmem:[%s3030_s4 + $0x5f8] sm:$0xff] }
  0x50   :  { %v1646_v11 = vpack.c.bf16 %v237_v8, %v235_v7  ;;  %v264_v60 = vld [vmem:[%s3030_s4 + $0x6d0] sm:$0xff]  ;;  %v267_v61 = vld [vmem:[%s3030_s4 + $0x6e8] sm:$0xff] }
  0x51   :  { %1601 = vmatpush1.bf16.msra.mxu0 %v1600_v19  ;;  %v213_v19 = vld [vmem:[%s3030_s4 + $0x538] sm:$0xff]  ;;  %v272_v7 = vld [vmem:[%s3030_s4 + $0x710] sm:$0xff]  ;;  %v275_v8 = vld [vmem:[%s3030_s4 + $0x728] sm:$0xff] }
  0x52   :  { %1603 = vmatprep.subr.bf16.mxu0 %v1602_v25  ;;  %1509 = vmatpush1.bf16.msra.mxu1 %v1508_v9  ;;  %v102_v25 = vld [vmem:[%s3030_s4 + $0x1c0] sm:$0xff]  ;;  %v1622_v27 = vpack.c.bf16 %v213_v19, %v211_v18  ;;  %v1644_v9 = vpack.c.bf16 %v232_v5, %v230_v4  ;;  %v240_v18 = vld [vmem:[%s3030_s4 + $0x610] sm:$0xff]  ;;  %v243_v19 = vld [vmem:[%s3030_s4 + $0x628] sm:$0xff] }
  0x53   :  { %1511 = vmatprep.subr.bf16.mxu1 %v1510_v12  ;;  %v1516_v34 = vpack.c.bf16 %v104_v26, %v102_v25  ;;  %v234_v12 = vld [vmem:[%s3030_s4 + $0x5e0] sm:$0xff]  ;;  %v244_v25 = vld [vmem:[%s3030_s4 + $0x630] sm:$0xff]  ;;  %v247_v26 = vld [vmem:[%s3030_s4 + $0x648] sm:$0xff] }
  0x54   :  { %v270_v5 = vld [vmem:[%s3030_s4 + $0x700] sm:$0xff] }
  0x55   :  { %1605 = vmatpush1.bf16.msra.mxu0 %v1604_v33  ;;  %v217_v33 = vld [vmem:[%s3030_s4 + $0x558] sm:$0xff] }
  0x56   :  { %1607 = vmatprep.subr.bf16.mxu0 %v1606_v39  ;;  %1513 = vmatpush1.bf16.msra.mxu1 %v1512_v20  ;;  %v108_v39 = vld [vmem:[%s3030_s4 + $0x1f0] sm:$0xff]  ;;  %v1626_v40 = vpack.c.bf16 %v217_v33, %v215_v32  ;;  %v245_v20 = vld [vmem:[%s3030_s4 + $0x638] sm:$0xff]  ;;  %v251_v33 = vld [vmem:[%s3030_s4 + $0x668] sm:$0xff] }
  0x57   :  { %1515 = vmatprep.subr.bf16.mxu1 %v1514_v24  ;;  %v1520_v46 = vpack.c.bf16 %v108_v39, %v106_v37  ;;  %v1654_v23 = vpack.c.bf16 %v245_v20, %v243_v19  ;;  %v242_v24 = vld [vmem:[%s3030_s4 + $0x620] sm:$0xff]  ;;  %v248_v32 = vld [vmem:[%s3030_s4 + $0x650] sm:$0xff]  ;;  %v255_v39 = vld [vmem:[%s3030_s4 + $0x688] sm:$0xff] }
  0x58   :  { %v1656_v28 = vpack.c.bf16 %v244_v25, %v242_v24  ;;  %v252_v37 = vld [vmem:[%s3030_s4 + $0x670] sm:$0xff]  ;;  %v283_v19 = vld [vmem:[%s3030_s4 + $0x768] sm:$0xff]  ;;  %v285_v20 = vld [vmem:[%s3030_s4 + $0x778] sm:$0xff] }
  0x59   :  { %1609 = vmatpush1.bf16.msra.mxu0 %v1608_v47  ;;  %v1628_v47 = vpack.c.bf16 %v216_v42, %v214_v41  ;;  %v284_v24 = vld [vmem:[%s3030_s4 + $0x770] sm:$0xff]  ;;  %v287_v25 = vld [vmem:[%s3030_s4 + $0x788] sm:$0xff] }
  0x5a   :  { %1611 = vmatprep.subr.bf16.mxu0 %v1610_v53  ;;  %1517 = vmatpush1.bf16.msra.mxu1 %v1516_v34  ;;  %v225_v53 = vld [vmem:[%s3030_s4 + $0x598] sm:$0xff]  ;;  %v1660_v34 = vpack.c.bf16 %v248_v32, %v246_v31  ;;  %v288_v31 = vld [vmem:[%s3030_s4 + $0x790] sm:$0xff]  ;;  %v291_v32 = vld [vmem:[%s3030_s4 + $0x7a8] sm:$0xff] }
  0x5b   :  { %1519 = vmatprep.subr.bf16.mxu1 %v1518_v36  ;;  %v1634_v56 = vpack.c.bf16 %v225_v53, %v223_v52  ;;  %v250_v36 = vld [vmem:[%s3030_s4 + $0x660] sm:$0xff]  ;;  %v260_v52 = vld [vmem:[%s3030_s4 + $0x6b0] sm:$0xff]  ;;  %v263_v53 = vld [vmem:[%s3030_s4 + $0x6c8] sm:$0xff] }
  0x5c   :  { %v1664_v41 = vpack.c.bf16 %v252_v37, %v250_v36  ;;  %v292_v36 = vld [vmem:[%s3030_s4 + $0x7b0] sm:$0xff]  ;;  %v295_v37 = vld [vmem:[%s3030_s4 + $0x7c8] sm:$0xff] }
  0x5d   :  { %1613 = vmatpush1.bf16.msra.mxu0 %v1612_v62  ;;  %v1636_v62 = vpack.c.bf16 %v224_v59, %v222_v57  ;;  %v262_v59 = vld [vmem:[%s3030_s4 + $0x6c0] sm:$0xff] }
  0x5e   :  { %1615 = vmatprep.subr.bf16.mxu0 %v1614_v2  ;;  %1521 = vmatpush1.bf16.msra.mxu1 %v1520_v46  ;;  %v1640_v2 = vpack.c.bf16 %v228_v0, %v226_v54  ;;  %v259_v46 = vld [vmem:[%s3030_s4 + $0x6a8] sm:$0xff]  ;;  %v266_v0 = vld [vmem:[%s3030_s4 + $0x6e0] sm:$0xff] }
  0x61   :  { %1617 = vmatpush1.bf16.msra.mxu0 %v1616_v10  ;;  %411 = vmatmul.mubr.f32.vlgmr.msra.gmra.mrb[0].mxu1 %v2280_v6  ;;  %v233_v6 = vld [vmem:[%s3030_s4 + $0x5d8] sm:$0xff]  ;;  %v321_v10 = vcombine.high %v2185_v22, %v2185_v22  ;;  %v1648_v22 = vpack.c.bf16 %v236_v49, %v234_v12  ;;  %v274_v12 = vld [vmem:[%s3030_s4 + $0x720] sm:$0xff]  ;;  %v276_v49 = vld [vmem:[%s3030_s4 + $0x730] sm:$0xff] }
  0x62   :  { %1619 = vmatprep.subr.bf16.mxu0 %v1618_v14  ;;  %v1642_v3 = vpack.c.bf16 %v233_v6, %v231_v1  ;;  %v241_v14 = vld [vmem:[%s3030_s4 + $0x618] sm:$0xff]  ;;  %v268_v1 = vld [vmem:[%s3030_s4 + $0x6f0] sm:$0xff]  ;;  %v271_v6 = vld [vmem:[%s3030_s4 + $0x708] sm:$0xff] }
  0x63   :  { %v2534_v15 = vrot.slane %v321_v10, %v1990_v45  ;;  %v1650_v16 = vpack.c.bf16 %v241_v14, %v239_v13  ;;  %v1652_v45 = vpack.c.bf16 %v240_v18, %v238_v17  ;;  %v1684_v10 = vpack.c.bf16 %v272_v7, %v270_v5  ;;  %v279_v13 = vld [vmem:[%s3030_s4 + $0x748] sm:$0xff]  ;;  %v281_v14 = vld [vmem:[%s3030_s4 + $0x758] sm:$0xff]  ;;  %v278_v17 = vld [vmem:[%s3030_s4 + $0x740] sm:$0xff] }
  0x64   :  { %v280_v18 = vld [vmem:[%s3030_s4 + $0x750] sm:$0xff] }
  0x65   :  { %1621 = vmatpush1.bf16.msra.mxu0 %v1620_v21  ;;  %v337_v21 = vcombine.high %v2534_v15, %v2534_v15 }
  0x66   :  { %1623 = vmatprep.subr.bf16.mxu0 %v1622_v27  ;;  %v249_v27 = vld [vmem:[%s3030_s4 + $0x658] sm:$0xff] }
  0x67   :  { %v1658_v30 = vpack.c.bf16 %v249_v27, %v247_v26  ;;  %v289_v26 = vld [vmem:[%s3030_s4 + $0x798] sm:$0xff] }
  0x69   :  { %1625 = vmatpush1.bf16.msra.mxu0 %v1624_v35 }
  0x6a   :  { %1627 = vmatprep.subr.bf16.mxu0 %v1626_v40  ;;  %v257_v40 = vld [vmem:[%s3030_s4 + $0x698] sm:$0xff] }
  0x6b   :  { %v1666_v42 = vpack.c.bf16 %v257_v40, %v255_v39  ;;  %v297_v39 = vld [vmem:[%s3030_s4 + $0x7d8] sm:$0xff] }
  0x6d   :  { %1629 = vmatpush1.bf16.msra.mxu0 %v1628_v47  ;;  %v261_v47 = vld [vmem:[%s3030_s4 + $0x6b8] sm:$0xff] }
  0x6e   :  { %1631 = vmatprep.subr.bf16.mxu0 %v1630_v48  ;;  %v1668_v48 = vpack.c.bf16 %v256_v44, %v254_v43  ;;  %v1670_v50 = vpack.c.bf16 %v261_v47, %v259_v46  ;;  %v296_v43 = vld [vmem:[%s3030_s4 + $0x7d0] sm:$0xff]  ;;  %v299_v44 = vld [vmem:[%s3030_s4 + $0x7e8] sm:$0xff]  ;;  %v301_v46 = vld [vmem:[%s3030_s4 + $0x7f8] sm:$0xff] }
  0x71   :  { %1633 = vmatpush1.bf16.msra.mxu0 %v1632_v55  ;;  %v265_v55 = vld [vmem:[%s3030_s4 + $0x6d8] sm:$0xff] }
  0x72   :  { %1635 = vmatprep.subr.bf16.mxu0 %v1634_v56  ;;  %v1672_v56 = vpack.c.bf16 %v260_v52, %v258_v51  ;;  %v1674_v57 = vpack.c.bf16 %v265_v55, %v263_v53  ;;  %v300_v51 = vld [vmem:[%s3030_s4 + $0x7f0] sm:$0xff] }
  0x75   :  { %1637 = vmatpush1.bf16.msra.mxu0 %v1636_v62  ;;  %v269_v62 = vld [vmem:[%s3030_s4 + $0x6f8] sm:$0xff] }
  0x76   :  { %1639 = vmatprep.subr.bf16.mxu0 %v1638_v63  ;;  %v1676_v63 = vpack.c.bf16 %v264_v60, %v262_v59  ;;  %v1678_v54 = vpack.c.bf16 %v269_v62, %v267_v61  ;;  %v1833_v60 = vmov 0.0  }
  0x77   :  { %736 = vmatprep.mubr.f32.mxu1 %v1833_v60 }
  0x79   :  { %1641 = vmatpush1.bf16.msra.mxu0 %v1640_v2  ;;  %v273_v2 = vld [vmem:[%s3030_s4 + $0x718] sm:$0xff] }
  0x7a   :  { %1643 = vmatprep.subr.bf16.mxu0 %v1642_v3  ;;  %v1680_v3 = vpack.c.bf16 %v268_v1, %v266_v0  ;;  %v1682_v4 = vpack.c.bf16 %v273_v2, %v271_v6 }
  0x7d   :  { %1645 = vmatpush1.bf16.msra.mxu0 %v1644_v9  ;;  %v277_v9 = vld [vmem:[%s3030_s4 + $0x738] sm:$0xff] }
  0x7e   :  { %1647 = vmatprep.subr.bf16.mxu0 %v1646_v11  ;;  %v1686_v11 = vpack.c.bf16 %v277_v9, %v275_v8 }
  0x81   :  { %1649 = vmatpush1.bf16.msra.mxu0 %v1648_v22  ;;  %v1688_v22 = vpack.c.bf16 %v276_v49, %v274_v12  ;;  %v862_v49 = vld [vmem:[%s3035_s8 + $0x88] sm:$0xff] }
  0x82   :  { %1651 = vmatprep.subr.bf16.mxu0 %v1650_v16  ;;  %v1690_v16 = vpack.c.bf16 %v281_v14, %v279_v13  ;;  %v660_v14 = vld [vmem:[%s3036_s3] sm:$0xff] }
  0x84   :  { %553 = vmatmul.mubr.f32.vlgmr.msra.gmra.mrb[0].mxu0 %v2201_v29  ;;  %v253_v29 = vld [vmem:[%s3030_s4 + $0x678] sm:$0xff] }
  0x85   :  { %1653 = vmatpush1.bf16.msra.mxu0 %v1652_v45  ;;  %623 = vmatprep.mubr.f32.mxu0 %v337_v21  ;;  %v1662_v35 = vpack.c.bf16 %v253_v29, %v251_v33  ;;  %v1692_v45 = vpack.c.bf16 %v280_v18, %v278_v17  ;;  %v1694_v21 = vpack.c.bf16 %v285_v20, %v283_v19  ;;  %v293_v33 = vld [vmem:[%s3030_s4 + $0x7b8] sm:$0xff]  ;;  %v767_v17 = vld [vmem:[%s3037_s7] sm:$0xff]  ;;  %v846_v20 = vld [vmem:[%s3035_s8 + $0x8] sm:$0xff] }
  0x86   :  { %1655 = vmatprep.subr.bf16.mxu0 %v1654_v23  ;;  %v282_v23 = vld [vmem:[%s3030_s4 + $0x760] sm:$0xff] }
  0x87   :  { %v1696_v27 = vpack.c.bf16 %v284_v24, %v282_v23  ;;  %v845_v19 = vld [vmem:[%s3035_s8] sm:$0xff]  ;;  %v864_v23 = vld [vmem:[%s3035_s8 + $0x98] sm:$0xff] }
  0x88   :  { %v1716_v24 = vpack.c.bf16 %v846_v20, %v845_v19  ;;  %v970_v19 = vld [vmem:[%s3038_s11 + $0x30] sm:$0xff]  ;;  %v971_v20 = vld [vmem:[%s3038_s11 + $0x38] sm:$0xff] }
  0x89   :  { %1657 = vmatpush1.bf16.msra.mxu0 %v1656_v28  ;;  %v1698_v28 = vpack.c.bf16 %v289_v26, %v287_v25 }
  0x8a   :  { %1659 = vmatprep.subr.bf16.mxu0 %v1658_v30  ;;  %v286_v30 = vld [vmem:[%s3030_s4 + $0x780] sm:$0xff] }
  0x8b   :  { %v1700_v29 = vpack.c.bf16 %v288_v31, %v286_v30  ;;  %v865_v30 = vld [vmem:[%s3035_s8 + $0xa0] sm:$0xff]  ;;  %v866_v31 = vld [vmem:[%s3035_s8 + $0xa8] sm:$0xff] }
  0x8d   :  { %1661 = vmatpush1.bf16.msra.mxu0 %v1660_v34  ;;  %v1702_v34 = vpack.c.bf16 %v293_v33, %v291_v32  ;;  %v1722_v33 = vpack.c.bf16 %v866_v31, %v865_v30  ;;  %v1282_v30 = vld [vmem:[%s3040_s10] ss:$0 sm:$0xff] }
  0x8e   :  { %1663 = vmatprep.subr.bf16.mxu0 %v1662_v35  ;;  %v290_v35 = vld [vmem:[%s3030_s4 + $0x7a0] sm:$0xff] }
  0x8f   :  { %v1704_v40 = vpack.c.bf16 %v292_v36, %v290_v35  ;;  %v867_v35 = vld [vmem:[%s3035_s8 + $0xb0] sm:$0xff]  ;;  %v868_v36 = vld [vmem:[%s3035_s8 + $0xb8] sm:$0xff] }
  0x91   :  { %1665 = vmatpush1.bf16.msra.mxu0 %v1664_v41  ;;  %v1706_v41 = vpack.c.bf16 %v297_v39, %v295_v37  ;;  %v1726_v39 = vpack.c.bf16 %v868_v36, %v867_v35  ;;  %v1304_v35 = vld [vmem:[%s3035_s8 + $0x198] sm:$0xff] }
  0x92   :  { %1667 = vmatprep.subr.bf16.mxu0 %v1666_v42  ;;  %v294_v42 = vld [vmem:[%s3030_s4 + $0x7c0] sm:$0xff] }
  0x93   :  { %v1708_v47 = vpack.c.bf16 %v296_v43, %v294_v42  ;;  %v869_v42 = vld [vmem:[%s3035_s8 + $0xc0] sm:$0xff]  ;;  %v870_v43 = vld [vmem:[%s3035_s8 + $0xc8] sm:$0xff] }
  0x95   :  { %1669 = vmatpush1.bf16.msra.mxu0 %v1668_v48  ;;  %v1710_v48 = vpack.c.bf16 %v301_v46, %v299_v44  ;;  %v1730_v46 = vpack.c.bf16 %v870_v43, %v869_v42  ;;  %v1305_v42 = vld [vmem:[%s3035_s8 + $0x1a0] sm:$0xff]  ;;  %v1306_v43 = vld [vmem:[%s3035_s8 + $0x1a8] sm:$0xff] }
  0x96   :  { %1671 = vmatprep.subr.bf16.mxu0 %v1670_v50  ;;  %v298_v50 = vld [vmem:[%s3030_s4 + $0x7e0] sm:$0xff] }
  0x97   :  { %v1712_v52 = vpack.c.bf16 %v300_v51, %v298_v50  ;;  %v871_v50 = vld [vmem:[%s3035_s8 + $0xd0] sm:$0xff]  ;;  %v872_v51 = vld [vmem:[%s3035_s8 + $0xd8] sm:$0xff] }
  0x99   :  { %1673 = vmatpush1.bf16.msra.mxu0 %v1672_v56 }
  0x9a   :  { %1675 = vmatprep.subr.bf16.mxu0 %v1674_v57 }
  0x9d   :  { %1677 = vmatpush1.bf16.msra.mxu0 %v1676_v63  ;;  %v634_v63 = vsub.s32 0, %v1975_v38 }
  0x9e   :  { %1679 = vmatprep.subr.bf16.mxu0 %v1678_v54  ;;  %v630_v54 = vld [vmem:[%s3033_s5] sm:$0x3] }
  0x9f   :  { %v635_v0 = vrot.slane %v630_v54, %v634_v63 }
  0xa1   :  { %1681 = vmatpush1.bf16.msra.mxu0 %v1680_v3 }
  0xa2   :  { %1683 = vmatprep.subr.bf16.mxu0 %v1682_v4 }
  0xa5   :  { %1685 = vmatpush1.bf16.msra.mxu0 %v1684_v10 }
  0xa6   :  { %1687 = vmatprep.subr.bf16.mxu0 %v1686_v11 }
  0xa9   :  { %1689 = vmatpush1.bf16.msra.mxu0 %v1688_v22  ;;  %v768_v22 = vld [vmem:[%s3037_s7 + $0x8] sm:$0xff] }
  0xaa   :  { %1691 = vmatprep.subr.bf16.mxu0 %v1690_v16 }
  0xad   :  { %1693 = vmatpush1.bf16.msra.mxu0 %v1692_v45 }
  0xae   :  { %1695 = vmatprep.subr.bf16.mxu0 %v1694_v21  ;;  %v863_v21 = vld [vmem:[%s3035_s8 + $0x90] sm:$0xff] }
  0xaf   :  { %v1718_v26 = vpack.c.bf16 %v864_v23, %v863_v21  ;;  %v1302_v21 = vld [vmem:[%s3035_s8 + $0x188] sm:$0xff]  ;;  %v1756_v23 = vpack.c.bf16 %v971_v20, %v970_v19  ;;  %v1323_v19 = vld [vmem:[%s3038_s11 + $0x50] sm:$0xff] }
  0xb1   :  { %1697 = vmatpush1.bf16.msra.mxu0 %v1696_v27  ;;  %v847_v27 = vld [vmem:[%s3035_s8 + $0x10] sm:$0xff] }
  0xb2   :  { %1699 = vmatprep.subr.bf16.mxu0 %v1698_v28  ;;  %v848_v28 = vld [vmem:[%s3035_s8 + $0x18] sm:$0xff] }
  0xb3   :  { %v1720_v32 = vpack.c.bf16 %v848_v28, %v847_v27  ;;  %v1281_v27 = vld [vmem:[%s3039_s9] ss:$0 sm:$0xff] }
  0xb5   :  { %1701 = vmatpush1.bf16.msra.mxu0 %v1700_v29  ;;  %v849_v29 = vld [vmem:[%s3035_s8 + $0x20] sm:$0xff] }
  0xb6   :  { %1703 = vmatprep.subr.bf16.mxu0 %v1702_v34  ;;  %v850_v34 = vld [vmem:[%s3035_s8 + $0x28] sm:$0xff] }
  0xb7   :  { %v1724_v37 = vpack.c.bf16 %v850_v34, %v849_v29  ;;  %v1286_v29 = vld [vmem:[%s3035_s8 + $0x108] sm:$0xff]  ;;  %v1303_v34 = vld [vmem:[%s3035_s8 + $0x190] sm:$0xff] }
  0xb9   :  { %1705 = vmatpush1.bf16.msra.mxu0 %v1704_v40  ;;  %v851_v40 = vld [vmem:[%s3035_s8 + $0x30] sm:$0xff] }
  0xba   :  { %1707 = vmatprep.subr.bf16.mxu0 %v1706_v41  ;;  %v852_v41 = vld [vmem:[%s3035_s8 + $0x38] sm:$0xff] }
  0xbb   :  { %v1728_v44 = vpack.c.bf16 %v852_v41, %v851_v40  ;;  %v1288_v40 = vld [vmem:[%s3035_s8 + $0x118] sm:$0xff] }
  0xbd   :  { %1709 = vmatpush1.bf16.msra.mxu0 %v1708_v47  ;;  %v758_v53 = vpop.xlane.xlu0 %757  ;;  %v853_v47 = vld [vmem:[%s3035_s8 + $0x40] sm:$0xff] }
  0xbe   :  { %1711 = vmatprep.subr.bf16.mxu0 %v1710_v48  ;;  %v759_v55 = vsub.f32 %v2127_v58, %v758_v53  ;;  %v638_v58 = vsub.s32 1, %v1975_v38  ;;  %v861_v38 = vld [vmem:[%s3035_s8 + $0x80] sm:$0xff]  ;;  %v854_v48 = vld [vmem:[%s3035_s8 + $0x48] sm:$0xff]  ;;  %v1734_v53 = vpack.c.bf16 %v872_v51, %v871_v50  ;;  %v1307_v50 = vld [vmem:[%s3035_s8 + $0x1b0] sm:$0xff] }
  0xbf   :  { %v1714_v18 = vpack.c.bf16 %v862_v49, %v861_v38  ;;  %v965_v38 = vld [vmem:[%s3038_s11 + $0x8] sm:$0xff]  ;;  %v966_v49 = vld [vmem:[%s3038_s11 + $0x10] sm:$0xff]  ;;  %v1308_v51 = vld [vmem:[%s3035_s8 + $0x1b8] sm:$0xff] }
  0xc0   :  { %v760_v56 = vmul.f32 1.442695, %v759_v55  ;;  %v639_v6 = vrot.slane %v630_v54, %v638_v58  ;;  %v855_v55 = vld [vmem:[%s3035_s8 + $0x50] sm:$0xff]  ;;  %v858_v54 = vld [vmem:[%s3035_s8 + $0x68] sm:$0xff] }
  0xc1   :  { %1713 = vmatpush1.bf16.msra.mxu0 %v1712_v52  ;;  %v1732_v52 = vpack.c.bf16 %v854_v48, %v853_v47  ;;  %v1289_v47 = vld [vmem:[%s3035_s8 + $0x120] sm:$0xff]  ;;  %v1290_v48 = vld [vmem:[%s3035_s8 + $0x128] sm:$0xff] }
  0xc2   :  { %1818 = vpow2.f32 %v760_v56  ;;  %v856_v56 = vld [vmem:[%s3035_s8 + $0x58] sm:$0xff] }
  0xc4   :  { %624 = vmatmul.mubr.f32.vlgmr.msra.gmra.mrb[0].mxu0 %v2534_v15  ;;  %v644_v15 = vld [vmem:[%s3034_s6] sm:$0x3] }
  0xc5   :  { %v649_v3 = vrot.slane %v644_v15, %v634_v63  ;;  %v653_v7 = vrot.slane %v644_v15, %v638_v58  ;;  %v857_v63 = vld [vmem:[%s3035_s8 + $0x60] sm:$0xff]  ;;  %v875_v15 = vld [vmem:[%s3035_s8 + $0xf0] sm:$0xff] }
  0xc6   :  { %v1740_v58 = vpack.c.bf16 %v858_v54, %v857_v63  ;;  %v1293_v63 = vld [vmem:[%s3035_s8 + $0x140] sm:$0xff]  ;;  %v1294_v54 = vld [vmem:[%s3035_s8 + $0x148] sm:$0xff] }
  0xcc   :  { %v1819_v57 = vpop.eup %1818 }
  0xcd   :  { %v762_v59 = vsel %vm755_vm0, %v1819_v57, 0.0 }
  0xce   :  { %763 = vadd.xlane.f32.xlu0 %v762_v59  ;;  %v874_v59 = vld [vmem:[%s3035_s8 + $0xe8] sm:$0xff] }
 0x134   :  { %v412_v61 = vpop.f32.mrb[0].mxu1 }
 0x135   :  { %v414_v62 = vpop.f32.mrb[1].mxu1 }
 0x15b   :  { %v764_v12 = vpop.xlane.xlu0 %763 }
 0x197   :  { %v625_v1 = vpop.f32.mrb[0].mxu0 }
 0x198   :  { %v1802_v2 = vadd.f32 %v625_v1, %v412_v61  ;;  %v627_v4 = vpop.f32.mrb[1].mxu0  ;;  %v1736_v61 = vpack.c.bf16 %v856_v56, %v855_v55  ;;  %v859_v1 = vld [vmem:[%s3035_s8 + $0x70] sm:$0xff]  ;;  %v1292_v56 = vld [vmem:[%s3035_s8 + $0x138] sm:$0xff] }
 0x199   :  { %v1803_v5 = vadd.f32 %v627_v4, %v414_v62  ;;  %v1291_v55 = vld [vmem:[%s3035_s8 + $0x130] sm:$0xff] }
 0x19a   :  { %v642_v8 = vmul.f32 %v1802_v2, %v635_v0  ;;  %v876_v0 = vld [vmem:[%s3035_s8 + $0xf8] sm:$0xff] }
 0x19b   :  { %v643_v9 = vmul.f32 %v1803_v5, %v639_v6  ;;  %v1742_v6 = vpack.c.bf16 %v876_v0, %v875_v15  ;;  %v860_v2 = vld [vmem:[%s3035_s8 + $0x78] sm:$0xff]  ;;  %v1776_v0 = vpack.c.bf16 %v1294_v54, %v1293_v63 }
 0x19c   :  { %v656_v10 = vadd.f32 %v649_v3, %v642_v8  ;;  %v1744_v3 = vpack.c.bf16 %v860_v2, %v859_v1  ;;  %v1312_v15 = vld [vmem:[%s3035_s8 + $0x1d8] sm:$0xff] }
 0x19d   :  { %v657_v11 = vadd.f32 %v653_v7, %v643_v9  ;;  %v1296_v2 = vld [vmem:[%s3035_s8 + $0x158] sm:$0xff] }
 0x19f   :  { %1820 = vtanh.f32 %v657_v11  ;;  %v1834_v11 = vmov 0.0|0.0  }
 0x1a0   :  { %1822 = vtanh.f32 %v656_v10 }
 0x1a1   :  { %1824 = vrcp.f32 %v764_v12  ;;  %v964_v12 = vld [vmem:[%s3038_s11] sm:$0xff] }
 0x1a9   :  { %v1821_v13 = vpop.eup %1820 }
 0x1aa   :  { %v1823_v16 = vpop.eup %1822  ;;  %1277 = vmatprep.subr.msk.mxu1 %vm665_vm1, %v1821_v13  ;;  %v1747_v13 = vpack.c.bf16 %v965_v38, %v964_v12  ;;  %v1315_v12 = vld [vmem:[%s3035_s8 + $0x1f0] sm:$0xff]  ;;  %v1316_v38 = vld [vmem:[%s3035_s8 + $0x1f8] sm:$0xff] }
 0x1ab   :  { %v1825_v45 = vpop.eup %1824  ;;  %1278 = vmatpush1.msk.msra.mxu1 %vm665_vm1, %v1823_v16  ;;  %v968_v16 = vld [vmem:[%s3038_s11 + $0x20] sm:$0xff] }
 0x1ac   :  { %1279 = vmatmul.mubr.msk.f32.vlgmr.msra.gmra.mrb[2].mxu1 %vm661_vm2, %v660_v14  ;;  %772 = vmatprep.subr.mxu1 %v768_v22  ;;  %v766_v25 = vmul.f32 %v1825_v45, %v1819_v57  ;;  %v873_v57 = vld [vmem:[%s3035_s8 + $0xe0] sm:$0xff]  ;;  %v967_v14 = vld [vmem:[%s3038_s11 + $0x18] sm:$0xff] }
 0x1ad   :  { %773 = vmatpush1.msra.mxu1 %v767_v17  ;;  %836 = vmatprep.mubr.f32.mxu1 %v1833_v60  ;;  %v1738_v62 = vpack.c.bf16 %v874_v59, %v873_v57  ;;  %v1750_v22 = vpack.c.bf16 %v967_v14, %v966_v49  ;;  %v969_v17 = vld [vmem:[%s3038_s11 + $0x28] sm:$0xff]  ;;  %v1301_v45 = vld [vmem:[%s3035_s8 + $0x180] sm:$0xff]  ;;  %v1299_v14 = vld [vmem:[%s3035_s8 + $0x170] sm:$0xff] }
 0x1ae   :  { %1715 = vmatprep.subr.bf16.mxu1 %v1714_v18  ;;  %v1753_v18 = vpack.c.bf16 %v969_v17, %v968_v16  ;;  %v1309_v57 = vld [vmem:[%s3035_s8 + $0x1c0] sm:$0xff]  ;;  %v1310_v59 = vld [vmem:[%s3035_s8 + $0x1c8] sm:$0xff] }
 0x1af   :  { %v1321_v17 = vld [vmem:[%s3038_s11 + $0x40] sm:$0xff] }
 0x1b0   :  { %1280 = vmatmul.mubr.msk.f32.vlgmr.msra.gmra.mrb[4].mxu1 %vm755_vm0, %v766_v25 }
 0x1b1   :  { %1717 = vmatpush3.bf16.msra.mxu1 %v1716_v24  ;;  %v1758_v24 = vpack.c.bf16 %v1302_v21, %v1301_v45  ;;  %v1326_v21 = vld [vmem:[%s3038_s11 + $0x68] sm:$0xff] }
 0x1b2   :  { %1719 = vmatprep.subr.bf16.mxu1 %v1718_v26 }
 0x1b5   :  { %1721 = vmatpush3.bf16.msra.mxu1 %v1720_v32 }
 0x1b6   :  { %1723 = vmatprep.subr.bf16.mxu1 %v1722_v33  ;;  %v1285_v33 = vld [vmem:[%s3035_s8 + $0x100] sm:$0xff] }
 0x1b7   :  { %v1760_v36 = vpack.c.bf16 %v1286_v29, %v1285_v33  ;;  %v1320_v29 = vld [vmem:[%s3040_s10 + $0x1] ss:$0 sm:$0xff] }
 0x1b9   :  { %1725 = vmatpush3.bf16.msra.mxu1 %v1724_v37  ;;  %v1762_v37 = vpack.c.bf16 %v1304_v35, %v1303_v34 }
 0x1ba   :  { %1727 = vmatprep.subr.bf16.mxu1 %v1726_v39  ;;  %v1287_v39 = vld [vmem:[%s3035_s8 + $0x110] sm:$0xff] }
 0x1bd   :  { %1729 = vmatpush3.bf16.msra.mxu1 %v1728_v44  ;;  %v1764_v44 = vpack.c.bf16 %v1288_v40, %v1287_v39 }
 0x1be   :  { %1731 = vmatprep.subr.bf16.mxu1 %v1730_v46  ;;  %v1766_v46 = vpack.c.bf16 %v1306_v43, %v1305_v42  ;;  %v1283_v43 = vld [vmem:[%s3041_s12] ss:$0 sm:$0xff] }
 0x1c1   :  { %1733 = vmatpush3.bf16.msra.mxu1 %v1732_v52  ;;  %v1768_v52 = vpack.c.bf16 %v1290_v48, %v1289_v47 }
 0x1c2   :  { %1735 = vmatprep.subr.bf16.mxu1 %v1734_v53  ;;  %v1770_v53 = vpack.c.bf16 %v1308_v51, %v1307_v50 }
 0x1c5   :  { %1737 = vmatpush3.bf16.msra.mxu1 %v1736_v61  ;;  %v1772_v61 = vpack.c.bf16 %v1292_v56, %v1291_v55 }
 0x1c6   :  { %1739 = vmatprep.subr.bf16.mxu1 %v1738_v62  ;;  %v1774_v62 = vpack.c.bf16 %v1310_v59, %v1309_v57 }
 0x1c9   :  { %1741 = vmatpush3.bf16.msra.mxu1 %v1740_v58  ;;  %v1311_v58 = vld [vmem:[%s3035_s8 + $0x1d0] sm:$0xff] }
 0x1ca   :  { %1743 = vmatprep.subr.bf16.mxu1 %v1742_v6  ;;  %v1778_v1 = vpack.c.bf16 %v1312_v15, %v1311_v58  ;;  %v1295_v6 = vld [vmem:[%s3035_s8 + $0x150] sm:$0xff] }
 0x1cd   :  { %1745 = vmatpush3.bf16.msra.mxu1 %v1744_v3  ;;  %v1313_v3 = vld [vmem:[%s3035_s8 + $0x1e0] sm:$0xff] }
 0x1ce   :  { %1746 = vmatprep.subr.bf16.mxu1 %v1834_v11 }
 0x27f   :  { %v738_v4 = vpop.f32.mrb[2].mxu1 }
 0x280   :  { %v740_v5 = vpop.f32.mrb[3].mxu1 }
 0x283   :  { %v838_v7 = vpop.f32.mrb[4].mxu1 }
 0x284   :  { %v2844_v8 = vmul.f32 %v838_v7, %v738_v4  ;;  %v840_v9 = vpop.f32.mrb[5].mxu1  ;;  %v1314_v4 = vld [vmem:[%s3035_s8 + $0x1e8] sm:$0xff] }
 0x285   :  { %v844_v10 = vmul.f32 %v840_v9, %v740_v5  ;;  %v1780_v5 = vpack.c.bf16 %v1296_v2, %v1295_v6  ;;  %v1782_v7 = vpack.c.bf16 %v1314_v4, %v1313_v3  ;;  %v1297_v9 = vld [vmem:[%s3035_s8 + $0x160] sm:$0xff] }
 0x287   :  { %941 = vmatprep.mubr.f32.mxu1 %v844_v10 }
 0x288   :  { %942 = vmatmul.mubr.f32.vlgmr.msra.gmra.mrb[6].mxu1 %v2844_v8 }
 0x289   :  { %1436 = vmatprep.mubr.msk.f32.mxu1 %vm1835_vm3, %v1833_v60  ;;  %1748 = vmatpush3.bf16.msra.mxu1 %v1747_v13  ;;  %v1786_v13 = vpack.c.bf16 %v1316_v38, %v1315_v12 }
 0x28a   :  { %1749 = vmatprep.subr.bf16.mxu1 %v1834_v11 }
 0x28d   :  { %1751 = vmatpush3.bf16.msra.mxu1 %v1750_v22  ;;  %v1300_v22 = vld [vmem:[%s3035_s8 + $0x178] sm:$0xff] }
 0x28e   :  { %1752 = vmatprep.subr.bf16.mxu1 %v1834_v11  ;;  %v1788_v16 = vpack.c.bf16 %v1300_v22, %v1299_v14 }
 0x291   :  { %1754 = vmatpush3.bf16.msra.mxu1 %v1753_v18  ;;  %v1322_v18 = vld [vmem:[%s3038_s11 + $0x48] sm:$0xff] }
 0x292   :  { %1755 = vmatprep.subr.bf16.mxu1 %v1834_v11  ;;  %v1791_v20 = vpack.c.bf16 %v1322_v18, %v1321_v17 }
 0x295   :  { %1757 = vmatpush3.bf16.msra.mxu1 %v1756_v23 }
 0x296   :  { %1759 = vmatprep.subr.bf16.mxu1 %v1758_v24  ;;  %v1327_v24 = vld [vmem:[%s3038_s11 + $0x70] sm:$0xff] }
 0x35b   :  { %v1364_v25 = vpop.f32.mrb[6].mxu1 }
 0x35c   :  { %v1365_v26 = vpop.f32.mrb[7].mxu1 }
 0x35d   :  { %v1366_v28 = vadd.f32 %v1365_v26, %v1364_v25  ;;  %v1328_v25 = vld [vmem:[%s3038_s11 + $0x78] sm:$0xff] }
 0x35e   :  { %v1800_v26 = vpack.c.bf16 %v1328_v25, %v1327_v24 }
 0x35f   :  { %v954_v31 = vmul.f32 %v1366_v28, %v1281_v27 }
 0x361   :  { %v962_v32 = vadd.f32 %v1282_v30, %v954_v31 }
 0x363   :  { %1826 = vtanh.f32 %v962_v32  ;;  %v1318_v32 = vld [vmem:[%s3039_s9 + $0x1] ss:$0 sm:$0xff] }
 0x36d   :  { %v1827_v41 = vpop.eup %1826 }
 0x36e   :  { %1437 = vmatmul.mubr.msk.f32.vlgmr.msra.gmra.mrb[8].mxu1 %vm979_vm4, %v1827_v41 }
 0x36f   :  { %1761 = vmatpush3.bf16.msra.mxu1 %v1760_v36  ;;  %1150 = vmatprep.mubr.f32.mxu1 %v844_v10  ;;  %v1298_v10 = vld [vmem:[%s3035_s8 + $0x168] sm:$0xff] }
 0x370   :  { %1763 = vmatprep.subr.bf16.mxu1 %v1762_v37  ;;  %v1784_v49 = vpack.c.bf16 %v1298_v10, %v1297_v9 }
 0x373   :  { %1765 = vmatpush3.bf16.msra.mxu1 %v1764_v44  ;;  %v1268_v44 = vld [vmem:[%s3042_s2] sm:$0xff] }
 0x374   :  { %1767 = vmatprep.subr.bf16.mxu1 %v1766_v46 }
 0x377   :  { %1769 = vmatpush3.bf16.msra.mxu1 %v1768_v52 }
 0x378   :  { %1771 = vmatprep.subr.bf16.mxu1 %v1770_v53 }
 0x37b   :  { %1773 = vmatpush3.bf16.msra.mxu1 %v1772_v61 }
 0x37c   :  { %1775 = vmatprep.subr.bf16.mxu1 %v1774_v62 }
 0x37f   :  { %1777 = vmatpush3.bf16.msra.mxu1 %v1776_v0 }
 0x380   :  { %1779 = vmatprep.subr.bf16.mxu1 %v1778_v1 }
 0x383   :  { %1781 = vmatpush3.bf16.msra.mxu1 %v1780_v5 }
 0x384   :  { %1783 = vmatprep.subr.bf16.mxu1 %v1782_v7 }
 0x387   :  { %1785 = vmatpush3.bf16.msra.mxu1 %v1784_v49 }
 0x388   :  { %1787 = vmatprep.subr.bf16.mxu1 %v1786_v13 }
 0x38b   :  { %1789 = vmatpush3.bf16.msra.mxu1 %v1788_v16 }
 0x38c   :  { %1790 = vmatprep.subr.bf16.mxu1 %v1834_v11 }
 0x38e   :  { %1151 = vmatmul.mubr.f32.vlgmr.msra.gmra.mrb[10].mxu1 %v2844_v8  ;;  %v1324_v8 = vld [vmem:[%s3038_s11 + $0x58] sm:$0xff] }
 0x38f   :  { %1455 = vmatprep.mubr.msk.f32.mxu1 %vm1835_vm3, %v1833_v60  ;;  %1792 = vmatpush3.bf16.msra.mxu1 %v1791_v20  ;;  %v1794_v45 = vpack.c.bf16 %v1324_v8, %v1323_v19  ;;  %v1325_v60 = vld [vmem:[%s3038_s11 + $0x60] sm:$0xff] }
 0x390   :  { %1793 = vmatprep.subr.bf16.mxu1 %v1834_v11  ;;  %v1797_v23 = vpack.c.bf16 %v1326_v21, %v1325_v60 }
 0x393   :  { %1795 = vmatpush3.bf16.msra.mxu1 %v1794_v45 }
 0x394   :  { %1796 = vmatprep.subr.bf16.mxu1 %v1834_v11 }
 0x397   :  { %1798 = vmatpush3.bf16.msra.mxu1 %v1797_v23 }
 0x398   :  { %1799 = vmatprep.subr.bf16.mxu1 %v1834_v11  ;;  %v1330_v11 = vld [vmem:[%s3041_s12 + $0x1] ss:$0 sm:$0xff] }
 0x39b   :  { %1801 = vmatpush3.bf16.msra.mxu1 %v1800_v26 }
 0x441   :  { %v1049_v27 = vpop.f32.mrb[8].mxu1 }
 0x442   :  { %v1438_v28 = vpop.f32.mrb[9].mxu1  ;;  %v1050_v47 = vadd.f32 %v1283_v43, %v1049_v27 }
 0x461   :  { %v1408_v30 = vpop.f32.mrb[10].mxu1 }
 0x462   :  { %v1409_v31 = vpop.f32.mrb[11].mxu1 }
 0x463   :  { %v1410_v33 = vadd.f32 %v1409_v31, %v1408_v30 }
 0x465   :  { %v1164_v34 = vmul.f32 %v1410_v33, %v1318_v32 }
 0x467   :  { %v1173_v35 = vadd.f32 %v1320_v29, %v1164_v34 }
 0x469   :  { %1828 = vtanh.f32 %v1173_v35 }
 0x473   :  { %v1829_v36 = vpop.eup %1828 }
 0x474   :  { %1456 = vmatmul.mubr.msk.f32.vlgmr.msra.gmra.mrb[12].mxu1 %vm979_vm4, %v1829_v36 }
 0x547   :  { %v1261_v37 = vpop.f32.mrb[12].mxu1 }
 0x548   :  { %v1262_v39 = vadd.f32 %v1330_v11, %v1261_v37  ;;  %v1457_v40 = vpop.f32.mrb[13].mxu1 }
 0x54a   :  { %v1265_v41 = vmul.f32 0.5, %v1262_v39 }
 0x54c   :  { %v1266_v42 = vmul.f32 1.442695, %v1265_v41 }
 0x54e   :  { %1830 = vpow2.f32 %v1266_v42 }
 0x558   :  { %v1831_v46 = vpop.eup %1830 }
 0x559   :  { %v1269_v48 = vmul.f32 %v1831_v46, %v1268_v44 }
 0x55b   :  { %v1270_v50 = vadd.f32 %v1269_v48, %v1050_v47 }
 0x55d   :  { %1272 = vst.msk [vmem:[%s3043_s13] sm:$0xff] %vm1271_vm5, %v1270_v50 }

// kernel: forward.5
= control target key start
LH: loop header
LB: loop body
LE: loop exit
PB: predicated region body
PF: predicated region fallthrough
CT: control target
= control target key end

     0   :  { %v4874_v0 = vmov 0.0|0.0   ;;  %vm51_vm0 = vcmask 195584   ;;  %vm4875_vm1 = vmmov 0   ;;  %v4876_v4 = vmov 0.0   ;;  %s6279_s2 = inlined_call_operand.vmem [shape: f32[24,64], index: 2, kind: input, shape index: {}]   ;;  %s6280_s3 = inlined_call_operand.vmem [shape: f32[32,64], index: 3, kind: input, shape index: {}]   ;;  %s6281_s0 = inlined_call_operand.vmem [shape: f32[32,24], index: 0, kind: input, shape index: {}]   ;;  %s6282_s1 = inlined_call_operand.vmem [shape: f32[8,32], index: 1, kind: input, shape index: {}]   ;;  %s6283_s5 = inlined_call_operand.vmem [shape: f32[128,8], index: 5, kind: input, shape index: {}]   ;;  %s6284_s4 = inlined_call_operand.vmem [shape: f32[128,32], index: 4, kind: input, shape index: {}]   ;;  %s6285_s7 = inlined_call_operand.vmem [shape: f32[5,128,128], index: 7, kind: input, shape index: {}]   ;;  %s6286_s6 = inlined_call_operand.vmem [shape: f32[4,64,64], index: 6, kind: input, shape index: {}]   ;;  %s6287_s8 = inlined_call_operand.vmem [shape: f32[5,128,64], index: 8, kind: input, shape index: {}]   ;;  %s6288_s9 = inlined_call_operand.vmem [shape: f32[5,128,64], index: 9, kind: input, shape index: {}]   ;;  %s6289_s11 = inlined_call_operand.vmem [shape: f32[64,24], index: 11, kind: input, shape index: {}]   ;;  %s6290_s10 = inlined_call_operand.vmem [shape: f32[128,128], index: 10, kind: input, shape index: {}]   ;;  %s6291_s12 = inlined_call_operand.vmem [shape: f32[1,24], index: 12, kind: input, shape index: {}]   ;;  %s6292_s13 = inlined_call_operand.vmem [shape: f32[128,24], index: 13, kind: output, shape index: {}]  }
   0x1   :  { %4409 = vmatprep.subr.bf16.mxu1 %v4874_v0  ;;  %v48_v1 = vld [vmem:[%s6279_s2] sm:$0xff]  ;;  %v49_v2 = vld [vmem:[%s6279_s2 + $0x8] sm:$0xff]  ;;  %3808 = vmatprep.mubr.msk.f32.mxu1 %vm4875_vm1, %v4876_v4  ;;  %v168_v7 = vld [vmem:[%s6280_s3 + $0x10] sm:$0xff]  ;;  %vm170_vm2 = vcmask 261120   ;;  %vm260_vm3 = vcmask 64512   ;;  %vm896_vm4 = vcmask 523264  }
   0x2   :  { %v166_v3 = vld [vmem:[%s6280_s3] sm:$0xff]  ;;  %v4405_v5 = vpack.c.bf16 %v49_v2, %v48_v1  ;;  %v167_v6 = vld [vmem:[%s6280_s3 + $0x8] sm:$0xff]  ;;  %v50_v9 = vld [vmem:[%s6279_s2 + $0x10] sm:$0xff] }
   0x3   :  { %v4410_v8 = vpack.c.bf16 %v167_v6, %v166_v3  ;;  %v169_v10 = vld [vmem:[%s6280_s3 + $0x18] sm:$0xff]  ;;  %v44_v11 = vld [vmem:[%s6281_s0] sm:$0xff]  ;;  %v45_v13 = vld [vmem:[%s6281_s0 + $0x8] sm:$0xff] }
   0x4   :  { %4406 = vmatprep.subr.bf16.mxu0 %v4405_v5  ;;  %3794 = vmatprep.mubr.msk.f32.mxu0 %vm51_vm0, %v44_v11  ;;  %v4413_v12 = vpack.c.bf16 %v169_v10, %v168_v7  ;;  %v46_v14 = vld [vmem:[%s6281_s0 + $0x10] sm:$0xff]  ;;  %v165_v15 = vld [vmem:[%s6282_s1] sm:$0xff]  ;;  %v47_v16 = vld [vmem:[%s6281_s0 + $0x18] sm:$0xff] }
   0x5   :  { %4411 = vmatpush3.bf16.msra.mxu1 %v4410_v8  ;;  %4408 = vmatpush3.bf16.msra.mxu0 %v4405_v5  ;;  %v244_v17 = vld [vmem:[%s6283_s5] sm:$0xff]  ;;  %v245_v22 = vld [vmem:[%s6283_s5 + $0x8] sm:$0xff]  ;;  %v246_v24 = vld [vmem:[%s6283_s5 + $0x10] sm:$0xff] }
   0x6   :  { %4412 = vmatprep.subr.bf16.mxu1 %v4874_v0  ;;  %3792 = vmatprep.subr.mxu0 %v50_v9  ;;  %v247_v27 = vld [vmem:[%s6283_s5 + $0x18] sm:$0xff]  ;;  %v248_v29 = vld [vmem:[%s6283_s5 + $0x20] sm:$0xff]  ;;  %v249_v30 = vld [vmem:[%s6283_s5 + $0x28] sm:$0xff] }
   0x7   :  { %v250_v31 = vld [vmem:[%s6283_s5 + $0x30] sm:$0xff]  ;;  %v251_v32 = vld [vmem:[%s6283_s5 + $0x38] sm:$0xff]  ;;  %v252_v33 = vld [vmem:[%s6283_s5 + $0x40] sm:$0xff] }
   0x8   :  { %v253_v34 = vld [vmem:[%s6283_s5 + $0x48] sm:$0xff]  ;;  %v254_v35 = vld [vmem:[%s6283_s5 + $0x50] sm:$0xff]  ;;  %v255_v36 = vld [vmem:[%s6283_s5 + $0x58] sm:$0xff] }
   0x9   :  { %4414 = vmatpush3.bf16.msra.mxu1 %v4413_v12  ;;  %3793 = vmatpush3.msra.mxu0 %v50_v9  ;;  %v256_v37 = vld [vmem:[%s6283_s5 + $0x60] sm:$0xff]  ;;  %v257_v38 = vld [vmem:[%s6283_s5 + $0x68] sm:$0xff]  ;;  %v258_v39 = vld [vmem:[%s6283_s5 + $0x70] sm:$0xff] }
   0xa   :  { %3795 = vmatmul.mubr.msk.f32.vlgmr.msra.gmra.mrb[0].mxu0 %vm51_vm0, %v45_v13  ;;  %v259_v40 = vld [vmem:[%s6283_s5 + $0x78] sm:$0xff]  ;;  %v149_v41 = vld [vmem:[%s6284_s4] sm:$0xff]  ;;  %v150_v42 = vld [vmem:[%s6284_s4 + $0x8] sm:$0xff] }
   0xb   :  { %3797 = vmatprep.mubr.msk.f32.mxu0 %vm51_vm0, %v46_v14  ;;  %v151_v43 = vld [vmem:[%s6284_s4 + $0x10] sm:$0xff]  ;;  %v152_v44 = vld [vmem:[%s6284_s4 + $0x18] sm:$0xff]  ;;  %v153_v45 = vld [vmem:[%s6284_s4 + $0x20] sm:$0xff] }
   0xc   :  { %3809 = vmatmul.mubr.msk.f32.vlgmr.msra.gmra.mrb[0].mxu1 %vm170_vm2, %v165_v15  ;;  %v154_v46 = vld [vmem:[%s6284_s4 + $0x28] sm:$0xff]  ;;  %v155_v47 = vld [vmem:[%s6284_s4 + $0x30] sm:$0xff]  ;;  %v156_v48 = vld [vmem:[%s6284_s4 + $0x38] sm:$0xff] }
   0xd   :  { %3813 = vmatprep.mubr.msk.f32.mxu1 %vm260_vm3, %v244_v17  ;;  %v157_v49 = vld [vmem:[%s6284_s4 + $0x40] sm:$0xff]  ;;  %v158_v50 = vld [vmem:[%s6284_s4 + $0x48] sm:$0xff]  ;;  %v159_v51 = vld [vmem:[%s6284_s4 + $0x50] sm:$0xff] }
   0xe   :  { %3798 = vmatmul.mubr.msk.f32.gmra.mrb[2].mxu0 %vm51_vm0, %v47_v16  ;;  %v160_v52 = vld [vmem:[%s6284_s4 + $0x58] sm:$0xff]  ;;  %v161_v53 = vld [vmem:[%s6284_s4 + $0x60] sm:$0xff]  ;;  %v162_v54 = vld [vmem:[%s6284_s4 + $0x68] sm:$0xff] }
   0xf   :  { %v163_v55 = vld [vmem:[%s6284_s4 + $0x70] sm:$0xff]  ;;  %v164_v56 = vld [vmem:[%s6284_s4 + $0x78] sm:$0xff]  ;;  %v647_v57 = vld [vmem:[%s6285_s7] sm:$0xff] }
  0x10   :  { %3901 = vmatprep.mubr.f32.mxu0 %v647_v57  ;;  %v888_v15 = vld [vmem:[%s6286_s6] sm:$0xff]  ;;  %v889_v16 = vld [vmem:[%s6286_s6 + $0x8] sm:$0xff] }
  0xdd   :  { %v3796_v18 = vpop.f32.mrb[0].mxu0 }
  0xde   :  { %v130_v19 = vpop.f32.mrb[1].mxu0 }
  0xdf   :  { %v4415_v20 = vpack.c.bf16 %v3796_v18, %v130_v19  ;;  %v240_v21 = vpop.f32.mrb[0].mxu1 }
  0xe0   :  { %v3810_v23 = vpop.f32.mrb[1].mxu1  ;;  %3811 = vmatprep.subr.mxu1 %v240_v21 }
  0xe1   :  { %3812 = vmatpush3.msra.mxu1 %v240_v21  ;;  %v3799_v25 = vpop.f32.mrb[2].mxu0  ;;  %v890_v21 = vld [vmem:[%s6286_s6 + $0x10] sm:$0xff]  ;;  %v648_v23 = vld [vmem:[%s6285_s7 + $0x8] sm:$0xff] }
  0xe2   :  { %3814 = vmatmul.mubr.msk.f32.vlgmr.msra.gmra.mrb[2].mxu1 %vm260_vm3, %v245_v22  ;;  %4416 = vmatprep.subr.bf16.mxu1 %v4415_v20  ;;  %v140_v26 = vpop.f32.mrb[3].mxu0  ;;  %v891_v22 = vld [vmem:[%s6286_s6 + $0x18] sm:$0xff] }
  0xe3   :  { %4418 = vmatpush3.bf16.msra.mxu1 %v4415_v20  ;;  %3816 = vmatprep.mubr.msk.f32.mxu1 %vm260_vm3, %v246_v24  ;;  %v4419_v28 = vpack.c.bf16 %v3799_v25, %v140_v26  ;;  %v4455_v20 = vpack.c.bf16 %v889_v16, %v888_v15  ;;  %v649_v24 = vld [vmem:[%s6285_s7 + $0x10] sm:$0xff]  ;;  %v4459_v25 = vpack.c.bf16 %v891_v22, %v890_v21  ;;  %v650_v26 = vld [vmem:[%s6285_s7 + $0x18] sm:$0xff]  ;;  %v816_v21 = vld [vmem:[%s6287_s8 + $0x40] sm:$0xff] }
  0xe5   :  { %4420 = vmatprep.subr.bf16.mxu1 %v4419_v28 }
  0xe6   :  { %3817 = vmatmul.mubr.msk.f32.gmra.mrb[4].mxu1 %vm260_vm3, %v247_v27  ;;  %v651_v27 = vld [vmem:[%s6285_s7 + $0x20] sm:$0xff] }
  0xe7   :  { %3819 = vmatprep.mubr.msk.f32.mxu1 %vm260_vm3, %v248_v29  ;;  %4422 = vmatpush3.bf16.msra.mxu1 %v4419_v28  ;;  %v652_v28 = vld [vmem:[%s6285_s7 + $0x28] sm:$0xff]  ;;  %v653_v29 = vld [vmem:[%s6285_s7 + $0x30] sm:$0xff] }
  0xea   :  { %3820 = vmatmul.mubr.msk.f32.gmra.mrb[6].mxu1 %vm260_vm3, %v249_v30  ;;  %v654_v30 = vld [vmem:[%s6285_s7 + $0x38] sm:$0xff] }
  0xeb   :  { %3822 = vmatprep.mubr.msk.f32.mxu1 %vm260_vm3, %v250_v31  ;;  %v655_v31 = vld [vmem:[%s6285_s7 + $0x40] sm:$0xff] }
  0xee   :  { %3823 = vmatmul.mubr.msk.f32.gmra.mrb[8].mxu1 %vm260_vm3, %v251_v32  ;;  %v656_v32 = vld [vmem:[%s6285_s7 + $0x48] sm:$0xff] }
  0xef   :  { %3825 = vmatprep.mubr.msk.f32.mxu1 %vm260_vm3, %v252_v33  ;;  %v657_v33 = vld [vmem:[%s6285_s7 + $0x50] sm:$0xff] }
  0xf2   :  { %3826 = vmatmul.mubr.msk.f32.gmra.mrb[10].mxu1 %vm260_vm3, %v253_v34  ;;  %v658_v34 = vld [vmem:[%s6285_s7 + $0x58] sm:$0xff] }
  0xf3   :  { %3828 = vmatprep.mubr.msk.f32.mxu1 %vm260_vm3, %v254_v35  ;;  %v659_v35 = vld [vmem:[%s6285_s7 + $0x60] sm:$0xff] }
  0xf6   :  { %3829 = vmatmul.mubr.msk.f32.gmra.mrb[12].mxu1 %vm260_vm3, %v255_v36  ;;  %v660_v36 = vld [vmem:[%s6285_s7 + $0x68] sm:$0xff] }
  0xf7   :  { %3831 = vmatprep.mubr.msk.f32.mxu1 %vm260_vm3, %v256_v37  ;;  %v661_v37 = vld [vmem:[%s6285_s7 + $0x70] sm:$0xff] }
  0xfa   :  { %3832 = vmatmul.mubr.msk.f32.gmra.mrb[14].mxu1 %vm260_vm3, %v257_v38  ;;  %v662_v38 = vld [vmem:[%s6285_s7 + $0x78] sm:$0xff] }
  0xfb   :  { %3834 = vmatprep.mubr.msk.f32.mxu1 %vm260_vm3, %v258_v39  ;;  %v892_v39 = vld [vmem:[%s6286_s6 + $0x20] sm:$0xff] }
  0xfe   :  { %3835 = vmatmul.mubr.msk.f32.gmra.mrb[16].mxu1 %vm260_vm3, %v259_v40  ;;  %v893_v40 = vld [vmem:[%s6286_s6 + $0x28] sm:$0xff] }
  0xff   :  { %3845 = vmatprep.mubr.msk.f32.mxu1 %vm170_vm2, %v149_v41  ;;  %v4463_v41 = vpack.c.bf16 %v893_v40, %v892_v39 }
 0x102   :  { %3846 = vmatmul.mubr.msk.f32.vlgmr.msra.gmra.mrb[2].mxu1 %vm170_vm2, %v150_v42  ;;  %v894_v42 = vld [vmem:[%s6286_s6 + $0x30] sm:$0xff] }
 0x103   :  { %3848 = vmatprep.mubr.msk.f32.mxu1 %vm170_vm2, %v151_v43  ;;  %v895_v43 = vld [vmem:[%s6286_s6 + $0x38] sm:$0xff] }
 0x106   :  { %3849 = vmatmul.mubr.msk.f32.gmra.mrb[4].mxu1 %vm170_vm2, %v152_v44  ;;  %v4467_v44 = vpack.c.bf16 %v895_v43, %v894_v42  ;;  %v821_v43 = vld [vmem:[%s6287_s8 + $0x68] sm:$0xff] }
 0x107   :  { %3851 = vmatprep.mubr.msk.f32.mxu1 %vm170_vm2, %v153_v45  ;;  %v809_v45 = vld [vmem:[%s6287_s8 + $0x8] sm:$0xff] }
 0x10a   :  { %3852 = vmatmul.mubr.msk.f32.gmra.mrb[6].mxu1 %vm170_vm2, %v154_v46  ;;  %v808_v46 = vld [vmem:[%s6287_s8] sm:$0xff] }
 0x10b   :  { %3854 = vmatprep.mubr.msk.f32.mxu1 %vm170_vm2, %v155_v47 }
 0x10e   :  { %3855 = vmatmul.mubr.msk.f32.gmra.mrb[8].mxu1 %vm170_vm2, %v156_v48  ;;  %v841_v48 = vld [vmem:[%s6288_s9 + $0x8] sm:$0xff] }
 0x10f   :  { %3857 = vmatprep.mubr.msk.f32.mxu1 %vm170_vm2, %v157_v49 }
 0x112   :  { %3858 = vmatmul.mubr.msk.f32.gmra.mrb[10].mxu1 %vm170_vm2, %v158_v50 }
 0x113   :  { %3860 = vmatprep.mubr.msk.f32.mxu1 %vm170_vm2, %v159_v51  ;;  %v840_v51 = vld [vmem:[%s6288_s9] sm:$0xff] }
 0x116   :  { %3861 = vmatmul.mubr.msk.f32.gmra.mrb[12].mxu1 %vm170_vm2, %v160_v52 }
 0x117   :  { %3863 = vmatprep.mubr.msk.f32.mxu1 %vm170_vm2, %v161_v53  ;;  %v811_v53 = vld [vmem:[%s6287_s8 + $0x18] sm:$0xff] }
 0x11a   :  { %3864 = vmatmul.mubr.msk.f32.gmra.mrb[14].mxu1 %vm170_vm2, %v162_v54 }
 0x11b   :  { %3866 = vmatprep.mubr.msk.f32.mxu1 %vm170_vm2, %v163_v55  ;;  %v810_v55 = vld [vmem:[%s6287_s8 + $0x10] sm:$0xff] }
 0x11e   :  { %3867 = vmatmul.mubr.msk.f32.gmra.mrb[16].mxu1 %vm170_vm2, %v164_v56 }
 0x1d5   :  { %v3847_v58 = vpop.f32.mrb[2].mxu1 }
 0x1d6   :  { %v568_v59 = vpop.f32.mrb[3].mxu1 }
 0x1d7   :  { %v4423_v60 = vpack.c.bf16 %v3847_v58, %v568_v59  ;;  %v843_v58 = vld [vmem:[%s6288_s9 + $0x18] sm:$0xff] }
 0x1d9   :  { %v3850_v61 = vpop.f32.mrb[4].mxu1  ;;  %4424 = vmatprep.subr.bf16.mxu0 %v4423_v60 }
 0x1da   :  { %v578_v62 = vpop.f32.mrb[5].mxu1  ;;  %4426 = vmatpush3.bf16.msra.mxu0 %v4423_v60 }
 0x1db   :  { %v4427_v63 = vpack.c.bf16 %v3850_v61, %v578_v62  ;;  %v842_v61 = vld [vmem:[%s6288_s9 + $0x10] sm:$0xff] }
 0x1dd   :  { %v3853_v0 = vpop.f32.mrb[6].mxu1  ;;  %4428 = vmatprep.subr.bf16.mxu0 %v4427_v63 }
 0x1de   :  { %v588_v1 = vpop.f32.mrb[7].mxu1  ;;  %4430 = vmatpush3.bf16.msra.mxu0 %v4427_v63  ;;  %v813_v63 = vld [vmem:[%s6287_s8 + $0x28] sm:$0xff] }
 0x1df   :  { %v4431_v2 = vpack.c.bf16 %v3853_v0, %v588_v1  ;;  %v812_v1 = vld [vmem:[%s6287_s8 + $0x20] sm:$0xff] }
 0x1e1   :  { %v3856_v3 = vpop.f32.mrb[8].mxu1  ;;  %4432 = vmatprep.subr.bf16.mxu0 %v4431_v2 }
 0x1e2   :  { %v598_v4 = vpop.f32.mrb[9].mxu1  ;;  %4434 = vmatpush3.bf16.msra.mxu0 %v4431_v2 }
 0x1e3   :  { %v4435_v5 = vpack.c.bf16 %v3856_v3, %v598_v4  ;;  %v845_v4 = vld [vmem:[%s6288_s9 + $0x28] sm:$0xff] }
 0x1e5   :  { %v3859_v6 = vpop.f32.mrb[10].mxu1  ;;  %4436 = vmatprep.subr.bf16.mxu0 %v4435_v5 }
 0x1e6   :  { %v608_v7 = vpop.f32.mrb[11].mxu1  ;;  %4438 = vmatpush3.bf16.msra.mxu0 %v4435_v5 }
 0x1e7   :  { %v4439_v8 = vpack.c.bf16 %v3859_v6, %v608_v7  ;;  %v844_v7 = vld [vmem:[%s6288_s9 + $0x20] sm:$0xff] }
 0x1e9   :  { %v3862_v9 = vpop.f32.mrb[12].mxu1  ;;  %4440 = vmatprep.subr.bf16.mxu0 %v4439_v8 }
 0x1ea   :  { %v618_v10 = vpop.f32.mrb[13].mxu1  ;;  %4442 = vmatpush3.bf16.msra.mxu0 %v4439_v8 }
 0x1eb   :  { %v4443_v11 = vpack.c.bf16 %v3862_v9, %v618_v10  ;;  %v815_v9 = vld [vmem:[%s6287_s8 + $0x38] sm:$0xff] }
 0x1ed   :  { %v3865_v12 = vpop.f32.mrb[14].mxu1  ;;  %4444 = vmatprep.subr.bf16.mxu0 %v4443_v11 }
 0x1ee   :  { %v628_v13 = vpop.f32.mrb[15].mxu1  ;;  %4446 = vmatpush3.bf16.msra.mxu0 %v4443_v11  ;;  %v814_v11 = vld [vmem:[%s6287_s8 + $0x30] sm:$0xff] }
 0x1ef   :  { %v4447_v14 = vpack.c.bf16 %v3865_v12, %v628_v13 }
 0x1f1   :  { %v3868_v17 = vpop.f32.mrb[16].mxu1  ;;  %4448 = vmatprep.subr.bf16.mxu0 %v4447_v14 }
 0x1f2   :  { %v638_v18 = vpop.f32.mrb[17].mxu1  ;;  %4450 = vmatpush3.bf16.msra.mxu0 %v4447_v14  ;;  %v847_v14 = vld [vmem:[%s6288_s9 + $0x38] sm:$0xff] }
 0x1f3   :  { %v4451_v19 = vpack.c.bf16 %v3868_v17, %v638_v18  ;;  %v846_v17 = vld [vmem:[%s6288_s9 + $0x30] sm:$0xff] }
 0x1f5   :  { %4452 = vmatprep.subr.bf16.mxu0 %v4451_v19 }
 0x1f6   :  { %4454 = vmatpush3.bf16.msra.mxu0 %v4451_v19  ;;  %v817_v19 = vld [vmem:[%s6287_s8 + $0x48] sm:$0xff] }
 0x1f7   :  { %4456 = vmatprep.subr.bf16.mxu0 %v4455_v20 }
 0x1f9   :  { %3902 = vmatmul.mubr.f32.vlgmr.msra.gmra.mrb[4].mxu0 %v648_v23 }
 0x1fa   :  { %3904 = vmatprep.mubr.f32.mxu0 %v649_v24  ;;  %4458 = vmatpush3.bf16.msra.mxu0 %v4455_v20 }
 0x1fb   :  { %4460 = vmatprep.subr.bf16.mxu0 %v4459_v25 }
 0x1fd   :  { %3905 = vmatmul.mubr.f32.gmra.mrb[6].mxu0 %v650_v26 }
 0x1fe   :  { %3907 = vmatprep.mubr.f32.mxu0 %v651_v27  ;;  %4462 = vmatpush3.bf16.msra.mxu0 %v4459_v25  ;;  %v849_v25 = vld [vmem:[%s6288_s9 + $0x48] sm:$0xff] }
 0x1ff   :  { %4464 = vmatprep.subr.bf16.mxu0 %v4463_v41 }
 0x201   :  { %3908 = vmatmul.mubr.f32.gmra.mrb[8].mxu0 %v652_v28 }
 0x202   :  { %3910 = vmatprep.mubr.f32.mxu0 %v653_v29  ;;  %4466 = vmatpush3.bf16.msra.mxu0 %v4463_v41  ;;  %v848_v29 = vld [vmem:[%s6288_s9 + $0x40] sm:$0xff]  ;;  %v850_v41 = vld [vmem:[%s6288_s9 + $0x50] sm:$0xff] }
 0x203   :  { %4468 = vmatprep.subr.bf16.mxu0 %v4467_v44 }
 0x205   :  { %3911 = vmatmul.mubr.f32.gmra.mrb[10].mxu0 %v654_v30 }
 0x206   :  { %3913 = vmatprep.mubr.f32.mxu0 %v655_v31  ;;  %4470 = vmatpush3.bf16.msra.mxu0 %v4467_v44  ;;  %v819_v31 = vld [vmem:[%s6287_s8 + $0x58] sm:$0xff] }
 0x209   :  { %3914 = vmatmul.mubr.f32.gmra.mrb[12].mxu0 %v656_v32 }
 0x20a   :  { %3916 = vmatprep.mubr.f32.mxu0 %v657_v33  ;;  %v818_v33 = vld [vmem:[%s6287_s8 + $0x50] sm:$0xff] }
 0x20d   :  { %3917 = vmatmul.mubr.f32.gmra.mrb[14].mxu0 %v658_v34 }
 0x20e   :  { %3919 = vmatprep.mubr.f32.mxu0 %v659_v35 }
 0x211   :  { %3920 = vmatmul.mubr.f32.gmra.mrb[16].mxu0 %v660_v36 }
 0x212   :  { %3922 = vmatprep.mubr.f32.mxu0 %v661_v37  ;;  %v851_v37 = vld [vmem:[%s6288_s9 + $0x58] sm:$0xff] }
 0x215   :  { %3923 = vmatmul.mubr.f32.gmra.mrb[18].mxu0 %v662_v38 }
 0x2cc   :  { %v3903_v47 = vpop.f32.mrb[4].mxu0 }
 0x2cd   :  { %v825_v49 = vmul.f32 %v3903_v47, %v809_v45  ;;  %v729_v50 = vpop.f32.mrb[5].mxu0  ;;  %v820_v45 = vld [vmem:[%s6287_s8 + $0x60] sm:$0xff] }
 0x2ce   :  { %v824_v52 = vmul.f32 %v808_v46, %v729_v50 }
 0x2cf   :  { %v857_v54 = vadd.f32 %v841_v48, %v825_v49  ;;  %v853_v49 = vld [vmem:[%s6288_s9 + $0x68] sm:$0xff] }
 0x2d0   :  { %v856_v56 = vadd.f32 %v840_v51, %v824_v52  ;;  %v3906_v57 = vpop.f32.mrb[6].mxu0 }
 0x2d1   :  { %v827_v59 = vmul.f32 %v3906_v57, %v811_v53  ;;  %v739_v60 = vpop.f32.mrb[7].mxu0  ;;  %v852_v53 = vld [vmem:[%s6288_s9 + $0x60] sm:$0xff]  ;;  %v822_v57 = vld [vmem:[%s6287_s8 + $0x70] sm:$0xff] }
 0x2d2   :  { %4714 = vtanh.f32 %v856_v56  ;;  %v826_v62 = vmul.f32 %v810_v55, %v739_v60  ;;  %v823_v55 = vld [vmem:[%s6287_s8 + $0x78] sm:$0xff] }
 0x2d3   :  { %4716 = vtanh.f32 %v857_v54  ;;  %v859_v0 = vadd.f32 %v843_v58, %v827_v59 }
 0x2d4   :  { %v858_v2 = vadd.f32 %v842_v61, %v826_v62  ;;  %v3909_v3 = vpop.f32.mrb[8].mxu0  ;;  %v855_v61 = vld [vmem:[%s6288_s9 + $0x78] sm:$0xff] }
 0x2d5   :  { %v829_v5 = vmul.f32 %v3909_v3, %v813_v63  ;;  %v749_v6 = vpop.f32.mrb[9].mxu0 }
 0x2d6   :  { %4718 = vtanh.f32 %v858_v2  ;;  %v828_v8 = vmul.f32 %v812_v1, %v749_v6  ;;  %v854_v1 = vld [vmem:[%s6288_s9 + $0x70] sm:$0xff] }
 0x2d7   :  { %4720 = vtanh.f32 %v859_v0  ;;  %v861_v10 = vadd.f32 %v845_v4, %v829_v5 }
 0x2d8   :  { %v860_v12 = vadd.f32 %v844_v7, %v828_v8  ;;  %v3912_v13 = vpop.f32.mrb[10].mxu0 }
 0x2d9   :  { %v831_v15 = vmul.f32 %v3912_v13, %v815_v9  ;;  %v759_v16 = vpop.f32.mrb[11].mxu0  ;;  %v3146_v13 = vld [vmem:[%s6285_s7 + $0x80] sm:$0xff] }
 0x2da   :  { %4722 = vtanh.f32 %v860_v12  ;;  %v830_v18 = vmul.f32 %v814_v11, %v759_v16  ;;  %3997 = vmatprep.mubr.f32.mxu1 %v3146_v13  ;;  %v3196_v16 = vld [vmem:[%s6286_s6 + $0x50] sm:$0xff] }
 0x2db   :  { %4724 = vtanh.f32 %v861_v10  ;;  %v863_v20 = vadd.f32 %v847_v14, %v831_v15  ;;  %v3194_v14 = vld [vmem:[%s6286_s6 + $0x40] sm:$0xff]  ;;  %v3195_v15 = vld [vmem:[%s6286_s6 + $0x48] sm:$0xff] }
 0x2dc   :  { %v5242_v22 = vpop.eup %4714  ;;  %v862_v23 = vadd.f32 %v846_v17, %v830_v18  ;;  %v3915_v24 = vpop.f32.mrb[12].mxu0  ;;  %v4503_v17 = vpack.c.bf16 %v3195_v15, %v3194_v14  ;;  %v3197_v18 = vld [vmem:[%s6286_s6 + $0x58] sm:$0xff]  ;;  %v3200_v14 = vld [vmem:[%s6286_s6 + $0x70] sm:$0xff] }
 0x2dd   :  { %v5247_v26 = vpop.eup %4716  ;;  %v833_v27 = vmul.f32 %v3915_v24, %v817_v19  ;;  %v769_v28 = vpop.f32.mrb[13].mxu0  ;;  %3941 = vmatprep.mubr.msk.f32.mxu0 %vm896_vm4, %v5242_v22  ;;  %v4507_v19 = vpack.c.bf16 %v3197_v18, %v3196_v16  ;;  %v3201_v15 = vld [vmem:[%s6286_s6 + $0x78] sm:$0xff]  ;;  %v3162_v18 = vld [vmem:[%s6287_s8 + $0x80] sm:$0xff] }
 0x2de   :  { %4726 = vtanh.f32 %v862_v23  ;;  %v832_v30 = vmul.f32 %v816_v21, %v769_v28  ;;  %3942 = vmatmul.mubr.msk.f32.vlgmr.msra.gmra.mrb[20].mxu0 %vm896_vm4, %v5247_v26  ;;  %4504 = vmatprep.subr.bf16.mxu0 %v4503_v17  ;;  %v4515_v16 = vpack.c.bf16 %v3201_v15, %v3200_v14 }
 0x2df   :  { %4728 = vtanh.f32 %v863_v20  ;;  %v865_v32 = vadd.f32 %v849_v25, %v833_v27  ;;  %4506 = vmatpush3.bf16.msra.mxu0 %v4503_v17  ;;  %v3163_v17 = vld [vmem:[%s6287_s8 + $0x88] sm:$0xff] }
 0x2e0   :  { %v5262_v34 = vpop.eup %4718  ;;  %v864_v35 = vadd.f32 %v848_v29, %v832_v30  ;;  %v3918_v36 = vpop.f32.mrb[14].mxu0  ;;  %4508 = vmatprep.subr.bf16.mxu0 %v4507_v19 }
 0x2e1   :  { %v5267_v38 = vpop.eup %4720  ;;  %v835_v39 = vmul.f32 %v3918_v36, %v819_v31  ;;  %v779_v40 = vpop.f32.mrb[15].mxu0  ;;  %3944 = vmatprep.mubr.msk.f32.mxu0 %vm896_vm4, %v5262_v34 }
 0x2e2   :  { %4730 = vtanh.f32 %v864_v35  ;;  %v834_v42 = vmul.f32 %v818_v33, %v779_v40  ;;  %3945 = vmatmul.mubr.msk.f32.gmra.mrb[22].mxu0 %vm896_vm4, %v5267_v38 }
 0x2e3   :  { %4732 = vtanh.f32 %v865_v32  ;;  %v867_v44 = vadd.f32 %v851_v37, %v835_v39  ;;  %4510 = vmatpush3.bf16.msra.mxu0 %v4507_v19 }
 0x2e4   :  { %v5282_v46 = vpop.eup %4722  ;;  %v866_v47 = vadd.f32 %v850_v41, %v834_v42  ;;  %v3921_v48 = vpop.f32.mrb[16].mxu0 }
 0x2e5   :  { %v5287_v50 = vpop.eup %4724  ;;  %v837_v51 = vmul.f32 %v3921_v48, %v821_v43  ;;  %v789_v52 = vpop.f32.mrb[17].mxu0  ;;  %3947 = vmatprep.mubr.msk.f32.mxu0 %vm896_vm4, %v5282_v46 }
 0x2e6   :  { %4734 = vtanh.f32 %v866_v47  ;;  %v836_v54 = vmul.f32 %v820_v45, %v789_v52  ;;  %3948 = vmatmul.mubr.msk.f32.gmra.mrb[24].mxu0 %vm896_vm4, %v5287_v50  ;;  %v3149_v52 = vld [vmem:[%s6285_s7 + $0x98] sm:$0xff] }
 0x2e7   :  { %4736 = vtanh.f32 %v867_v44  ;;  %v869_v56 = vadd.f32 %v853_v49, %v837_v51  ;;  %v3147_v49 = vld [vmem:[%s6285_s7 + $0x88] sm:$0xff]  ;;  %v3148_v51 = vld [vmem:[%s6285_s7 + $0x90] sm:$0xff] }
 0x2e8   :  { %v5302_v58 = vpop.eup %4726  ;;  %v868_v59 = vadd.f32 %v852_v53, %v836_v54  ;;  %v3924_v60 = vpop.f32.mrb[18].mxu0  ;;  %v3150_v53 = vld [vmem:[%s6285_s7 + $0xa0] sm:$0xff]  ;;  %v3151_v54 = vld [vmem:[%s6285_s7 + $0xa8] sm:$0xff] }
 0x2e9   :  { %v5307_v62 = vpop.eup %4728  ;;  %v839_v63 = vmul.f32 %v3924_v60, %v823_v55  ;;  %v799_v0 = vpop.f32.mrb[19].mxu0  ;;  %3950 = vmatprep.mubr.msk.f32.mxu0 %vm896_vm4, %v5302_v58  ;;  %v3152_v55 = vld [vmem:[%s6285_s7 + $0xb0] sm:$0xff] }
 0x2ea   :  { %4738 = vtanh.f32 %v868_v59  ;;  %v838_v2 = vmul.f32 %v822_v57, %v799_v0  ;;  %3951 = vmatmul.mubr.msk.f32.gmra.mrb[26].mxu0 %vm896_vm4, %v5307_v62  ;;  %v3154_v57 = vld [vmem:[%s6285_s7 + $0xc0] sm:$0xff]  ;;  %v3155_v59 = vld [vmem:[%s6285_s7 + $0xc8] sm:$0xff]  ;;  %v3156_v60 = vld [vmem:[%s6285_s7 + $0xd0] sm:$0xff] }
 0x2eb   :  { %4740 = vtanh.f32 %v869_v56  ;;  %v871_v3 = vadd.f32 %v855_v61, %v839_v63  ;;  %v3153_v56 = vld [vmem:[%s6285_s7 + $0xb8] sm:$0xff]  ;;  %v3158_v63 = vld [vmem:[%s6285_s7 + $0xe0] sm:$0xff]  ;;  %v3159_v0 = vld [vmem:[%s6285_s7 + $0xe8] sm:$0xff] }
 0x2ec   :  { %v5316_v4 = vpop.eup %4730  ;;  %v870_v5 = vadd.f32 %v854_v1, %v838_v2  ;;  %v3157_v61 = vld [vmem:[%s6285_s7 + $0xd8] sm:$0xff]  ;;  %v3160_v1 = vld [vmem:[%s6285_s7 + $0xf0] sm:$0xff] }
 0x2ed   :  { %v5318_v6 = vpop.eup %4732  ;;  %3953 = vmatprep.mubr.msk.f32.mxu0 %vm896_vm4, %v5316_v4  ;;  %v3161_v2 = vld [vmem:[%s6285_s7 + $0xf8] sm:$0xff] }
 0x2ee   :  { %4742 = vtanh.f32 %v870_v5  ;;  %3954 = vmatmul.mubr.msk.f32.gmra.mrb[28].mxu0 %vm896_vm4, %v5318_v6  ;;  %v3199_v5 = vld [vmem:[%s6286_s6 + $0x68] sm:$0xff] }
 0x2ef   :  { %4744 = vtanh.f32 %v871_v3  ;;  %v3198_v3 = vld [vmem:[%s6286_s6 + $0x60] sm:$0xff] }
 0x2f0   :  { %v5324_v7 = vpop.eup %4734  ;;  %v4511_v13 = vpack.c.bf16 %v3199_v5, %v3198_v3 }
 0x2f1   :  { %v5326_v8 = vpop.eup %4736  ;;  %3956 = vmatprep.mubr.msk.f32.mxu0 %vm896_vm4, %v5324_v7 }
 0x2f2   :  { %3957 = vmatmul.mubr.msk.f32.gmra.mrb[30].mxu0 %vm896_vm4, %v5326_v8  ;;  %4512 = vmatprep.subr.bf16.mxu0 %v4511_v13 }
 0x2f3   :  { %4514 = vmatpush3.bf16.msra.mxu0 %v4511_v13  ;;  %v3187_v13 = vld [vmem:[%s6288_s9 + $0xc8] sm:$0xff] }
 0x2f4   :  { %v5332_v9 = vpop.eup %4738  ;;  %4516 = vmatprep.subr.bf16.mxu0 %v4515_v16 }
 0x2f5   :  { %v5334_v10 = vpop.eup %4740  ;;  %3959 = vmatprep.mubr.msk.f32.mxu0 %vm896_vm4, %v5332_v9 }
 0x2f6   :  { %3960 = vmatmul.mubr.msk.f32.gmra.mrb[32].mxu0 %vm896_vm4, %v5334_v10 }
 0x2f7   :  { %4518 = vmatpush3.bf16.msra.mxu0 %v4515_v16 }
 0x2f8   :  { %v5340_v11 = vpop.eup %4742 }
 0x2f9   :  { %v5342_v12 = vpop.eup %4744  ;;  %3962 = vmatprep.mubr.msk.f32.mxu0 %vm896_vm4, %v5340_v11 }
 0x2fa   :  { %3963 = vmatmul.mubr.msk.f32.gmra.mrb[34].mxu0 %vm896_vm4, %v5342_v12 }
 0x3b1   :  { %v3943_v20 = vpop.f32.mrb[20].mxu0 }
 0x3b2   :  { %v1011_v21 = vpop.f32.mrb[21].mxu0 }
 0x3b3   :  { %v4471_v23 = vpack.c.bf16 %v3943_v20, %v1011_v21  ;;  %v3179_v20 = vld [vmem:[%s6288_s9 + $0x88] sm:$0xff] }
 0x3b5   :  { %v3946_v24 = vpop.f32.mrb[22].mxu0  ;;  %4472 = vmatprep.subr.bf16.mxu1 %v4471_v23 }
 0x3b6   :  { %v1021_v25 = vpop.f32.mrb[23].mxu0  ;;  %4474 = vmatpush3.bf16.msra.mxu1 %v4471_v23 }
 0x3b7   :  { %v4475_v27 = vpack.c.bf16 %v3946_v24, %v1021_v25  ;;  %v3178_v24 = vld [vmem:[%s6288_s9 + $0x80] sm:$0xff] }
 0x3b9   :  { %v3949_v28 = vpop.f32.mrb[24].mxu0  ;;  %4476 = vmatprep.subr.bf16.mxu1 %v4475_v27 }
 0x3ba   :  { %v1031_v29 = vpop.f32.mrb[25].mxu0  ;;  %4478 = vmatpush3.bf16.msra.mxu1 %v4475_v27  ;;  %v3165_v27 = vld [vmem:[%s6287_s8 + $0x98] sm:$0xff] }
 0x3bb   :  { %v4479_v30 = vpack.c.bf16 %v3949_v28, %v1031_v29  ;;  %v3164_v29 = vld [vmem:[%s6287_s8 + $0x90] sm:$0xff] }
 0x3bd   :  { %v3952_v31 = vpop.f32.mrb[26].mxu0  ;;  %4480 = vmatprep.subr.bf16.mxu1 %v4479_v30 }
 0x3be   :  { %v1041_v32 = vpop.f32.mrb[27].mxu0  ;;  %4482 = vmatpush3.bf16.msra.mxu1 %v4479_v30 }
 0x3bf   :  { %v4483_v33 = vpack.c.bf16 %v3952_v31, %v1041_v32  ;;  %v3181_v32 = vld [vmem:[%s6288_s9 + $0x98] sm:$0xff] }
 0x3c1   :  { %v3955_v35 = vpop.f32.mrb[28].mxu0  ;;  %4484 = vmatprep.subr.bf16.mxu1 %v4483_v33 }
 0x3c2   :  { %v1051_v36 = vpop.f32.mrb[29].mxu0  ;;  %4486 = vmatpush3.bf16.msra.mxu1 %v4483_v33 }
 0x3c3   :  { %v4487_v37 = vpack.c.bf16 %v3955_v35, %v1051_v36  ;;  %v3180_v36 = vld [vmem:[%s6288_s9 + $0x90] sm:$0xff] }
 0x3c5   :  { %v3958_v39 = vpop.f32.mrb[30].mxu0  ;;  %4488 = vmatprep.subr.bf16.mxu1 %v4487_v37 }
 0x3c6   :  { %v1061_v40 = vpop.f32.mrb[31].mxu0  ;;  %4490 = vmatpush3.bf16.msra.mxu1 %v4487_v37 }
 0x3c7   :  { %v4491_v41 = vpack.c.bf16 %v3958_v39, %v1061_v40  ;;  %v3167_v39 = vld [vmem:[%s6287_s8 + $0xa8] sm:$0xff] }
 0x3c9   :  { %v3961_v42 = vpop.f32.mrb[32].mxu0  ;;  %4492 = vmatprep.subr.bf16.mxu1 %v4491_v41 }
 0x3ca   :  { %v1071_v43 = vpop.f32.mrb[33].mxu0  ;;  %4494 = vmatpush3.bf16.msra.mxu1 %v4491_v41  ;;  %v3166_v41 = vld [vmem:[%s6287_s8 + $0xa0] sm:$0xff] }
 0x3cb   :  { %v4495_v44 = vpack.c.bf16 %v3961_v42, %v1071_v43 }
 0x3cd   :  { %v3964_v45 = vpop.f32.mrb[34].mxu0  ;;  %4496 = vmatprep.subr.bf16.mxu1 %v4495_v44 }
 0x3ce   :  { %v1081_v47 = vpop.f32.mrb[35].mxu0  ;;  %4498 = vmatpush3.bf16.msra.mxu1 %v4495_v44  ;;  %v3183_v44 = vld [vmem:[%s6288_s9 + $0xa8] sm:$0xff] }
 0x3cf   :  { %v4499_v48 = vpack.c.bf16 %v3964_v45, %v1081_v47 }
 0x3d1   :  { %4500 = vmatprep.subr.bf16.mxu1 %v4499_v48 }
 0x3d2   :  { %4502 = vmatpush3.bf16.msra.mxu1 %v4499_v48  ;;  %v3182_v48 = vld [vmem:[%s6288_s9 + $0xa0] sm:$0xff] }
 0x3d5   :  { %3998 = vmatmul.mubr.f32.vlgmr.msra.gmra.mrb[18].mxu1 %v3147_v49 }
 0x3d6   :  { %4000 = vmatprep.mubr.f32.mxu1 %v3148_v51  ;;  %v3169_v51 = vld [vmem:[%s6287_s8 + $0xb8] sm:$0xff] }
 0x3d9   :  { %4001 = vmatmul.mubr.f32.gmra.mrb[20].mxu1 %v3149_v52 }
 0x3da   :  { %4003 = vmatprep.mubr.f32.mxu1 %v3150_v53  ;;  %v3168_v53 = vld [vmem:[%s6287_s8 + $0xb0] sm:$0xff] }
 0x3dd   :  { %4004 = vmatmul.mubr.f32.gmra.mrb[22].mxu1 %v3151_v54 }
 0x3de   :  { %4006 = vmatprep.mubr.f32.mxu1 %v3152_v55 }
 0x3e1   :  { %4007 = vmatmul.mubr.f32.gmra.mrb[24].mxu1 %v3153_v56  ;;  %v3185_v56 = vld [vmem:[%s6288_s9 + $0xb8] sm:$0xff] }
 0x3e2   :  { %4009 = vmatprep.mubr.f32.mxu1 %v3154_v57 }
 0x3e5   :  { %4010 = vmatmul.mubr.f32.gmra.mrb[26].mxu1 %v3155_v59 }
 0x3e6   :  { %4012 = vmatprep.mubr.f32.mxu1 %v3156_v60  ;;  %v3184_v60 = vld [vmem:[%s6288_s9 + $0xb0] sm:$0xff] }
 0x3e9   :  { %4013 = vmatmul.mubr.f32.gmra.mrb[28].mxu1 %v3157_v61 }
 0x3ea   :  { %4015 = vmatprep.mubr.f32.mxu1 %v3158_v63  ;;  %v3171_v63 = vld [vmem:[%s6287_s8 + $0xc8] sm:$0xff] }
 0x3ed   :  { %4016 = vmatmul.mubr.f32.gmra.mrb[30].mxu1 %v3159_v0 }
 0x3ee   :  { %4018 = vmatprep.mubr.f32.mxu1 %v3160_v1  ;;  %v3170_v1 = vld [vmem:[%s6287_s8 + $0xc0] sm:$0xff] }
 0x3f1   :  { %4019 = vmatmul.mubr.f32.gmra.mrb[32].mxu1 %v3161_v2 }
 0x4a8   :  { %v3999_v19 = vpop.f32.mrb[18].mxu1 }
 0x4a9   :  { %v1270_v21 = vmul.f32 %v3999_v19, %v3163_v17  ;;  %v1173_v23 = vpop.f32.mrb[19].mxu1  ;;  %v3186_v17 = vld [vmem:[%s6288_s9 + $0xc0] sm:$0xff]  ;;  %v3173_v19 = vld [vmem:[%s6287_s8 + $0xd8] sm:$0xff] }
 0x4aa   :  { %v1269_v25 = vmul.f32 %v3162_v18, %v1173_v23 }
 0x4ab   :  { %v1303_v28 = vadd.f32 %v3179_v20, %v1270_v21  ;;  %v3172_v21 = vld [vmem:[%s6287_s8 + $0xd0] sm:$0xff] }
 0x4ac   :  { %v1302_v30 = vadd.f32 %v3178_v24, %v1269_v25  ;;  %v4002_v31 = vpop.f32.mrb[20].mxu1 }
 0x4ad   :  { %v1272_v33 = vmul.f32 %v4002_v31, %v3165_v27  ;;  %v1183_v35 = vpop.f32.mrb[21].mxu1  ;;  %v3189_v27 = vld [vmem:[%s6288_s9 + $0xd8] sm:$0xff]  ;;  %v3188_v31 = vld [vmem:[%s6288_s9 + $0xd0] sm:$0xff] }
 0x4ae   :  { %4746 = vtanh.f32 %v1302_v30  ;;  %v1271_v37 = vmul.f32 %v3164_v29, %v1183_v35 }
 0x4af   :  { %4748 = vtanh.f32 %v1303_v28  ;;  %v1305_v40 = vadd.f32 %v3181_v32, %v1272_v33  ;;  %v3175_v33 = vld [vmem:[%s6287_s8 + $0xe8] sm:$0xff] }
 0x4b0   :  { %v1304_v42 = vadd.f32 %v3180_v36, %v1271_v37  ;;  %v4005_v43 = vpop.f32.mrb[22].mxu1  ;;  %v3174_v36 = vld [vmem:[%s6287_s8 + $0xe0] sm:$0xff] }
 0x4b1   :  { %v1274_v45 = vmul.f32 %v4005_v43, %v3167_v39  ;;  %v1193_v47 = vpop.f32.mrb[23].mxu1 }
 0x4b2   :  { %4750 = vtanh.f32 %v1304_v42  ;;  %v1273_v49 = vmul.f32 %v3166_v41, %v1193_v47  ;;  %v3191_v41 = vld [vmem:[%s6288_s9 + $0xe8] sm:$0xff] }
 0x4b3   :  { %4752 = vtanh.f32 %v1305_v40  ;;  %v1307_v52 = vadd.f32 %v3183_v44, %v1274_v45  ;;  %v3190_v45 = vld [vmem:[%s6288_s9 + $0xe0] sm:$0xff] }
 0x4b4   :  { %v1306_v54 = vadd.f32 %v3182_v48, %v1273_v49  ;;  %v4008_v55 = vpop.f32.mrb[24].mxu1  ;;  %v3177_v48 = vld [vmem:[%s6287_s8 + $0xf8] sm:$0xff] }
 0x4b5   :  { %v1276_v57 = vmul.f32 %v4008_v55, %v3169_v51  ;;  %v1203_v59 = vpop.f32.mrb[25].mxu1  ;;  %v3176_v51 = vld [vmem:[%s6287_s8 + $0xf0] sm:$0xff]  ;;  %v3193_v55 = vld [vmem:[%s6288_s9 + $0xf8] sm:$0xff] }
 0x4b6   :  { %4754 = vtanh.f32 %v1306_v54  ;;  %v1275_v61 = vmul.f32 %v3168_v53, %v1203_v59 }
 0x4b7   :  { %4756 = vtanh.f32 %v1307_v52  ;;  %v1309_v0 = vadd.f32 %v3185_v56, %v1276_v57 }
 0x4b8   :  { %v4747_v2 = vpop.eup %4746  ;;  %v1308_v3 = vadd.f32 %v3184_v60, %v1275_v61  ;;  %v4011_v5 = vpop.f32.mrb[26].mxu1  ;;  %v3192_v60 = vld [vmem:[%s6288_s9 + $0xf0] sm:$0xff] }
 0x4b9   :  { %v4749_v14 = vpop.eup %4748  ;;  %v1278_v15 = vmul.f32 %v4011_v5, %v3171_v63  ;;  %v1213_v16 = vpop.f32.mrb[27].mxu1  ;;  %4037 = vmatprep.mubr.msk.f32.mxu0 %vm896_vm4, %v4747_v2 }
 0x4ba   :  { %4758 = vtanh.f32 %v1308_v3  ;;  %v1277_v18 = vmul.f32 %v3170_v1, %v1213_v16  ;;  %4038 = vmatmul.mubr.msk.f32.vlgmr.msra.gmra.mrb[36].mxu0 %vm896_vm4, %v4749_v14 }
 0x4bb   :  { %4760 = vtanh.f32 %v1309_v0  ;;  %v1311_v20 = vadd.f32 %v3187_v13, %v1278_v15 }
 0x4bc   :  { %v4751_v23 = vpop.eup %4750  ;;  %v1310_v24 = vadd.f32 %v3186_v17, %v1277_v18  ;;  %v4014_v25 = vpop.f32.mrb[28].mxu1  ;;  %v3218_v17 = vld [vmem:[%s6285_s7 + $0x100] sm:$0xff] }
 0x4bd   :  { %v4753_v28 = vpop.eup %4752  ;;  %v1280_v29 = vmul.f32 %v4014_v25, %v3173_v19  ;;  %v1223_v30 = vpop.f32.mrb[29].mxu1  ;;  %4040 = vmatprep.mubr.msk.f32.mxu0 %vm896_vm4, %v4751_v23  ;;  %4093 = vmatprep.mubr.f32.mxu1 %v3218_v17  ;;  %v3266_v18 = vld [vmem:[%s6286_s6 + $0x80] sm:$0xff]  ;;  %v3267_v19 = vld [vmem:[%s6286_s6 + $0x88] sm:$0xff]  ;;  %v3269_v23 = vld [vmem:[%s6286_s6 + $0x98] sm:$0xff] }
 0x4be   :  { %4762 = vtanh.f32 %v1310_v24  ;;  %v1279_v32 = vmul.f32 %v3172_v21, %v1223_v30  ;;  %4041 = vmatmul.mubr.msk.f32.gmra.mrb[38].mxu0 %vm896_vm4, %v4753_v28  ;;  %v4551_v21 = vpack.c.bf16 %v3267_v19, %v3266_v18  ;;  %v3272_v18 = vld [vmem:[%s6286_s6 + $0xb0] sm:$0xff]  ;;  %v3273_v19 = vld [vmem:[%s6286_s6 + $0xb8] sm:$0xff] }
 0x4bf   :  { %4764 = vtanh.f32 %v1311_v20  ;;  %v1313_v35 = vadd.f32 %v3189_v27, %v1280_v29  ;;  %v3268_v20 = vld [vmem:[%s6286_s6 + $0x90] sm:$0xff] }
 0x4c0   :  { %v4755_v37 = vpop.eup %4754  ;;  %v1312_v39 = vadd.f32 %v3188_v31, %v1279_v32  ;;  %v4017_v40 = vpop.f32.mrb[30].mxu1  ;;  %v4555_v24 = vpack.c.bf16 %v3269_v23, %v3268_v20  ;;  %4552 = vmatprep.subr.bf16.mxu0 %v4551_v21  ;;  %v4563_v20 = vpack.c.bf16 %v3273_v19, %v3272_v18  ;;  %v3234_v23 = vld [vmem:[%s6287_s8 + $0x100] sm:$0xff]  ;;  %v3259_v18 = vld [vmem:[%s6288_s9 + $0x148] sm:$0xff] }
 0x4c1   :  { %v4757_v42 = vpop.eup %4756  ;;  %v1282_v43 = vmul.f32 %v4017_v40, %v3175_v33  ;;  %v1233_v44 = vpop.f32.mrb[31].mxu1  ;;  %4043 = vmatprep.mubr.msk.f32.mxu0 %vm896_vm4, %v4755_v37  ;;  %4554 = vmatpush3.bf16.msra.mxu0 %v4551_v21  ;;  %v3235_v21 = vld [vmem:[%s6287_s8 + $0x108] sm:$0xff] }
 0x4c2   :  { %4766 = vtanh.f32 %v1312_v39  ;;  %v1281_v47 = vmul.f32 %v3174_v36, %v1233_v44  ;;  %4044 = vmatmul.mubr.msk.f32.gmra.mrb[40].mxu0 %vm896_vm4, %v4757_v42  ;;  %4556 = vmatprep.subr.bf16.mxu0 %v4555_v24 }
 0x4c3   :  { %4768 = vtanh.f32 %v1313_v35  ;;  %v1315_v49 = vadd.f32 %v3191_v41, %v1282_v43 }
 0x4c4   :  { %v4759_v52 = vpop.eup %4758  ;;  %v1314_v53 = vadd.f32 %v3190_v45, %v1281_v47  ;;  %v4020_v54 = vpop.f32.mrb[32].mxu1 }
 0x4c5   :  { %v4761_v56 = vpop.eup %4760  ;;  %v1284_v57 = vmul.f32 %v4020_v54, %v3177_v48  ;;  %v1243_v59 = vpop.f32.mrb[33].mxu1  ;;  %4046 = vmatprep.mubr.msk.f32.mxu0 %vm896_vm4, %v4759_v52  ;;  %4558 = vmatpush3.bf16.msra.mxu0 %v4555_v24  ;;  %v3219_v54 = vld [vmem:[%s6285_s7 + $0x108] sm:$0xff] }
 0x4c6   :  { %4770 = vtanh.f32 %v1314_v53  ;;  %v1283_v61 = vmul.f32 %v3176_v51, %v1243_v59  ;;  %4047 = vmatmul.mubr.msk.f32.gmra.mrb[42].mxu0 %vm896_vm4, %v4761_v56  ;;  %v3221_v56 = vld [vmem:[%s6285_s7 + $0x118] sm:$0xff]  ;;  %v3223_v59 = vld [vmem:[%s6285_s7 + $0x128] sm:$0xff] }
 0x4c7   :  { %4772 = vtanh.f32 %v1315_v49  ;;  %v1317_v63 = vadd.f32 %v3193_v55, %v1284_v57  ;;  %v3220_v55 = vld [vmem:[%s6285_s7 + $0x110] sm:$0xff]  ;;  %v3222_v57 = vld [vmem:[%s6285_s7 + $0x120] sm:$0xff] }
 0x4c8   :  { %v4763_v0 = vpop.eup %4762  ;;  %v1316_v1 = vadd.f32 %v3192_v60, %v1283_v61  ;;  %v3224_v60 = vld [vmem:[%s6285_s7 + $0x130] sm:$0xff]  ;;  %v3225_v61 = vld [vmem:[%s6285_s7 + $0x138] sm:$0xff] }
 0x4c9   :  { %v4765_v2 = vpop.eup %4764  ;;  %4049 = vmatprep.mubr.msk.f32.mxu0 %vm896_vm4, %v4763_v0  ;;  %v3227_v0 = vld [vmem:[%s6285_s7 + $0x148] sm:$0xff] }
 0x4ca   :  { %4774 = vtanh.f32 %v1316_v1  ;;  %4050 = vmatmul.mubr.msk.f32.gmra.mrb[44].mxu0 %vm896_vm4, %v4765_v2  ;;  %v3228_v1 = vld [vmem:[%s6285_s7 + $0x150] sm:$0xff]  ;;  %v3229_v2 = vld [vmem:[%s6285_s7 + $0x158] sm:$0xff] }
 0x4cb   :  { %4776 = vtanh.f32 %v1317_v63  ;;  %v3226_v63 = vld [vmem:[%s6285_s7 + $0x140] sm:$0xff] }
 0x4cc   :  { %v4767_v3 = vpop.eup %4766 }
 0x4cd   :  { %v4769_v5 = vpop.eup %4768  ;;  %4052 = vmatprep.mubr.msk.f32.mxu0 %vm896_vm4, %v4767_v3  ;;  %v3230_v3 = vld [vmem:[%s6285_s7 + $0x160] sm:$0xff] }
 0x4ce   :  { %4053 = vmatmul.mubr.msk.f32.gmra.mrb[46].mxu0 %vm896_vm4, %v4769_v5  ;;  %v3231_v5 = vld [vmem:[%s6285_s7 + $0x168] sm:$0xff] }
 0x4d0   :  { %v4771_v13 = vpop.eup %4770 }
 0x4d1   :  { %v4773_v14 = vpop.eup %4772  ;;  %4055 = vmatprep.mubr.msk.f32.mxu0 %vm896_vm4, %v4771_v13  ;;  %v3232_v13 = vld [vmem:[%s6285_s7 + $0x170] sm:$0xff] }
 0x4d2   :  { %4056 = vmatmul.mubr.msk.f32.gmra.mrb[48].mxu0 %vm896_vm4, %v4773_v14  ;;  %v3233_v14 = vld [vmem:[%s6285_s7 + $0x178] sm:$0xff] }
 0x4d4   :  { %v4775_v15 = vpop.eup %4774 }
 0x4d5   :  { %v4777_v16 = vpop.eup %4776  ;;  %4058 = vmatprep.mubr.msk.f32.mxu0 %vm896_vm4, %v4775_v15  ;;  %v3270_v15 = vld [vmem:[%s6286_s6 + $0xa0] sm:$0xff] }
 0x4d6   :  { %4059 = vmatmul.mubr.msk.f32.gmra.mrb[50].mxu0 %vm896_vm4, %v4777_v16  ;;  %v3271_v16 = vld [vmem:[%s6286_s6 + $0xa8] sm:$0xff] }
 0x4d7   :  { %v4559_v17 = vpack.c.bf16 %v3271_v16, %v3270_v15 }
 0x4d9   :  { %4560 = vmatprep.subr.bf16.mxu0 %v4559_v17 }
 0x4da   :  { %4562 = vmatpush3.bf16.msra.mxu0 %v4559_v17 }
 0x4db   :  { %4564 = vmatprep.subr.bf16.mxu0 %v4563_v20 }
 0x4de   :  { %4566 = vmatpush3.bf16.msra.mxu0 %v4563_v20 }
 0x58d   :  { %v4039_v25 = vpop.f32.mrb[36].mxu0 }
 0x58e   :  { %v1457_v27 = vpop.f32.mrb[37].mxu0 }
 0x58f   :  { %v4519_v28 = vpack.c.bf16 %v4039_v25, %v1457_v27  ;;  %v3251_v25 = vld [vmem:[%s6288_s9 + $0x108] sm:$0xff] }
 0x591   :  { %v4042_v29 = vpop.f32.mrb[38].mxu0  ;;  %4520 = vmatprep.subr.bf16.mxu1 %v4519_v28 }
 0x592   :  { %v1467_v30 = vpop.f32.mrb[39].mxu0  ;;  %4522 = vmatpush3.bf16.msra.mxu1 %v4519_v28 }
 0x593   :  { %v4523_v31 = vpack.c.bf16 %v4042_v29, %v1467_v30  ;;  %v3250_v29 = vld [vmem:[%s6288_s9 + $0x100] sm:$0xff] }
 0x595   :  { %v4045_v32 = vpop.f32.mrb[40].mxu0  ;;  %4524 = vmatprep.subr.bf16.mxu1 %v4523_v31 }
 0x596   :  { %v1477_v33 = vpop.f32.mrb[41].mxu0  ;;  %4526 = vmatpush3.bf16.msra.mxu1 %v4523_v31  ;;  %v3237_v31 = vld [vmem:[%s6287_s8 + $0x118] sm:$0xff] }
 0x597   :  { %v4527_v35 = vpack.c.bf16 %v4045_v32, %v1477_v33  ;;  %v3236_v33 = vld [vmem:[%s6287_s8 + $0x110] sm:$0xff] }
 0x599   :  { %v4048_v36 = vpop.f32.mrb[42].mxu0  ;;  %4528 = vmatprep.subr.bf16.mxu1 %v4527_v35 }
 0x59a   :  { %v1487_v37 = vpop.f32.mrb[43].mxu0  ;;  %4530 = vmatpush3.bf16.msra.mxu1 %v4527_v35 }
 0x59b   :  { %v4531_v39 = vpack.c.bf16 %v4048_v36, %v1487_v37  ;;  %v3253_v37 = vld [vmem:[%s6288_s9 + $0x118] sm:$0xff] }
 0x59d   :  { %v4051_v40 = vpop.f32.mrb[44].mxu0  ;;  %4532 = vmatprep.subr.bf16.mxu1 %v4531_v39 }
 0x59e   :  { %v1497_v41 = vpop.f32.mrb[45].mxu0  ;;  %4534 = vmatpush3.bf16.msra.mxu1 %v4531_v39 }
 0x59f   :  { %v4535_v42 = vpack.c.bf16 %v4051_v40, %v1497_v41  ;;  %v3252_v41 = vld [vmem:[%s6288_s9 + $0x110] sm:$0xff] }
 0x5a1   :  { %v4054_v43 = vpop.f32.mrb[46].mxu0  ;;  %4536 = vmatprep.subr.bf16.mxu1 %v4535_v42 }
 0x5a2   :  { %v1507_v44 = vpop.f32.mrb[47].mxu0  ;;  %4538 = vmatpush3.bf16.msra.mxu1 %v4535_v42 }
 0x5a3   :  { %v4539_v45 = vpack.c.bf16 %v4054_v43, %v1507_v44  ;;  %v3239_v43 = vld [vmem:[%s6287_s8 + $0x128] sm:$0xff] }
 0x5a5   :  { %v4057_v47 = vpop.f32.mrb[48].mxu0  ;;  %4540 = vmatprep.subr.bf16.mxu1 %v4539_v45 }
 0x5a6   :  { %v1517_v48 = vpop.f32.mrb[49].mxu0  ;;  %4542 = vmatpush3.bf16.msra.mxu1 %v4539_v45  ;;  %v3238_v45 = vld [vmem:[%s6287_s8 + $0x120] sm:$0xff] }
 0x5a7   :  { %v4543_v49 = vpack.c.bf16 %v4057_v47, %v1517_v48 }
 0x5a9   :  { %v4060_v51 = vpop.f32.mrb[50].mxu0  ;;  %4544 = vmatprep.subr.bf16.mxu1 %v4543_v49 }
 0x5aa   :  { %v1527_v52 = vpop.f32.mrb[51].mxu0  ;;  %4546 = vmatpush3.bf16.msra.mxu1 %v4543_v49  ;;  %v3255_v49 = vld [vmem:[%s6288_s9 + $0x128] sm:$0xff] }
 0x5ab   :  { %v4547_v53 = vpack.c.bf16 %v4060_v51, %v1527_v52 }
 0x5ad   :  { %4548 = vmatprep.subr.bf16.mxu1 %v4547_v53 }
 0x5ae   :  { %4550 = vmatpush3.bf16.msra.mxu1 %v4547_v53  ;;  %v3254_v53 = vld [vmem:[%s6288_s9 + $0x120] sm:$0xff] }
 0x5b1   :  { %4094 = vmatmul.mubr.f32.vlgmr.msra.gmra.mrb[34].mxu1 %v3219_v54 }
 0x5b2   :  { %4096 = vmatprep.mubr.f32.mxu1 %v3220_v55  ;;  %v3241_v55 = vld [vmem:[%s6287_s8 + $0x138] sm:$0xff] }
 0x5b5   :  { %4097 = vmatmul.mubr.f32.gmra.mrb[36].mxu1 %v3221_v56 }
 0x5b6   :  { %4099 = vmatprep.mubr.f32.mxu1 %v3222_v57  ;;  %v3240_v57 = vld [vmem:[%s6287_s8 + $0x130] sm:$0xff] }
 0x5b9   :  { %4100 = vmatmul.mubr.f32.gmra.mrb[38].mxu1 %v3223_v59 }
 0x5ba   :  { %4102 = vmatprep.mubr.f32.mxu1 %v3224_v60 }
 0x5bd   :  { %4103 = vmatmul.mubr.f32.gmra.mrb[40].mxu1 %v3225_v61  ;;  %v3257_v61 = vld [vmem:[%s6288_s9 + $0x138] sm:$0xff] }
 0x5be   :  { %4105 = vmatprep.mubr.f32.mxu1 %v3226_v63 }
 0x5c1   :  { %4106 = vmatmul.mubr.f32.gmra.mrb[42].mxu1 %v3227_v0 }
 0x5c2   :  { %4108 = vmatprep.mubr.f32.mxu1 %v3228_v1  ;;  %v3256_v1 = vld [vmem:[%s6288_s9 + $0x130] sm:$0xff] }
 0x5c5   :  { %4109 = vmatmul.mubr.f32.gmra.mrb[44].mxu1 %v3229_v2 }
 0x5c6   :  { %4111 = vmatprep.mubr.f32.mxu1 %v3230_v3  ;;  %v3243_v3 = vld [vmem:[%s6287_s8 + $0x148] sm:$0xff] }
 0x5c9   :  { %4112 = vmatmul.mubr.f32.gmra.mrb[46].mxu1 %v3231_v5 }
 0x5ca   :  { %4114 = vmatprep.mubr.f32.mxu1 %v3232_v13 }
 0x5cd   :  { %4115 = vmatmul.mubr.f32.gmra.mrb[48].mxu1 %v3233_v14  ;;  %v3242_v14 = vld [vmem:[%s6287_s8 + $0x140] sm:$0xff] }
 0x684   :  { %v4095_v24 = vpop.f32.mrb[34].mxu1 }
 0x685   :  { %v1716_v27 = vmul.f32 %v4095_v24, %v3235_v21  ;;  %v1619_v28 = vpop.f32.mrb[35].mxu1  ;;  %v3258_v21 = vld [vmem:[%s6288_s9 + $0x140] sm:$0xff] }
 0x686   :  { %v1715_v30 = vmul.f32 %v3234_v23, %v1619_v28 }
 0x687   :  { %v1749_v32 = vadd.f32 %v3251_v25, %v1716_v27  ;;  %v3245_v27 = vld [vmem:[%s6287_s8 + $0x158] sm:$0xff] }
 0x688   :  { %v1748_v35 = vadd.f32 %v3250_v29, %v1715_v30  ;;  %v4098_v36 = vpop.f32.mrb[36].mxu1  ;;  %v3244_v30 = vld [vmem:[%s6287_s8 + $0x150] sm:$0xff] }
 0x689   :  { %4778 = vtanh.f32 %v1749_v32  ;;  %v1718_v39 = vmul.f32 %v4098_v36, %v3237_v31  ;;  %v1629_v40 = vpop.f32.mrb[37].mxu1  ;;  %v3260_v36 = vld [vmem:[%s6288_s9 + $0x150] sm:$0xff] }
 0x68a   :  { %4780 = vtanh.f32 %v1748_v35  ;;  %v1717_v42 = vmul.f32 %v3236_v33, %v1629_v40  ;;  %v3247_v40 = vld [vmem:[%s6287_s8 + $0x168] sm:$0xff] }
 0x68b   :  { %v1751_v44 = vadd.f32 %v3253_v37, %v1718_v39 }
 0x68c   :  { %v1750_v47 = vadd.f32 %v3252_v41, %v1717_v42  ;;  %v4101_v48 = vpop.f32.mrb[38].mxu1 }
 0x68d   :  { %4782 = vtanh.f32 %v1751_v44  ;;  %v1720_v51 = vmul.f32 %v4101_v48, %v3239_v43  ;;  %v1639_v52 = vpop.f32.mrb[39].mxu1  ;;  %v3246_v44 = vld [vmem:[%s6287_s8 + $0x160] sm:$0xff]  ;;  %v3263_v48 = vld [vmem:[%s6288_s9 + $0x168] sm:$0xff] }
 0x68e   :  { %4784 = vtanh.f32 %v1750_v47  ;;  %v1719_v54 = vmul.f32 %v3238_v45, %v1639_v52 }
 0x68f   :  { %v1753_v56 = vadd.f32 %v3255_v49, %v1720_v51  ;;  %v3262_v51 = vld [vmem:[%s6288_s9 + $0x160] sm:$0xff] }
 0x690   :  { %v1752_v59 = vadd.f32 %v3254_v53, %v1719_v54  ;;  %v4104_v60 = vpop.f32.mrb[40].mxu1  ;;  %v3249_v54 = vld [vmem:[%s6287_s8 + $0x178] sm:$0xff] }
 0x691   :  { %4786 = vtanh.f32 %v1753_v56  ;;  %v1722_v63 = vmul.f32 %v4104_v60, %v3241_v55  ;;  %v1649_v0 = vpop.f32.mrb[41].mxu1 }
 0x692   :  { %4788 = vtanh.f32 %v1752_v59  ;;  %v1721_v2 = vmul.f32 %v3240_v57, %v1649_v0  ;;  %v3248_v59 = vld [vmem:[%s6287_s8 + $0x170] sm:$0xff] }
 0x693   :  { %v4779_v5 = vpop.eup %4778  ;;  %v1755_v13 = vadd.f32 %v3257_v61, %v1722_v63  ;;  %v3265_v63 = vld [vmem:[%s6288_s9 + $0x178] sm:$0xff] }
 0x694   :  { %v4781_v15 = vpop.eup %4780  ;;  %v1754_v16 = vadd.f32 %v3256_v1, %v1721_v2  ;;  %v4107_v17 = vpop.f32.mrb[42].mxu1  ;;  %v5668_v24 = vadd.f32 %v4779_v5, %v5247_v26  ;;  %v3261_v26 = vld [vmem:[%s6288_s9 + $0x158] sm:$0xff]  ;;  %v3264_v1 = vld [vmem:[%s6288_s9 + $0x170] sm:$0xff] }
 0x695   :  { %4790 = vtanh.f32 %v1755_v13  ;;  %v1724_v19 = vmul.f32 %v4107_v17, %v3243_v3  ;;  %v1659_v20 = vpop.f32.mrb[43].mxu1  ;;  %v5665_v23 = vadd.f32 %v4781_v15, %v5242_v22 }
 0x696   :  { %4792 = vtanh.f32 %v1754_v16  ;;  %v1723_v25 = vmul.f32 %v3242_v14, %v1659_v20 }
 0x697   :  { %v4783_v28 = vpop.eup %4782  ;;  %v1757_v29 = vadd.f32 %v3259_v18, %v1724_v19  ;;  %4133 = vmatprep.mubr.msk.f32.mxu0 %vm896_vm4, %v5665_v23 }
 0x698   :  { %v4785_v22 = vpop.eup %4784  ;;  %v1756_v31 = vadd.f32 %v3258_v21, %v1723_v25  ;;  %v4110_v32 = vpop.f32.mrb[44].mxu1  ;;  %4134 = vmatmul.mubr.msk.f32.vlgmr.msra.gmra.mrb[52].mxu0 %vm896_vm4, %v5668_v24  ;;  %v5693_v41 = vadd.f32 %v4783_v28, %v5267_v38 }
 0x699   :  { %4794 = vtanh.f32 %v1757_v29  ;;  %v1726_v33 = vmul.f32 %v4110_v32, %v3245_v27  ;;  %v1669_v35 = vpop.f32.mrb[45].mxu1  ;;  %v5687_v37 = vadd.f32 %v4785_v22, %v5262_v34 }
 0x69a   :  { %4796 = vtanh.f32 %v1756_v31  ;;  %v1725_v39 = vmul.f32 %v3244_v30, %v1669_v35  ;;  %v3341_v30 = vld [vmem:[%s6286_s6 + $0xd8] sm:$0xff] }
 0x69b   :  { %v4787_v42 = vpop.eup %4786  ;;  %v1759_v43 = vadd.f32 %v3261_v26, %v1726_v33  ;;  %4136 = vmatprep.mubr.msk.f32.mxu0 %vm896_vm4, %v5687_v37 }
 0x69c   :  { %v4789_v34 = vpop.eup %4788  ;;  %v1758_v45 = vadd.f32 %v3260_v36, %v1725_v39  ;;  %v4113_v47 = vpop.f32.mrb[46].mxu1  ;;  %4137 = vmatmul.mubr.msk.f32.gmra.mrb[54].mxu0 %vm896_vm4, %v5693_v41  ;;  %v5715_v55 = vadd.f32 %v4787_v42, %v5287_v50 }
 0x69d   :  { %4798 = vtanh.f32 %v1759_v43  ;;  %v1728_v38 = vmul.f32 %v4113_v47, %v3247_v40  ;;  %v1679_v49 = vpop.f32.mrb[47].mxu1  ;;  %v5709_v52 = vadd.f32 %v4789_v34, %v5282_v46 }
 0x69e   :  { %4800 = vtanh.f32 %v1758_v45  ;;  %v1727_v53 = vmul.f32 %v3246_v44, %v1679_v49 }
 0x69f   :  { %v4791_v56 = vpop.eup %4790  ;;  %v1761_v57 = vadd.f32 %v3263_v48, %v1728_v38  ;;  %4139 = vmatprep.mubr.msk.f32.mxu0 %vm896_vm4, %v5709_v52 }
 0x6a0   :  { %v4793_v46 = vpop.eup %4792  ;;  %v1760_v60 = vadd.f32 %v3262_v51, %v1727_v53  ;;  %v4116_v61 = vpop.f32.mrb[48].mxu1  ;;  %4140 = vmatmul.mubr.msk.f32.gmra.mrb[56].mxu0 %vm896_vm4, %v5715_v55  ;;  %v5734_v5 = vadd.f32 %v4791_v56, %v5307_v62 }
 0x6a1   :  { %4802 = vtanh.f32 %v1761_v57  ;;  %v1730_v50 = vmul.f32 %v4116_v61, %v3249_v54  ;;  %v1689_v0 = vpop.f32.mrb[49].mxu1  ;;  %v5731_v2 = vadd.f32 %v4793_v46, %v5302_v58  ;;  %v3292_v61 = vld [vmem:[%s6285_s7 + $0x190] sm:$0xff] }
 0x6a2   :  { %4804 = vtanh.f32 %v1760_v60  ;;  %v1729_v3 = vmul.f32 %v3248_v59, %v1689_v0  ;;  %v3291_v60 = vld [vmem:[%s6285_s7 + $0x188] sm:$0xff] }
 0x6a3   :  { %v4795_v13 = vpop.eup %4794  ;;  %v1763_v14 = vadd.f32 %v3265_v63, %v1730_v50  ;;  %4142 = vmatprep.mubr.msk.f32.mxu0 %vm896_vm4, %v5731_v2  ;;  %v3293_v63 = vld [vmem:[%s6285_s7 + $0x198] sm:$0xff]  ;;  %v3294_v50 = vld [vmem:[%s6285_s7 + $0x1a0] sm:$0xff]  ;;  %v3295_v0 = vld [vmem:[%s6285_s7 + $0x1a8] sm:$0xff] }
 0x6a4   :  { %v4797_v15 = vpop.eup %4796  ;;  %v1762_v16 = vadd.f32 %v3264_v1, %v1729_v3  ;;  %4143 = vmatmul.mubr.msk.f32.gmra.mrb[58].mxu0 %vm896_vm4, %v5734_v5  ;;  %v5744_v58 = vadd.f32 %v4795_v13, %v5318_v6  ;;  %v3296_v1 = vld [vmem:[%s6285_s7 + $0x1b0] sm:$0xff]  ;;  %v3297_v3 = vld [vmem:[%s6285_s7 + $0x1b8] sm:$0xff]  ;;  %v3298_v13 = vld [vmem:[%s6285_s7 + $0x1c0] sm:$0xff] }
 0x6a5   :  { %4806 = vtanh.f32 %v1763_v14  ;;  %v5741_v17 = vadd.f32 %v4797_v15, %v5316_v4  ;;  %v3299_v14 = vld [vmem:[%s6285_s7 + $0x1c8] sm:$0xff]  ;;  %v3300_v15 = vld [vmem:[%s6285_s7 + $0x1d0] sm:$0xff] }
 0x6a6   :  { %4808 = vtanh.f32 %v1762_v16  ;;  %v3301_v16 = vld [vmem:[%s6285_s7 + $0x1d8] sm:$0xff] }
 0x6a7   :  { %v4799_v62 = vpop.eup %4798  ;;  %4145 = vmatprep.mubr.msk.f32.mxu0 %vm896_vm4, %v5741_v17 }
 0x6a8   :  { %v4801_v18 = vpop.eup %4800  ;;  %4146 = vmatmul.mubr.msk.f32.gmra.mrb[60].mxu0 %vm896_vm4, %v5744_v58  ;;  %v5754_v20 = vadd.f32 %v4799_v62, %v5326_v8  ;;  %v3302_v62 = vld [vmem:[%s6285_s7 + $0x1e0] sm:$0xff] }
 0x6a9   :  { %v5751_v19 = vadd.f32 %v4801_v18, %v5324_v7  ;;  %v3303_v18 = vld [vmem:[%s6285_s7 + $0x1e8] sm:$0xff] }
 0x6ab   :  { %v4803_v4 = vpop.eup %4802  ;;  %4148 = vmatprep.mubr.msk.f32.mxu0 %vm896_vm4, %v5751_v19 }
 0x6ac   :  { %v4805_v6 = vpop.eup %4804  ;;  %4149 = vmatmul.mubr.msk.f32.gmra.mrb[62].mxu0 %vm896_vm4, %v5754_v20  ;;  %v5764_v25 = vadd.f32 %v4803_v4, %v5334_v10  ;;  %v3338_v10 = vld [vmem:[%s6286_s6 + $0xc0] sm:$0xff]  ;;  %v3304_v4 = vld [vmem:[%s6285_s7 + $0x1f0] sm:$0xff] }
 0x6ad   :  { %v5761_v21 = vadd.f32 %v4805_v6, %v5332_v9  ;;  %v3290_v9 = vld [vmem:[%s6285_s7 + $0x180] sm:$0xff]  ;;  %v3305_v6 = vld [vmem:[%s6285_s7 + $0x1f8] sm:$0xff] }
 0x6ae   :  { %4189 = vmatprep.mubr.f32.mxu1 %v3290_v9 }
 0x6af   :  { %v4807_v27 = vpop.eup %4806  ;;  %4151 = vmatprep.mubr.msk.f32.mxu0 %vm896_vm4, %v5761_v21 }
 0x6b0   :  { %v4809_v7 = vpop.eup %4808  ;;  %4152 = vmatmul.mubr.msk.f32.gmra.mrb[64].mxu0 %vm896_vm4, %v5764_v25  ;;  %v5774_v28 = vadd.f32 %v4807_v27, %v5342_v12  ;;  %v3340_v12 = vld [vmem:[%s6286_s6 + $0xd0] sm:$0xff]  ;;  %v3342_v27 = vld [vmem:[%s6286_s6 + $0xe0] sm:$0xff] }
 0x6b1   :  { %v5771_v8 = vadd.f32 %v4809_v7, %v5340_v11  ;;  %v3339_v11 = vld [vmem:[%s6286_s6 + $0xc8] sm:$0xff]  ;;  %v4603_v22 = vpack.c.bf16 %v3341_v30, %v3340_v12  ;;  %v3306_v30 = vld [vmem:[%s6287_s8 + $0x180] sm:$0xff] }
 0x6b2   :  { %v4599_v29 = vpack.c.bf16 %v3339_v11, %v3338_v10  ;;  %v3343_v7 = vld [vmem:[%s6286_s6 + $0xe8] sm:$0xff]  ;;  %v3344_v10 = vld [vmem:[%s6286_s6 + $0xf0] sm:$0xff]  ;;  %v3345_v11 = vld [vmem:[%s6286_s6 + $0xf8] sm:$0xff] }
 0x6b3   :  { %4154 = vmatprep.mubr.msk.f32.mxu0 %vm896_vm4, %v5771_v8  ;;  %v4607_v9 = vpack.c.bf16 %v3343_v7, %v3342_v27  ;;  %v4611_v12 = vpack.c.bf16 %v3345_v11, %v3344_v10 }
 0x6b4   :  { %4155 = vmatmul.mubr.msk.f32.gmra.mrb[66].mxu0 %vm896_vm4, %v5774_v28  ;;  %4600 = vmatprep.subr.bf16.mxu0 %v4599_v29 }
 0x6b5   :  { %4602 = vmatpush3.bf16.msra.mxu0 %v4599_v29  ;;  %v3307_v29 = vld [vmem:[%s6287_s8 + $0x188] sm:$0xff] }
 0x6b6   :  { %4604 = vmatprep.subr.bf16.mxu0 %v4603_v22 }
 0x6b9   :  { %4606 = vmatpush3.bf16.msra.mxu0 %v4603_v22 }
 0x6ba   :  { %4608 = vmatprep.subr.bf16.mxu0 %v4607_v9 }
 0x6bd   :  { %4610 = vmatpush3.bf16.msra.mxu0 %v4607_v9  ;;  %v3331_v9 = vld [vmem:[%s6288_s9 + $0x1c8] sm:$0xff] }
 0x6be   :  { %4612 = vmatprep.subr.bf16.mxu0 %v4611_v12 }
 0x6c1   :  { %4614 = vmatpush3.bf16.msra.mxu0 %v4611_v12 }
 0x76b   :  { %v4135_v31 = vpop.f32.mrb[52].mxu0 }
 0x76c   :  { %v1919_v32 = vpop.f32.mrb[53].mxu0 }
 0x76d   :  { %v4567_v26 = vpack.c.bf16 %v4135_v31, %v1919_v32  ;;  %v3323_v31 = vld [vmem:[%s6288_s9 + $0x188] sm:$0xff] }
 0x76f   :  { %v4138_v33 = vpop.f32.mrb[54].mxu0  ;;  %4568 = vmatprep.subr.bf16.mxu1 %v4567_v26 }
 0x770   :  { %v1929_v35 = vpop.f32.mrb[55].mxu0  ;;  %4570 = vmatpush3.bf16.msra.mxu1 %v4567_v26 }
 0x771   :  { %v4571_v36 = vpack.c.bf16 %v4138_v33, %v1929_v35  ;;  %v3322_v33 = vld [vmem:[%s6288_s9 + $0x180] sm:$0xff] }
 0x773   :  { %v4141_v39 = vpop.f32.mrb[56].mxu0  ;;  %4572 = vmatprep.subr.bf16.mxu1 %v4571_v36 }
 0x774   :  { %v1939_v40 = vpop.f32.mrb[57].mxu0  ;;  %4574 = vmatpush3.bf16.msra.mxu1 %v4571_v36  ;;  %v3309_v36 = vld [vmem:[%s6287_s8 + $0x198] sm:$0xff] }
 0x775   :  { %v4575_v42 = vpack.c.bf16 %v4141_v39, %v1939_v40  ;;  %v3308_v40 = vld [vmem:[%s6287_s8 + $0x190] sm:$0xff] }
 0x777   :  { %v4144_v43 = vpop.f32.mrb[58].mxu0  ;;  %4576 = vmatprep.subr.bf16.mxu1 %v4575_v42 }
 0x778   :  { %v1949_v44 = vpop.f32.mrb[59].mxu0  ;;  %4578 = vmatpush3.bf16.msra.mxu1 %v4575_v42 }
 0x779   :  { %v4579_v34 = vpack.c.bf16 %v4144_v43, %v1949_v44  ;;  %v3325_v44 = vld [vmem:[%s6288_s9 + $0x198] sm:$0xff] }
 0x77b   :  { %v4147_v45 = vpop.f32.mrb[60].mxu0  ;;  %4580 = vmatprep.subr.bf16.mxu1 %v4579_v34 }
 0x77c   :  { %v1959_v47 = vpop.f32.mrb[61].mxu0  ;;  %4582 = vmatpush3.bf16.msra.mxu1 %v4579_v34 }
 0x77d   :  { %v4583_v48 = vpack.c.bf16 %v4147_v45, %v1959_v47  ;;  %v3324_v47 = vld [vmem:[%s6288_s9 + $0x190] sm:$0xff] }
 0x77f   :  { %v4150_v38 = vpop.f32.mrb[62].mxu0  ;;  %4584 = vmatprep.subr.bf16.mxu1 %v4583_v48 }
 0x780   :  { %v1969_v49 = vpop.f32.mrb[63].mxu0  ;;  %4586 = vmatpush3.bf16.msra.mxu1 %v4583_v48 }
 0x781   :  { %v4587_v51 = vpack.c.bf16 %v4150_v38, %v1969_v49  ;;  %v3311_v38 = vld [vmem:[%s6287_s8 + $0x1a8] sm:$0xff] }
 0x783   :  { %v4153_v53 = vpop.f32.mrb[64].mxu0  ;;  %4588 = vmatprep.subr.bf16.mxu1 %v4587_v51 }
 0x784   :  { %v1979_v54 = vpop.f32.mrb[65].mxu0  ;;  %4590 = vmatpush3.bf16.msra.mxu1 %v4587_v51  ;;  %v3310_v51 = vld [vmem:[%s6287_s8 + $0x1a0] sm:$0xff] }
 0x785   :  { %v4591_v56 = vpack.c.bf16 %v4153_v53, %v1979_v54 }
 0x787   :  { %v4156_v57 = vpop.f32.mrb[66].mxu0  ;;  %4592 = vmatprep.subr.bf16.mxu1 %v4591_v56 }
 0x788   :  { %v1989_v59 = vpop.f32.mrb[67].mxu0  ;;  %4594 = vmatpush3.bf16.msra.mxu1 %v4591_v56  ;;  %v3327_v56 = vld [vmem:[%s6288_s9 + $0x1a8] sm:$0xff] }
 0x789   :  { %v4595_v46 = vpack.c.bf16 %v4156_v57, %v1989_v59 }
 0x78b   :  { %4596 = vmatprep.subr.bf16.mxu1 %v4595_v46 }
 0x78c   :  { %4598 = vmatpush3.bf16.msra.mxu1 %v4595_v46  ;;  %v3326_v46 = vld [vmem:[%s6288_s9 + $0x1a0] sm:$0xff] }
 0x78f   :  { %4190 = vmatmul.mubr.f32.vlgmr.msra.gmra.mrb[50].mxu1 %v3291_v60 }
 0x790   :  { %4192 = vmatprep.mubr.f32.mxu1 %v3292_v61  ;;  %v3313_v61 = vld [vmem:[%s6287_s8 + $0x1b8] sm:$0xff] }
 0x793   :  { %4193 = vmatmul.mubr.f32.gmra.mrb[52].mxu1 %v3293_v63 }
 0x794   :  { %4195 = vmatprep.mubr.f32.mxu1 %v3294_v50  ;;  %v3312_v50 = vld [vmem:[%s6287_s8 + $0x1b0] sm:$0xff] }
 0x797   :  { %4196 = vmatmul.mubr.f32.gmra.mrb[54].mxu1 %v3295_v0 }
 0x798   :  { %4198 = vmatprep.mubr.f32.mxu1 %v3296_v1 }
 0x79b   :  { %4199 = vmatmul.mubr.f32.gmra.mrb[56].mxu1 %v3297_v3  ;;  %v3329_v3 = vld [vmem:[%s6288_s9 + $0x1b8] sm:$0xff] }
 0x79c   :  { %4201 = vmatprep.mubr.f32.mxu1 %v3298_v13 }
 0x79f   :  { %4202 = vmatmul.mubr.f32.gmra.mrb[58].mxu1 %v3299_v14 }
 0x7a0   :  { %4204 = vmatprep.mubr.f32.mxu1 %v3300_v15  ;;  %v3328_v15 = vld [vmem:[%s6288_s9 + $0x1b0] sm:$0xff] }
 0x7a3   :  { %4205 = vmatmul.mubr.f32.gmra.mrb[60].mxu1 %v3301_v16 }
 0x7a4   :  { %4207 = vmatprep.mubr.f32.mxu1 %v3302_v62  ;;  %v3315_v62 = vld [vmem:[%s6287_s8 + $0x1c8] sm:$0xff] }
 0x7a7   :  { %4208 = vmatmul.mubr.f32.gmra.mrb[62].mxu1 %v3303_v18 }
 0x7a8   :  { %4210 = vmatprep.mubr.f32.mxu1 %v3304_v4  ;;  %v3314_v4 = vld [vmem:[%s6287_s8 + $0x1c0] sm:$0xff] }
 0x7ab   :  { %4211 = vmatmul.mubr.f32.gmra.mrb[64].mxu1 %v3305_v6 }
 0x862   :  { %v4191_v22 = vpop.f32.mrb[50].mxu1 }
 0x863   :  { %v2178_v32 = vmul.f32 %v4191_v22, %v3307_v29  ;;  %v2081_v26 = vpop.f32.mrb[51].mxu1  ;;  %v3330_v29 = vld [vmem:[%s6288_s9 + $0x1c0] sm:$0xff]  ;;  %v3317_v22 = vld [vmem:[%s6287_s8 + $0x1d8] sm:$0xff] }
 0x864   :  { %v2177_v35 = vmul.f32 %v3306_v30, %v2081_v26 }
 0x865   :  { %v2211_v39 = vadd.f32 %v3323_v31, %v2178_v32  ;;  %v3316_v32 = vld [vmem:[%s6287_s8 + $0x1d0] sm:$0xff] }
 0x866   :  { %v2210_v42 = vadd.f32 %v3322_v33, %v2177_v35  ;;  %v4194_v43 = vpop.f32.mrb[52].mxu1 }
 0x867   :  { %v2180_v34 = vmul.f32 %v4194_v43, %v3309_v36  ;;  %v2091_v45 = vpop.f32.mrb[53].mxu1  ;;  %v3333_v36 = vld [vmem:[%s6288_s9 + $0x1d8] sm:$0xff]  ;;  %v3332_v43 = vld [vmem:[%s6288_s9 + $0x1d0] sm:$0xff] }
 0x868   :  { %4810 = vtanh.f32 %v2210_v42  ;;  %v2179_v48 = vmul.f32 %v3308_v40, %v2091_v45 }
 0x869   :  { %4812 = vtanh.f32 %v2211_v39  ;;  %v2213_v49 = vadd.f32 %v3325_v44, %v2180_v34  ;;  %v3319_v34 = vld [vmem:[%s6287_s8 + $0x1e8] sm:$0xff] }
 0x86a   :  { %v2212_v53 = vadd.f32 %v3324_v47, %v2179_v48  ;;  %v4197_v54 = vpop.f32.mrb[54].mxu1  ;;  %v3318_v47 = vld [vmem:[%s6287_s8 + $0x1e0] sm:$0xff] }
 0x86b   :  { %v2182_v57 = vmul.f32 %v4197_v54, %v3311_v38  ;;  %v2101_v59 = vpop.f32.mrb[55].mxu1 }
 0x86c   :  { %4814 = vtanh.f32 %v2212_v53  ;;  %v2181_v60 = vmul.f32 %v3310_v51, %v2101_v59  ;;  %v3335_v51 = vld [vmem:[%s6288_s9 + $0x1e8] sm:$0xff] }
 0x86d   :  { %4816 = vtanh.f32 %v2213_v49  ;;  %v2215_v63 = vadd.f32 %v3327_v56, %v2182_v57  ;;  %v3334_v57 = vld [vmem:[%s6288_s9 + $0x1e0] sm:$0xff] }
 0x86e   :  { %v2214_v0 = vadd.f32 %v3326_v46, %v2181_v60  ;;  %v4200_v1 = vpop.f32.mrb[56].mxu1  ;;  %v3321_v46 = vld [vmem:[%s6287_s8 + $0x1f8] sm:$0xff] }
 0x86f   :  { %v2184_v13 = vmul.f32 %v4200_v1, %v3313_v61  ;;  %v2111_v14 = vpop.f32.mrb[57].mxu1  ;;  %v3320_v61 = vld [vmem:[%s6287_s8 + $0x1f0] sm:$0xff]  ;;  %v3337_v1 = vld [vmem:[%s6288_s9 + $0x1f8] sm:$0xff] }
 0x870   :  { %4818 = vtanh.f32 %v2214_v0  ;;  %v2183_v16 = vmul.f32 %v3312_v50, %v2111_v14 }
 0x871   :  { %4820 = vtanh.f32 %v2215_v63  ;;  %v2217_v18 = vadd.f32 %v3329_v3, %v2184_v13 }
 0x872   :  { %v4811_v6 = vpop.eup %4810  ;;  %v2216_v27 = vadd.f32 %v3328_v15, %v2183_v16  ;;  %v4203_v7 = vpop.f32.mrb[58].mxu1  ;;  %v3336_v15 = vld [vmem:[%s6288_s9 + $0x1f0] sm:$0xff] }
 0x873   :  { %v4813_v10 = vpop.eup %4812  ;;  %v2186_v11 = vmul.f32 %v4203_v7, %v3315_v62  ;;  %v2121_v12 = vpop.f32.mrb[59].mxu1  ;;  %4229 = vmatprep.mubr.msk.f32.mxu0 %vm896_vm4, %v4811_v6 }
 0x874   :  { %4822 = vtanh.f32 %v2216_v27  ;;  %v2185_v30 = vmul.f32 %v3314_v4, %v2121_v12  ;;  %4230 = vmatmul.mubr.msk.f32.vlgmr.msra.gmra.mrb[68].mxu0 %vm896_vm4, %v4813_v10 }
 0x875   :  { %4824 = vtanh.f32 %v2217_v18  ;;  %v2219_v31 = vadd.f32 %v3331_v9, %v2186_v11 }
 0x876   :  { %v4815_v26 = vpop.eup %4814  ;;  %v2218_v33 = vadd.f32 %v3330_v29, %v2185_v30  ;;  %v4206_v35 = vpop.f32.mrb[60].mxu1  ;;  %v3362_v29 = vld [vmem:[%s6285_s7 + $0x200] sm:$0xff] }
 0x877   :  { %v4817_v39 = vpop.eup %4816  ;;  %v2188_v40 = vmul.f32 %v4206_v35, %v3317_v22  ;;  %v2131_v42 = vpop.f32.mrb[61].mxu1  ;;  %4232 = vmatprep.mubr.msk.f32.mxu0 %vm896_vm4, %v4815_v26  ;;  %4285 = vmatprep.mubr.f32.mxu1 %v3362_v29  ;;  %v2704_v30 = vld [vmem:[%s6289_s11] sm:$0xff]  ;;  %v2705_v22 = vld [vmem:[%s6289_s11 + $0x8] sm:$0xff]  ;;  %v2707_v26 = vld [vmem:[%s6289_s11 + $0x18] sm:$0xff] }
 0x878   :  { %4826 = vtanh.f32 %v2218_v33  ;;  %v2187_v44 = vmul.f32 %v3316_v32, %v2131_v42  ;;  %4233 = vmatmul.mubr.msk.f32.gmra.mrb[70].mxu0 %vm896_vm4, %v4817_v39  ;;  %v4647_v32 = vpack.c.bf16 %v2705_v22, %v2704_v30  ;;  %v2710_v30 = vld [vmem:[%s6289_s11 + $0x30] sm:$0xff]  ;;  %v2711_v22 = vld [vmem:[%s6289_s11 + $0x38] sm:$0xff] }
 0x879   :  { %4828 = vtanh.f32 %v2219_v31  ;;  %v2221_v45 = vadd.f32 %v3333_v36, %v2188_v40  ;;  %v2706_v31 = vld [vmem:[%s6289_s11 + $0x10] sm:$0xff] }
 0x87a   :  { %v4819_v48 = vpop.eup %4818  ;;  %v2220_v38 = vadd.f32 %v3332_v43, %v2187_v44  ;;  %v4209_v49 = vpop.f32.mrb[62].mxu1  ;;  %v4651_v33 = vpack.c.bf16 %v2707_v26, %v2706_v31  ;;  %4648 = vmatprep.subr.bf16.mxu0 %v4647_v32  ;;  %v4659_v31 = vpack.c.bf16 %v2711_v22, %v2710_v30  ;;  %v3378_v26 = vld [vmem:[%s6287_s8 + $0x200] sm:$0xff]  ;;  %v3403_v30 = vld [vmem:[%s6288_s9 + $0x248] sm:$0xff] }
 0x87b   :  { %v4821_v53 = vpop.eup %4820  ;;  %v2190_v54 = vmul.f32 %v4209_v49, %v3319_v34  ;;  %v2141_v56 = vpop.f32.mrb[63].mxu1  ;;  %4235 = vmatprep.mubr.msk.f32.mxu0 %vm896_vm4, %v4819_v48  ;;  %4650 = vmatpush3.bf16.msra.mxu0 %v4647_v32  ;;  %v3379_v32 = vld [vmem:[%s6287_s8 + $0x208] sm:$0xff] }
 0x87c   :  { %4830 = vtanh.f32 %v2220_v38  ;;  %v2189_v59 = vmul.f32 %v3318_v47, %v2141_v56  ;;  %4236 = vmatmul.mubr.msk.f32.gmra.mrb[72].mxu0 %vm896_vm4, %v4821_v53  ;;  %4652 = vmatprep.subr.bf16.mxu0 %v4651_v33 }
 0x87d   :  { %4832 = vtanh.f32 %v2221_v45  ;;  %v2223_v60 = vadd.f32 %v3335_v51, %v2190_v54 }
 0x87e   :  { %v4823_v63 = vpop.eup %4822  ;;  %v2222_v50 = vadd.f32 %v3334_v57, %v2189_v59  ;;  %v4212_v0 = vpop.f32.mrb[64].mxu1 }
 0x87f   :  { %v4825_v3 = vpop.eup %4824  ;;  %v2192_v13 = vmul.f32 %v4212_v0, %v3321_v46  ;;  %v2151_v14 = vpop.f32.mrb[65].mxu1  ;;  %4238 = vmatprep.mubr.msk.f32.mxu0 %vm896_vm4, %v4823_v63  ;;  %4654 = vmatpush3.bf16.msra.mxu0 %v4651_v33  ;;  %v3363_v0 = vld [vmem:[%s6285_s7 + $0x208] sm:$0xff] }
 0x880   :  { %4834 = vtanh.f32 %v2222_v50  ;;  %v2191_v16 = vmul.f32 %v3320_v61, %v2151_v14  ;;  %4239 = vmatmul.mubr.msk.f32.gmra.mrb[74].mxu0 %vm896_vm4, %v4825_v3  ;;  %v3365_v3 = vld [vmem:[%s6285_s7 + $0x218] sm:$0xff]  ;;  %v3367_v14 = vld [vmem:[%s6285_s7 + $0x228] sm:$0xff] }
 0x881   :  { %4836 = vtanh.f32 %v2223_v60  ;;  %v2225_v62 = vadd.f32 %v3337_v1, %v2192_v13  ;;  %v3364_v1 = vld [vmem:[%s6285_s7 + $0x210] sm:$0xff]  ;;  %v3366_v13 = vld [vmem:[%s6285_s7 + $0x220] sm:$0xff] }
 0x882   :  { %v4827_v18 = vpop.eup %4826  ;;  %v2224_v4 = vadd.f32 %v3336_v15, %v2191_v16  ;;  %v3368_v15 = vld [vmem:[%s6285_s7 + $0x230] sm:$0xff]  ;;  %v3369_v16 = vld [vmem:[%s6285_s7 + $0x238] sm:$0xff] }
 0x883   :  { %v4829_v6 = vpop.eup %4828  ;;  %4241 = vmatprep.mubr.msk.f32.mxu0 %vm896_vm4, %v4827_v18  ;;  %v3371_v18 = vld [vmem:[%s6285_s7 + $0x248] sm:$0xff] }
 0x884   :  { %4838 = vtanh.f32 %v2224_v4  ;;  %4242 = vmatmul.mubr.msk.f32.gmra.mrb[76].mxu0 %vm896_vm4, %v4829_v6  ;;  %v3372_v4 = vld [vmem:[%s6285_s7 + $0x250] sm:$0xff]  ;;  %v3373_v6 = vld [vmem:[%s6285_s7 + $0x258] sm:$0xff] }
 0x885   :  { %4840 = vtanh.f32 %v2225_v62  ;;  %v3370_v62 = vld [vmem:[%s6285_s7 + $0x240] sm:$0xff] }
 0x886   :  { %v4831_v27 = vpop.eup %4830 }
 0x887   :  { %v4833_v7 = vpop.eup %4832  ;;  %4244 = vmatprep.mubr.msk.f32.mxu0 %vm896_vm4, %v4831_v27  ;;  %v3374_v27 = vld [vmem:[%s6285_s7 + $0x260] sm:$0xff] }
 0x888   :  { %4245 = vmatmul.mubr.msk.f32.gmra.mrb[78].mxu0 %vm896_vm4, %v4833_v7  ;;  %v3375_v7 = vld [vmem:[%s6285_s7 + $0x268] sm:$0xff] }
 0x88a   :  { %v4835_v9 = vpop.eup %4834 }
 0x88b   :  { %v4837_v10 = vpop.eup %4836  ;;  %4247 = vmatprep.mubr.msk.f32.mxu0 %vm896_vm4, %v4835_v9  ;;  %v3376_v9 = vld [vmem:[%s6285_s7 + $0x270] sm:$0xff] }
 0x88c   :  { %4248 = vmatmul.mubr.msk.f32.gmra.mrb[80].mxu0 %vm896_vm4, %v4837_v10  ;;  %v3377_v10 = vld [vmem:[%s6285_s7 + $0x278] sm:$0xff] }
 0x88e   :  { %v4839_v11 = vpop.eup %4838 }
 0x88f   :  { %v4841_v12 = vpop.eup %4840  ;;  %4250 = vmatprep.mubr.msk.f32.mxu0 %vm896_vm4, %v4839_v11  ;;  %v2708_v11 = vld [vmem:[%s6289_s11 + $0x20] sm:$0xff] }
 0x890   :  { %4251 = vmatmul.mubr.msk.f32.gmra.mrb[82].mxu0 %vm896_vm4, %v4841_v12  ;;  %v2709_v12 = vld [vmem:[%s6289_s11 + $0x28] sm:$0xff] }
 0x891   :  { %v4655_v29 = vpack.c.bf16 %v2709_v12, %v2708_v11 }
 0x893   :  { %4656 = vmatprep.subr.bf16.mxu0 %v4655_v29 }
 0x894   :  { %4658 = vmatpush3.bf16.msra.mxu0 %v4655_v29 }
 0x895   :  { %4660 = vmatprep.subr.bf16.mxu0 %v4659_v31 }
 0x898   :  { %4662 = vmatpush3.bf16.msra.mxu0 %v4659_v31 }
 0x947   :  { %v4231_v35 = vpop.f32.mrb[68].mxu0 }
 0x948   :  { %v2365_v36 = vpop.f32.mrb[69].mxu0 }
 0x949   :  { %v4615_v39 = vpack.c.bf16 %v4231_v35, %v2365_v36  ;;  %v3395_v35 = vld [vmem:[%s6288_s9 + $0x208] sm:$0xff] }
 0x94b   :  { %v4234_v40 = vpop.f32.mrb[70].mxu0  ;;  %4616 = vmatprep.subr.bf16.mxu1 %v4615_v39 }
 0x94c   :  { %v2375_v42 = vpop.f32.mrb[71].mxu0  ;;  %4618 = vmatpush3.bf16.msra.mxu1 %v4615_v39 }
 0x94d   :  { %v4619_v43 = vpack.c.bf16 %v4234_v40, %v2375_v42  ;;  %v3394_v40 = vld [vmem:[%s6288_s9 + $0x200] sm:$0xff] }
 0x94f   :  { %v4237_v44 = vpop.f32.mrb[72].mxu0  ;;  %4620 = vmatprep.subr.bf16.mxu1 %v4619_v43 }
 0x950   :  { %v2385_v34 = vpop.f32.mrb[73].mxu0  ;;  %4622 = vmatpush3.bf16.msra.mxu1 %v4619_v43  ;;  %v3381_v43 = vld [vmem:[%s6287_s8 + $0x218] sm:$0xff] }
 0x951   :  { %v4623_v45 = vpack.c.bf16 %v4237_v44, %v2385_v34  ;;  %v3380_v34 = vld [vmem:[%s6287_s8 + $0x210] sm:$0xff] }
 0x953   :  { %v4240_v47 = vpop.f32.mrb[74].mxu0  ;;  %4624 = vmatprep.subr.bf16.mxu1 %v4623_v45 }
 0x954   :  { %v2395_v48 = vpop.f32.mrb[75].mxu0  ;;  %4626 = vmatpush3.bf16.msra.mxu1 %v4623_v45 }
 0x955   :  { %v4627_v38 = vpack.c.bf16 %v4240_v47, %v2395_v48  ;;  %v3397_v48 = vld [vmem:[%s6288_s9 + $0x218] sm:$0xff] }
 0x957   :  { %v4243_v49 = vpop.f32.mrb[76].mxu0  ;;  %4628 = vmatprep.subr.bf16.mxu1 %v4627_v38 }
 0x958   :  { %v2405_v51 = vpop.f32.mrb[77].mxu0  ;;  %4630 = vmatpush3.bf16.msra.mxu1 %v4627_v38 }
 0x959   :  { %v4631_v53 = vpack.c.bf16 %v4243_v49, %v2405_v51  ;;  %v3396_v51 = vld [vmem:[%s6288_s9 + $0x210] sm:$0xff] }
 0x95b   :  { %v4246_v54 = vpop.f32.mrb[78].mxu0  ;;  %4632 = vmatprep.subr.bf16.mxu1 %v4631_v53 }
 0x95c   :  { %v2415_v56 = vpop.f32.mrb[79].mxu0  ;;  %4634 = vmatpush3.bf16.msra.mxu1 %v4631_v53 }
 0x95d   :  { %v4635_v57 = vpack.c.bf16 %v4246_v54, %v2415_v56  ;;  %v3383_v54 = vld [vmem:[%s6287_s8 + $0x228] sm:$0xff] }
 0x95f   :  { %v4249_v59 = vpop.f32.mrb[80].mxu0  ;;  %4636 = vmatprep.subr.bf16.mxu1 %v4635_v57 }
 0x960   :  { %v2425_v46 = vpop.f32.mrb[81].mxu0  ;;  %4638 = vmatpush3.bf16.msra.mxu1 %v4635_v57  ;;  %v3382_v57 = vld [vmem:[%s6287_s8 + $0x220] sm:$0xff] }
 0x961   :  { %v4639_v60 = vpack.c.bf16 %v4249_v59, %v2425_v46 }
 0x963   :  { %v4252_v61 = vpop.f32.mrb[82].mxu0  ;;  %4640 = vmatprep.subr.bf16.mxu1 %v4639_v60 }
 0x964   :  { %v2435_v63 = vpop.f32.mrb[83].mxu0  ;;  %4642 = vmatpush3.bf16.msra.mxu1 %v4639_v60  ;;  %v3399_v60 = vld [vmem:[%s6288_s9 + $0x228] sm:$0xff] }
 0x965   :  { %v4643_v50 = vpack.c.bf16 %v4252_v61, %v2435_v63 }
 0x967   :  { %4644 = vmatprep.subr.bf16.mxu1 %v4643_v50 }
 0x968   :  { %4646 = vmatpush3.bf16.msra.mxu1 %v4643_v50  ;;  %v3398_v50 = vld [vmem:[%s6288_s9 + $0x220] sm:$0xff] }
 0x96b   :  { %4286 = vmatmul.mubr.f32.vlgmr.msra.gmra.mrb[66].mxu1 %v3363_v0 }
 0x96c   :  { %4288 = vmatprep.mubr.f32.mxu1 %v3364_v1  ;;  %v3385_v1 = vld [vmem:[%s6287_s8 + $0x238] sm:$0xff] }
 0x96f   :  { %4289 = vmatmul.mubr.f32.gmra.mrb[68].mxu1 %v3365_v3 }
 0x970   :  { %4291 = vmatprep.mubr.f32.mxu1 %v3366_v13  ;;  %v3384_v13 = vld [vmem:[%s6287_s8 + $0x230] sm:$0xff] }
 0x973   :  { %4292 = vmatmul.mubr.f32.gmra.mrb[70].mxu1 %v3367_v14 }
 0x974   :  { %4294 = vmatprep.mubr.f32.mxu1 %v3368_v15 }
 0x977   :  { %4295 = vmatmul.mubr.f32.gmra.mrb[72].mxu1 %v3369_v16  ;;  %v3401_v16 = vld [vmem:[%s6288_s9 + $0x238] sm:$0xff] }
 0x978   :  { %4297 = vmatprep.mubr.f32.mxu1 %v3370_v62 }
 0x97b   :  { %4298 = vmatmul.mubr.f32.gmra.mrb[74].mxu1 %v3371_v18 }
 0x97c   :  { %4300 = vmatprep.mubr.f32.mxu1 %v3372_v4  ;;  %v3400_v4 = vld [vmem:[%s6288_s9 + $0x230] sm:$0xff] }
 0x97f   :  { %4301 = vmatmul.mubr.f32.gmra.mrb[76].mxu1 %v3373_v6 }
 0x980   :  { %4303 = vmatprep.mubr.f32.mxu1 %v3374_v27  ;;  %v3387_v27 = vld [vmem:[%s6287_s8 + $0x248] sm:$0xff] }
 0x983   :  { %4304 = vmatmul.mubr.f32.gmra.mrb[78].mxu1 %v3375_v7 }
 0x984   :  { %4306 = vmatprep.mubr.f32.mxu1 %v3376_v9 }
 0x987   :  { %4307 = vmatmul.mubr.f32.gmra.mrb[80].mxu1 %v3377_v10  ;;  %v3386_v10 = vld [vmem:[%s6287_s8 + $0x240] sm:$0xff] }
 0xa3e   :  { %v4287_v33 = vpop.f32.mrb[66].mxu1 }
 0xa3f   :  { %v2624_v36 = vmul.f32 %v4287_v33, %v3379_v32  ;;  %v2527_v39 = vpop.f32.mrb[67].mxu1  ;;  %v3402_v32 = vld [vmem:[%s6288_s9 + $0x240] sm:$0xff] }
 0xa40   :  { %v2623_v42 = vmul.f32 %v3378_v26, %v2527_v39 }
 0xa41   :  { %v2657_v44 = vadd.f32 %v3395_v35, %v2624_v36  ;;  %v3389_v36 = vld [vmem:[%s6287_s8 + $0x258] sm:$0xff] }
 0xa42   :  { %v2656_v45 = vadd.f32 %v3394_v40, %v2623_v42  ;;  %v4290_v47 = vpop.f32.mrb[68].mxu1  ;;  %v3388_v42 = vld [vmem:[%s6287_s8 + $0x250] sm:$0xff] }
 0xa43   :  { %4842 = vtanh.f32 %v2657_v44  ;;  %v2626_v38 = vmul.f32 %v4290_v47, %v3381_v43  ;;  %v2537_v49 = vpop.f32.mrb[69].mxu1  ;;  %v3404_v47 = vld [vmem:[%s6288_s9 + $0x250] sm:$0xff] }
 0xa44   :  { %4844 = vtanh.f32 %v2656_v45  ;;  %v2625_v53 = vmul.f32 %v3380_v34, %v2537_v49  ;;  %v3391_v49 = vld [vmem:[%s6287_s8 + $0x268] sm:$0xff] }
 0xa45   :  { %v2659_v56 = vadd.f32 %v3397_v48, %v2626_v38 }
 0xa46   :  { %v2658_v59 = vadd.f32 %v3396_v51, %v2625_v53  ;;  %v4293_v46 = vpop.f32.mrb[70].mxu1 }
 0xa47   :  { %4846 = vtanh.f32 %v2659_v56  ;;  %v2628_v61 = vmul.f32 %v4293_v46, %v3383_v54  ;;  %v2547_v63 = vpop.f32.mrb[71].mxu1  ;;  %v3390_v56 = vld [vmem:[%s6287_s8 + $0x260] sm:$0xff] }
 0xa48   :  { %4848 = vtanh.f32 %v2658_v59  ;;  %v2627_v0 = vmul.f32 %v3382_v57, %v2547_v63 }
 0xa49   :  { %v2661_v3 = vadd.f32 %v3399_v60, %v2628_v61  ;;  %v3406_v61 = vld [vmem:[%s6288_s9 + $0x260] sm:$0xff] }
 0xa4a   :  { %v2660_v14 = vadd.f32 %v3398_v50, %v2627_v0  ;;  %v4296_v15 = vpop.f32.mrb[72].mxu1  ;;  %v3393_v0 = vld [vmem:[%s6287_s8 + $0x278] sm:$0xff] }
 0xa4b   :  { %4850 = vtanh.f32 %v2661_v3  ;;  %v2630_v62 = vmul.f32 %v4296_v15, %v3385_v1  ;;  %v2557_v18 = vpop.f32.mrb[73].mxu1 }
 0xa4c   :  { %4852 = vtanh.f32 %v2660_v14  ;;  %v2629_v6 = vmul.f32 %v3384_v13, %v2557_v18  ;;  %v3392_v14 = vld [vmem:[%s6287_s8 + $0x270] sm:$0xff] }
 0xa4d   :  { %v4843_v7 = vpop.eup %4842  ;;  %v2663_v9 = vadd.f32 %v3401_v16, %v2630_v62 }
 0xa4e   :  { %v4845_v11 = vpop.eup %4844  ;;  %v2662_v12 = vadd.f32 %v3400_v4, %v2629_v6  ;;  %v4299_v29 = vpop.f32.mrb[74].mxu1  ;;  %v2689_v33 = vadd.f32 %v4843_v7, %v5668_v24  ;;  %v3408_v4 = vld [vmem:[%s6288_s9 + $0x270] sm:$0xff] }
 0xa4f   :  { %4854 = vtanh.f32 %v2663_v9  ;;  %v2632_v22 = vmul.f32 %v4299_v29, %v3387_v27  ;;  %v2567_v31 = vpop.f32.mrb[75].mxu1  ;;  %v2688_v26 = vadd.f32 %v4845_v11, %v5665_v23  ;;  %v3405_v23 = vld [vmem:[%s6288_s9 + $0x258] sm:$0xff] }
 0xa50   :  { %4856 = vtanh.f32 %v2662_v12  ;;  %v2631_v35 = vmul.f32 %v3386_v10, %v2567_v31 }
 0xa51   :  { %v4847_v39 = vpop.eup %4846  ;;  %v2665_v40 = vadd.f32 %v3403_v30, %v2632_v22  ;;  %4325 = vmatprep.mubr.msk.f32.mxu0 %vm896_vm4, %v2688_v26 }
 0xa52   :  { %v4849_v43 = vpop.eup %4848  ;;  %v2664_v44 = vadd.f32 %v3402_v32, %v2631_v35  ;;  %v4302_v34 = vpop.f32.mrb[76].mxu1  ;;  %4326 = vmatmul.mubr.msk.f32.vlgmr.msra.gmra.mrb[84].mxu0 %vm896_vm4, %v2689_v33  ;;  %v2691_v51 = vadd.f32 %v4847_v39, %v5693_v41 }
 0xa53   :  { %4858 = vtanh.f32 %v2665_v40  ;;  %v2634_v24 = vmul.f32 %v4302_v34, %v3389_v36  ;;  %v2577_v45 = vpop.f32.mrb[77].mxu1  ;;  %v2690_v48 = vadd.f32 %v4849_v43, %v5687_v37  ;;  %v3407_v37 = vld [vmem:[%s6288_s9 + $0x268] sm:$0xff] }
 0xa54   :  { %4860 = vtanh.f32 %v2664_v44  ;;  %v2633_v38 = vmul.f32 %v3388_v42, %v2577_v45 }
 0xa55   :  { %v4851_v53 = vpop.eup %4850  ;;  %v2667_v54 = vadd.f32 %v3405_v23, %v2634_v24  ;;  %4328 = vmatprep.mubr.msk.f32.mxu0 %vm896_vm4, %v2690_v48 }
 0xa56   :  { %v4853_v57 = vpop.eup %4852  ;;  %v2666_v59 = vadd.f32 %v3404_v47, %v2633_v38  ;;  %v4305_v46 = vpop.f32.mrb[78].mxu1  ;;  %4329 = vmatmul.mubr.msk.f32.gmra.mrb[86].mxu0 %vm896_vm4, %v2691_v51  ;;  %v2693_v1 = vadd.f32 %v4851_v53, %v5715_v55 }
 0xa57   :  { %4862 = vtanh.f32 %v2667_v54  ;;  %v2636_v60 = vmul.f32 %v4305_v46, %v3391_v49  ;;  %v2587_v41 = vpop.f32.mrb[79].mxu1  ;;  %v2692_v63 = vadd.f32 %v4853_v57, %v5709_v52  ;;  %v3409_v52 = vld [vmem:[%s6288_s9 + $0x278] sm:$0xff] }
 0xa58   :  { %4864 = vtanh.f32 %v2666_v59  ;;  %v2635_v50 = vmul.f32 %v3390_v56, %v2587_v41  ;;  %v2908_v41 = vld [vmem:[%s6290_s10 + $0x18] sm:$0xff] }
 0xa59   :  { %v4855_v3 = vpop.eup %4854  ;;  %v2669_v13 = vadd.f32 %v3407_v37, %v2636_v60  ;;  %4331 = vmatprep.mubr.msk.f32.mxu0 %vm896_vm4, %v2692_v63  ;;  %v2906_v37 = vld [vmem:[%s6290_s10 + $0x8] sm:$0xff]  ;;  %v2907_v60 = vld [vmem:[%s6290_s10 + $0x10] sm:$0xff] }
 0xa5a   :  { %v4857_v15 = vpop.eup %4856  ;;  %v2668_v16 = vadd.f32 %v3406_v61, %v2635_v50  ;;  %v4308_v62 = vpop.f32.mrb[80].mxu1  ;;  %4332 = vmatmul.mubr.msk.f32.gmra.mrb[88].mxu0 %vm896_vm4, %v2693_v1  ;;  %v2695_v7 = vadd.f32 %v4855_v3, %v5734_v5  ;;  %v2909_v61 = vld [vmem:[%s6290_s10 + $0x20] sm:$0xff]  ;;  %v2910_v63 = vld [vmem:[%s6290_s10 + $0x28] sm:$0xff]  ;;  %v2911_v50 = vld [vmem:[%s6290_s10 + $0x30] sm:$0xff] }
 0xa5b   :  { %4866 = vtanh.f32 %v2669_v13  ;;  %v2638_v18 = vmul.f32 %v4308_v62, %v3393_v0  ;;  %v2597_v55 = vpop.f32.mrb[81].mxu1  ;;  %v2694_v6 = vadd.f32 %v4857_v15, %v5731_v2  ;;  %v2912_v0 = vld [vmem:[%s6290_s10 + $0x38] sm:$0xff]  ;;  %v2913_v1 = vld [vmem:[%s6290_s10 + $0x40] sm:$0xff]  ;;  %v2914_v3 = vld [vmem:[%s6290_s10 + $0x48] sm:$0xff] }
 0xa5c   :  { %4868 = vtanh.f32 %v2668_v16  ;;  %v2637_v27 = vmul.f32 %v3392_v14, %v2597_v55  ;;  %v2915_v13 = vld [vmem:[%s6290_s10 + $0x50] sm:$0xff]  ;;  %v2916_v14 = vld [vmem:[%s6290_s10 + $0x58] sm:$0xff]  ;;  %v2917_v15 = vld [vmem:[%s6290_s10 + $0x60] sm:$0xff] }
 0xa5d   :  { %v4859_v9 = vpop.eup %4858  ;;  %v2671_v10 = vadd.f32 %v3409_v52, %v2638_v18  ;;  %4334 = vmatprep.mubr.msk.f32.mxu0 %vm896_vm4, %v2694_v6  ;;  %v2918_v16 = vld [vmem:[%s6290_s10 + $0x68] sm:$0xff]  ;;  %v2919_v62 = vld [vmem:[%s6290_s10 + $0x70] sm:$0xff]  ;;  %v2920_v52 = vld [vmem:[%s6290_s10 + $0x78] sm:$0xff] }
 0xa5e   :  { %v4861_v11 = vpop.eup %4860  ;;  %v2670_v12 = vadd.f32 %v3408_v4, %v2637_v27  ;;  %4335 = vmatmul.mubr.msk.f32.gmra.mrb[90].mxu0 %vm896_vm4, %v2695_v7  ;;  %v2697_v30 = vadd.f32 %v4859_v9, %v5744_v58  ;;  %v3426_v18 = vld [vmem:[%s6291_s12] ss:$0 sm:$0xff] }
 0xa5f   :  { %4870 = vtanh.f32 %v2671_v10  ;;  %v2696_v29 = vadd.f32 %v4861_v11, %v5741_v17 }
 0xa60   :  { %4872 = vtanh.f32 %v2670_v12 }
 0xa61   :  { %v4863_v22 = vpop.eup %4862  ;;  %4337 = vmatprep.mubr.msk.f32.mxu0 %vm896_vm4, %v2696_v29 }
 0xa62   :  { %v4865_v2 = vpop.eup %4864  ;;  %4338 = vmatmul.mubr.msk.f32.gmra.mrb[92].mxu0 %vm896_vm4, %v2697_v30  ;;  %v2699_v31 = vadd.f32 %v4863_v22, %v5754_v20 }
 0xa63   :  { %v2698_v5 = vadd.f32 %v4865_v2, %v5751_v19 }
 0xa65   :  { %v4867_v32 = vpop.eup %4866  ;;  %4340 = vmatprep.mubr.msk.f32.mxu0 %vm896_vm4, %v2698_v5 }
 0xa66   :  { %v4869_v26 = vpop.eup %4868  ;;  %4341 = vmatmul.mubr.msk.f32.gmra.mrb[94].mxu0 %vm896_vm4, %v2699_v31  ;;  %v2701_v58 = vadd.f32 %v4867_v32, %v5764_v25 }
 0xa67   :  { %v2700_v17 = vadd.f32 %v4869_v26, %v5761_v21  ;;  %v2905_v21 = vld [vmem:[%s6290_s10] sm:$0xff] }
 0xa68   :  { %4381 = vmatprep.mubr.f32.mxu1 %v2905_v21 }
 0xa69   :  { %v4871_v33 = vpop.eup %4870  ;;  %4343 = vmatprep.mubr.msk.f32.mxu0 %vm896_vm4, %v2700_v17 }
 0xa6a   :  { %v4873_v35 = vpop.eup %4872  ;;  %4344 = vmatmul.mubr.msk.f32.gmra.mrb[96].mxu0 %vm896_vm4, %v2701_v58  ;;  %v2703_v20 = vadd.f32 %v4871_v33, %v5774_v28 }
 0xa6b   :  { %v2702_v19 = vadd.f32 %v4873_v35, %v5771_v8 }
 0xa6d   :  { %4346 = vmatprep.mubr.msk.f32.mxu0 %vm896_vm4, %v2702_v19 }
 0xa6e   :  { %4347 = vmatmul.mubr.msk.f32.gmra.mrb[98].mxu0 %vm896_vm4, %v2703_v20 }
 0xb25   :  { %v4327_v25 = vpop.f32.mrb[84].mxu0 }
 0xb26   :  { %v2826_v36 = vpop.f32.mrb[85].mxu0 }
 0xb27   :  { %v4663_v39 = vpack.c.bf16 %v4327_v25, %v2826_v36 }
 0xb29   :  { %v4330_v40 = vpop.f32.mrb[86].mxu0  ;;  %4664 = vmatprep.subr.bf16.mxu1 %v4663_v39 }
 0xb2a   :  { %v2836_v42 = vpop.f32.mrb[87].mxu0  ;;  %4666 = vmatpush3.bf16.msra.mxu1 %v4663_v39 }
 0xb2b   :  { %v4667_v43 = vpack.c.bf16 %v4330_v40, %v2836_v42 }
 0xb2d   :  { %v4333_v8 = vpop.f32.mrb[88].mxu0  ;;  %4668 = vmatprep.subr.bf16.mxu1 %v4667_v43 }
 0xb2e   :  { %v2846_v28 = vpop.f32.mrb[89].mxu0  ;;  %4670 = vmatpush3.bf16.msra.mxu1 %v4667_v43 }
 0xb2f   :  { %v4671_v44 = vpack.c.bf16 %v4333_v8, %v2846_v28 }
 0xb31   :  { %v4336_v34 = vpop.f32.mrb[90].mxu0  ;;  %4672 = vmatprep.subr.bf16.mxu1 %v4671_v44 }
 0xb32   :  { %v2856_v23 = vpop.f32.mrb[91].mxu0  ;;  %4674 = vmatpush3.bf16.msra.mxu1 %v4671_v44 }
 0xb33   :  { %v4675_v24 = vpack.c.bf16 %v4336_v34, %v2856_v23 }
 0xb35   :  { %v4339_v45 = vpop.f32.mrb[92].mxu0  ;;  %4676 = vmatprep.subr.bf16.mxu1 %v4675_v24 }
 0xb36   :  { %v2866_v47 = vpop.f32.mrb[93].mxu0  ;;  %4678 = vmatpush3.bf16.msra.mxu1 %v4675_v24 }
 0xb37   :  { %v4679_v48 = vpack.c.bf16 %v4339_v45, %v2866_v47 }
 0xb39   :  { %v4342_v38 = vpop.f32.mrb[94].mxu0  ;;  %4680 = vmatprep.subr.bf16.mxu1 %v4679_v48 }
 0xb3a   :  { %v2876_v49 = vpop.f32.mrb[95].mxu0  ;;  %4682 = vmatpush3.bf16.msra.mxu1 %v4679_v48 }
 0xb3b   :  { %v4683_v51 = vpack.c.bf16 %v4342_v38, %v2876_v49 }
 0xb3d   :  { %v4345_v53 = vpop.f32.mrb[96].mxu0  ;;  %4684 = vmatprep.subr.bf16.mxu1 %v4683_v51 }
 0xb3e   :  { %v2886_v54 = vpop.f32.mrb[97].mxu0  ;;  %4686 = vmatpush3.bf16.msra.mxu1 %v4683_v51 }
 0xb3f   :  { %v4687_v56 = vpack.c.bf16 %v4345_v53, %v2886_v54 }
 0xb41   :  { %v4348_v57 = vpop.f32.mrb[98].mxu0  ;;  %4688 = vmatprep.subr.bf16.mxu1 %v4687_v56 }
 0xb42   :  { %v2896_v59 = vpop.f32.mrb[99].mxu0  ;;  %4690 = vmatpush3.bf16.msra.mxu1 %v4687_v56 }
 0xb43   :  { %v4691_v46 = vpack.c.bf16 %v4348_v57, %v2896_v59 }
 0xb45   :  { %4692 = vmatprep.subr.bf16.mxu1 %v4691_v46 }
 0xb46   :  { %4694 = vmatpush3.bf16.msra.mxu1 %v4691_v46 }
 0xb49   :  { %4382 = vmatmul.mubr.f32.vlgmr.msra.gmra.mrb[82].mxu1 %v2906_v37 }
 0xb4a   :  { %4384 = vmatprep.mubr.f32.mxu1 %v2907_v60 }
 0xb4d   :  { %4385 = vmatmul.mubr.f32.gmra.mrb[84].mxu1 %v2908_v41 }
 0xb4e   :  { %4387 = vmatprep.mubr.f32.mxu1 %v2909_v61 }
 0xb51   :  { %4388 = vmatmul.mubr.f32.gmra.mrb[86].mxu1 %v2910_v63 }
 0xb52   :  { %4390 = vmatprep.mubr.f32.mxu1 %v2911_v50 }
 0xb55   :  { %4391 = vmatmul.mubr.f32.gmra.mrb[88].mxu1 %v2912_v0 }
 0xb56   :  { %4393 = vmatprep.mubr.f32.mxu1 %v2913_v1 }
 0xb59   :  { %4394 = vmatmul.mubr.f32.gmra.mrb[90].mxu1 %v2914_v3 }
 0xb5a   :  { %4396 = vmatprep.mubr.f32.mxu1 %v2915_v13 }
 0xb5d   :  { %4397 = vmatmul.mubr.f32.gmra.mrb[92].mxu1 %v2916_v14 }
 0xb5e   :  { %4399 = vmatprep.mubr.f32.mxu1 %v2917_v15 }
 0xb61   :  { %4400 = vmatmul.mubr.f32.gmra.mrb[94].mxu1 %v2918_v16 }
 0xb62   :  { %4402 = vmatprep.mubr.f32.mxu1 %v2919_v62 }
 0xb65   :  { %4403 = vmatmul.mubr.f32.gmra.mrb[96].mxu1 %v2920_v52 }
 0xc1c   :  { %v4383_v55 = vpop.f32.mrb[82].mxu1 }
 0xc1d   :  { %v3000_v4 = vadd.f32 %v4383_v55, %v3426_v18  ;;  %v2994_v6 = vpop.f32.mrb[83].mxu1 }
 0xc1e   :  { %v2995_v27 = vadd.f32 %v3426_v18, %v2994_v6 }
 0xc1f   :  { %3074 = vst.msk [vmem:[%s6292_s13 + $0x8] sm:$0xff] %vm51_vm0, %v3000_v4 }
 0xc20   :  { %3073 = vst.msk [vmem:[%s6292_s13] sm:$0xff] %vm51_vm0, %v2995_v27  ;;  %v4386_v7 = vpop.f32.mrb[84].mxu1 }
 0xc21   :  { %v3010_v9 = vadd.f32 %v4386_v7, %v3426_v18  ;;  %v3004_v10 = vpop.f32.mrb[85].mxu1 }
 0xc22   :  { %v3005_v11 = vadd.f32 %v3426_v18, %v3004_v10 }
 0xc23   :  { %3076 = vst.msk [vmem:[%s6292_s13 + $0x18] sm:$0xff] %vm51_vm0, %v3010_v9 }
 0xc24   :  { %3075 = vst.msk [vmem:[%s6292_s13 + $0x10] sm:$0xff] %vm51_vm0, %v3005_v11  ;;  %v4389_v12 = vpop.f32.mrb[86].mxu1 }
 0xc25   :  { %v3020_v29 = vadd.f32 %v4389_v12, %v3426_v18  ;;  %v3014_v30 = vpop.f32.mrb[87].mxu1 }
 0xc26   :  { %v3015_v22 = vadd.f32 %v3426_v18, %v3014_v30 }
 0xc27   :  { %3078 = vst.msk [vmem:[%s6292_s13 + $0x28] sm:$0xff] %vm51_vm0, %v3020_v29 }
 0xc28   :  { %3077 = vst.msk [vmem:[%s6292_s13 + $0x20] sm:$0xff] %vm51_vm0, %v3015_v22  ;;  %v4392_v2 = vpop.f32.mrb[88].mxu1 }
 0xc29   :  { %v3030_v5 = vadd.f32 %v4392_v2, %v3426_v18  ;;  %v3024_v31 = vpop.f32.mrb[89].mxu1 }
 0xc2a   :  { %v3025_v32 = vadd.f32 %v3426_v18, %v3024_v31 }
 0xc2b   :  { %3080 = vst.msk [vmem:[%s6292_s13 + $0x38] sm:$0xff] %vm51_vm0, %v3030_v5 }
 0xc2c   :  { %3079 = vst.msk [vmem:[%s6292_s13 + $0x30] sm:$0xff] %vm51_vm0, %v3025_v32  ;;  %v4395_v26 = vpop.f32.mrb[90].mxu1 }
 0xc2d   :  { %v3040_v17 = vadd.f32 %v4395_v26, %v3426_v18  ;;  %v3034_v58 = vpop.f32.mrb[91].mxu1 }
 0xc2e   :  { %v3035_v33 = vadd.f32 %v3426_v18, %v3034_v58 }
 0xc2f   :  { %3082 = vst.msk [vmem:[%s6292_s13 + $0x48] sm:$0xff] %vm51_vm0, %v3040_v17 }
 0xc30   :  { %3081 = vst.msk [vmem:[%s6292_s13 + $0x40] sm:$0xff] %vm51_vm0, %v3035_v33  ;;  %v4398_v35 = vpop.f32.mrb[92].mxu1 }
 0xc31   :  { %v3050_v19 = vadd.f32 %v4398_v35, %v3426_v18  ;;  %v3044_v20 = vpop.f32.mrb[93].mxu1 }
 0xc32   :  { %v3045_v21 = vadd.f32 %v3426_v18, %v3044_v20 }
 0xc33   :  { %3084 = vst.msk [vmem:[%s6292_s13 + $0x58] sm:$0xff] %vm51_vm0, %v3050_v19 }
 0xc34   :  { %3083 = vst.msk [vmem:[%s6292_s13 + $0x50] sm:$0xff] %vm51_vm0, %v3045_v21  ;;  %v4401_v25 = vpop.f32.mrb[94].mxu1 }
 0xc35   :  { %v3060_v36 = vadd.f32 %v4401_v25, %v3426_v18  ;;  %v3054_v39 = vpop.f32.mrb[95].mxu1 }
 0xc36   :  { %v3055_v40 = vadd.f32 %v3426_v18, %v3054_v39 }
 0xc37   :  { %3086 = vst.msk [vmem:[%s6292_s13 + $0x68] sm:$0xff] %vm51_vm0, %v3060_v36 }
 0xc38   :  { %3085 = vst.msk [vmem:[%s6292_s13 + $0x60] sm:$0xff] %vm51_vm0, %v3055_v40  ;;  %v4404_v42 = vpop.f32.mrb[96].mxu1 }
 0xc39   :  { %v3070_v43 = vadd.f32 %v4404_v42, %v3426_v18  ;;  %v3064_v8 = vpop.f32.mrb[97].mxu1 }
 0xc3a   :  { %v3065_v28 = vadd.f32 %v3426_v18, %v3064_v8 }
 0xc3b   :  { %3088 = vst.msk [vmem:[%s6292_s13 + $0x78] sm:$0xff] %vm51_vm0, %v3070_v43 }
 0xc3c   :  { %3087 = vst.msk [vmem:[%s6292_s13 + $0x70] sm:$0xff] %vm51_vm0, %v3065_v28 }

</bundles_post_ra>
